<compile_context>
chip_gen: v7x
topology: tpu7x:2x2x1
jax: 0.10.0
libtpu: 0.0.40
codegen_flags: <defaults>
</compile_context>

<pallas_src>
import jax
import jax.numpy as jnp
from jax.experimental import pallas as pl
from jax.experimental.pallas import tpu as pltpu  # noqa: F401  (TPU backend extensions)

# ---- small but module-consistent configuration -------------------------------
B, S = 2, 8
BS = B * S
IN_DIM = 128           # in_dim
DIM = 128              # dim
DEPTH = 2              # depth
HEADS = 4              # heads
DIM_HEAD = 32          # dim_head
INNER = HEADS * DIM_HEAD   # 128
MLP = 128              # mlp_dim
N_JTS, JT_DIM = 22, 6
OUT = N_JTS * JT_DIM   # 132
OUT_PAD = 256          # lane-dense padded output width (multiple of 128)
EPS = 1e-5
SCALE = DIM_HEAD ** -0.5
NEG = float(-jnp.finfo(jnp.float32).max)

F32 = jnp.float32
BF16 = jnp.bfloat16


def _layernorm(x, g, b):
    # E[x^2] - mu^2 form: the two row reductions are independent (shorter XLU chain).
    mu = jnp.mean(x, axis=-1, keepdims=True)
    ex2 = jnp.mean(x * x, axis=-1, keepdims=True)
    var = jnp.maximum(ex2 - mu * mu, 0.0)
    return (x - mu) * jax.lax.rsqrt(var + EPS) * g + b


def _gelu(x):
    # TODO(synk): nn.GELU defaults to exact erf-GELU; tanh-approx used for portable
    # Mosaic lowering (difference is O(1e-3) absolute).
    return jax.nn.gelu(x, approximate=True)


# ------------------------------- kernel ---------------------------------------
def temporal_pose_kernel(
    x_ref, m_ref, addmask_ref, pe_ref,
    emb_w_ref, wqkv_ref, wo_ref, ffw1_ref, ffw2_ref,
    rw1a_ref, rw1b_ref, rw2_ref,
    lmisc_ref, smisc_ref,
    y_ref,
):
    x = x_ref[...]               # (BS, IN_DIM) f32
    m = m_ref[...]               # (BS, 1) f32 {0,1}
    addmask = addmask_ref[...]   # (BS, BS) f32, 0 where attended, NEG where masked

    # packed shared params (rows of smisc)
    emb_b = smisc_ref[0:1, :DIM]
    mtok = smisc_ref[1:2, :DIM]
    ln3g = smisc_ref[2:3, :DIM]
    ln3b = smisc_ref[3:4, :DIM]
    rb1 = smisc_ref[4:5, :MLP]
    rb2 = smisc_ref[5:6, :]      # (1, OUT_PAD)

    # embedding + mask-token blend + positional encoding
    h = jnp.dot(x.astype(BF16), emb_w_ref[...], preferred_element_type=F32) + emb_b
    h = h * m + mtok * (1.0 - m)
    h = h + pe_ref[...]

    # init_pose buffer is zeros -> initial pose prediction is zeros (lane-padded)
    y = jnp.zeros((BS, OUT_PAD), F32)

    for l in range(DEPTH):
        # packed per-layer params (rows of lmisc[l])
        ln1g = lmisc_ref[l, 0:1, :]
        ln1b = lmisc_ref[l, 1:2, :]
        ln2g = lmisc_ref[l, 2:3, :]
        ln2b = lmisc_ref[l, 3:4, :]
        bo = lmisc_ref[l, 4:5, :]
        ffb1 = lmisc_ref[l, 5:6, :]
        ffb2 = lmisc_ref[l, 6:7, :]

        # ---- PreNorm(Attention) + residual ----
        xn = _layernorm(h, ln1g, ln1b)
        # SCALE is pre-folded into the q-columns of wqkv.
        qkv = jnp.dot(xn.astype(BF16), wqkv_ref[l], preferred_element_type=F32)  # (BS, 3*INNER)
        qkv_b = qkv.astype(BF16)
        wo_l = wo_ref[l]                                                          # (INNER, DIM) bf16

        # per-head NT score matmuls (no k.T), additive mask, stacked along sublanes
        dots_list = []
        for hh in range(HEADS):
            lo = hh * DIM_HEAD
            q = qkv_b[:, lo:lo + DIM_HEAD]
            k = qkv_b[:, INNER + lo:INNER + lo + DIM_HEAD]
            d = jax.lax.dot_general(q, k, (((1,), (1,)), ((), ())),
                                    preferred_element_type=F32)                   # (BS, BS)
            dots_list.append(d + addmask)
        dots = jnp.concatenate(dots_list, axis=0)                                 # (HEADS*BS, BS)

        # one batched softmax for all heads (single max/exp/sum/reciprocal per layer)
        dmax = jnp.max(dots, axis=-1, keepdims=True)
        e = jnp.exp(dots - dmax)
        p = e * pl.reciprocal(jnp.sum(e, axis=-1, keepdims=True), approx=True)
        p_b = p.astype(BF16)

        attn_out = jnp.zeros((BS, DIM), F32)
        for hh in range(HEADS):
            lo = hh * DIM_HEAD
            v = qkv_b[:, 2 * INNER + lo:2 * INNER + lo + DIM_HEAD]
            hv = jnp.dot(p_b[hh * BS:(hh + 1) * BS, :], v, preferred_element_type=F32)
            # wo folded into the head loop (row slice is sublane-aligned: DIM_HEAD % 8 == 0)
            attn_out = attn_out + jnp.dot(hv.astype(BF16), wo_l[lo:lo + DIM_HEAD, :],
                                          preferred_element_type=F32)
        h = attn_out + bo + h

        # ---- PreNorm(FeedForward) + residual ----
        xn = _layernorm(h, ln2g, ln2b)
        hid = _gelu(jnp.dot(xn.astype(BF16), ffw1_ref[l], preferred_element_type=F32) + ffb1)
        h = jnp.dot(hid.astype(BF16), ffw2_ref[l], preferred_element_type=F32) + ffb2 + h

        # ---- PreNorm(FeedForwardResidual), shared across depth (share_regressor) ----
        # cat([xn, y], -1) @ rw1 split as xn @ rw1a + y @ rw1b (no in-kernel concat).
        xn = _layernorm(h, ln3g, ln3b)
        pre = jnp.dot(xn.astype(BF16), rw1a_ref[...], preferred_element_type=F32) + rb1
        if l > 0:  # at l == 0, y is all zeros -> y @ rw1b contributes exactly 0
            pre = pre + jnp.dot(y.astype(BF16), rw1b_ref[...], preferred_element_type=F32)
        rhid = _gelu(pre)
        y = y + jnp.dot(rhid.astype(BF16), rw2_ref[...], preferred_element_type=F32) + rb2

    y_ref[...] = y   # lane-dense (BS, OUT_PAD) store


# --------------------- one-time parameter preparation --------------------------
def prepare_params(P):
    """Hoist all static transforms (padding, packing, bf16 cast, SCALE fold, pe tile,
    block-diagonal batch mask) out of the per-call path."""
    # fold attention scale into the q block of wqkv (before the bf16 cast)
    wqkv = P["wqkv"].at[:, :, :INNER].multiply(SCALE)

    # zero-pad regressor weights so the padded output columns stay exactly zero
    rw1b_pad = jnp.zeros((OUT_PAD, MLP), F32).at[:OUT, :].set(P["rw1b"])
    rw2_pad = jnp.zeros((MLP, OUT_PAD), F32).at[:, :OUT].set(P["rw2"])
    rb2_pad = jnp.zeros((OUT_PAD,), F32).at[:OUT].set(P["rb2"][0])

    pe_full = jnp.tile(P["pe"], (B, 1))                      # (BS, DIM)

    # static block-diagonal same-batch mask (combined with the runtime key mask per call)
    batch_ids = jnp.arange(BS, dtype=jnp.int32) // S
    same_batch = batch_ids[:, None] == batch_ids[None, :]    # (BS, BS) bool

    # per-layer small params packed into one (DEPTH, 8, DIM) slab
    lmisc = jnp.stack([
        jnp.concatenate([P["ln1g"][l], P["ln1b"][l], P["ln2g"][l], P["ln2b"][l],
                         P["bo"][l], P["ffb1"][l], P["ffb2"][l],
                         jnp.zeros((1, DIM), F32)], axis=0)
        for l in range(DEPTH)], axis=0)

    # shared small params packed into one (8, OUT_PAD) slab
    def _row(v):  # (1,128) -> (1, OUT_PAD)
        return jnp.zeros((1, OUT_PAD), F32).at[:, :DIM].set(v)
    smisc = jnp.concatenate([
        _row(P["emb_b"]), _row(P["mtok"]), _row(P["ln3g"]), _row(P["ln3b"]),
        _row(P["rb1"]), rb2_pad[None, :], jnp.zeros((2, OUT_PAD), F32)], axis=0)

    return dict(
        pe_full=pe_full, same_batch=same_batch,
        emb_w=P["emb_w"].astype(BF16),
        wqkv=wqkv.astype(BF16), wo=P["wo"].astype(BF16),
        ffw1=P["ffw1"].astype(BF16), ffw2=P["ffw2"].astype(BF16),
        rw1a=P["rw1a"].astype(BF16), rw1b=rw1b_pad.astype(BF16),
        rw2=rw2_pad.astype(BF16),
        lmisc=lmisc, smisc=smisc,
    )


# ------------------------------ per-call wrapper --------------------------------
@jax.jit
def temporal_pose_forward(x, mask, prep):
    # fuse batch into M (everything fits in VMEM; no grid needed at BS=16)
    x2d = x.reshape(BS, IN_DIM)
    m2d = mask.reshape(BS, 1).astype(F32)
    key_ok = m2d[:, 0][None, :] > 0.5
    addmask = jnp.where(prep["same_batch"] & key_ok, 0.0, NEG).astype(F32)

    out2d = pl.pallas_call(
        temporal_pose_kernel,
        out_shape=jax.ShapeDtypeStruct((BS, OUT_PAD), F32),
    )(x2d, m2d, addmask, prep["pe_full"],
      prep["emb_w"], prep["wqkv"], prep["wo"], prep["ffw1"], prep["ffw2"],
      prep["rw1a"], prep["rw1b"], prep["rw2"],
      prep["lmisc"], prep["smisc"])

    return out2d[:, :OUT].reshape(B, S, OUT)


# -------------------------- pure-JAX reference ---------------------------------
def ref_forward(x, mask, P):
    m = mask                                   # (B, S, 1)
    h = x @ P["emb_w"] + P["emb_b"]
    h = h * m + P["mtok"] * (1.0 - m)
    h = h + P["pe"][None]
    y = jnp.zeros((B, S, OUT), F32)
    kmask = m[:, :, 0][:, None, None, :]       # (B, 1, 1, S)
    for l in range(DEPTH):
        xn = _layernorm(h, P["ln1g"][l], P["ln1b"][l])
        qkv = xn @ P["wqkv"][l]
        q, k, v = jnp.split(qkv, 3, axis=-1)
        split_heads = lambda t: t.reshape(B, S, HEADS, DIM_HEAD).transpose(0, 2, 1, 3)
        q, k, v = split_heads(q), split_heads(k), split_heads(v)
        dots = jnp.einsum("bhid,bhjd->bhij", q, k) * SCALE
        dots = jnp.where(kmask > 0.5, dots, NEG)
        attn = jax.nn.softmax(dots, axis=-1)
        o = jnp.einsum("bhij,bhjd->bhid", attn, v)
        o = o.transpose(0, 2, 1, 3).reshape(B, S, INNER)
        h = o @ P["wo"][l] + P["bo"][l] + h
        xn = _layernorm(h, P["ln2g"][l], P["ln2b"][l])
        h = _gelu(xn @ P["ffw1"][l] + P["ffb1"][l]) @ P["ffw2"][l] + P["ffb2"][l] + h
        xn = _layernorm(h, P["ln3g"], P["ln3b"])
        rhid = _gelu(xn @ P["rw1a"] + y @ P["rw1b"] + P["rb1"])
        y = y + rhid @ P["rw2"] + P["rb2"]
    return y


# ------------------------------- params ----------------------------------------
def make_params(key):
    ks = list(jax.random.split(key, 24))
    nrm = lambda k, shape, scale: (scale * jax.random.normal(k, shape, F32))
    P = {}
    P["pe"] = nrm(ks[0], (S, DIM), 1.0)                      # slice of (1, 1024, dim)
    P["emb_w"] = nrm(ks[1], (IN_DIM, DIM), IN_DIM ** -0.5)
    P["emb_b"] = nrm(ks[2], (1, DIM), 0.01)
    P["mtok"] = nrm(ks[3], (1, DIM), 1.0)
    # per-layer transformer params (stacked on a leading depth axis)
    P["ln1g"] = jnp.ones((DEPTH, 1, DIM), F32)
    P["ln1b"] = jnp.zeros((DEPTH, 1, DIM), F32)
    P["wqkv"] = nrm(ks[4], (DEPTH, DIM, 3 * INNER), DIM ** -0.5)
    P["wo"] = nrm(ks[5], (DEPTH, INNER, DIM), INNER ** -0.5)
    P["bo"] = nrm(ks[6], (DEPTH, 1, DIM), 0.01)
    P["ln2g"] = jnp.ones((DEPTH, 1, DIM), F32)
    P["ln2b"] = jnp.zeros((DEPTH, 1, DIM), F32)
    P["ffw1"] = nrm(ks[7], (DEPTH, DIM, MLP), DIM ** -0.5)
    P["ffb1"] = nrm(ks[8], (DEPTH, 1, MLP), 0.01)
    P["ffw2"] = nrm(ks[9], (DEPTH, MLP, DIM), MLP ** -0.5)
    P["ffb2"] = nrm(ks[10], (DEPTH, 1, DIM), 0.01)
    # shared regressor (share_regressor == 1): single set of weights reused at every depth
    P["ln3g"] = jnp.ones((1, DIM), F32)
    P["ln3b"] = jnp.zeros((1, DIM), F32)
    P["rw1a"] = nrm(ks[11], (DIM, MLP), (DIM + OUT) ** -0.5)   # acts on normed features
    P["rw1b"] = nrm(ks[12], (OUT, MLP), (DIM + OUT) ** -0.5)   # acts on current pose
    P["rb1"] = nrm(ks[13], (1, MLP), 0.01)
    P["rw2"] = nrm(ks[14], (MLP, OUT), 0.01 * MLP ** -0.5)     # xavier gain=0.01-style small init
    P["rb2"] = nrm(ks[15], (1, OUT), 0.01)
    return P


if __name__ == "__main__":
    key = jax.random.PRNGKey(0)
    kx, kp = jax.random.split(key)
    P = make_params(kp)
    prep = prepare_params(P)          # one-time static prep (bf16 cast, packing, padding)

    x = jax.random.normal(kx, (B, S, IN_DIM), F32)
    mask = jnp.ones((B, S, 1), F32)
    mask = mask.at[1, -1, 0].set(0.0)   # exercise the masking path

    out = temporal_pose_forward(x, mask, prep)
    out = jax.block_until_ready(out)
    assert out.shape == (B, S, OUT) and out.dtype == F32

    with jax.default_matmul_precision("highest"):
        ref = jax.block_until_ready(ref_forward(x, mask, P))

    if not jnp.allclose(out, ref, atol=1e-2, rtol=1e-2):
        raise AssertionError(
            f"mismatch: max abs diff = {float(jnp.max(jnp.abs(out - ref)))}")
    print("KERNEL_OK")
</pallas_src>

<mosaic_0001>
module attributes {stable_mosaic.version = 11 : i64} {
  func.func @temporal_pose_kernel(%arg0: memref<16x128xf32, #tpu.memory_space<vmem>>, %arg1: memref<16x1xf32, #tpu.memory_space<vmem>>, %arg2: memref<16x16xf32, #tpu.memory_space<vmem>>, %arg3: memref<16x128xf32, #tpu.memory_space<vmem>>, %arg4: memref<128x128xbf16, #tpu.memory_space<vmem>>, %arg5: memref<2x128x384xbf16, #tpu.memory_space<vmem>>, %arg6: memref<2x128x128xbf16, #tpu.memory_space<vmem>>, %arg7: memref<2x128x128xbf16, #tpu.memory_space<vmem>>, %arg8: memref<2x128x128xbf16, #tpu.memory_space<vmem>>, %arg9: memref<128x128xbf16, #tpu.memory_space<vmem>>, %arg10: memref<256x128xbf16, #tpu.memory_space<vmem>>, %arg11: memref<128x256xbf16, #tpu.memory_space<vmem>>, %arg12: memref<2x8x128xf32, #tpu.memory_space<vmem>>, %arg13: memref<8x256xf32, #tpu.memory_space<vmem>>, %arg14: memref<16x256xf32, #tpu.memory_space<vmem>>) attributes {dimension_semantics = [], scalar_prefetch = 0 : i64, scratch_operands = 0 : i64, tpu.core_type = #tpu.core_type<tc>} {
    %c0 = arith.constant 0 : index
    %c0_0 = arith.constant 0 : index
    %0 = vector.load %arg0[%c0, %c0_0] : memref<16x128xf32, #tpu.memory_space<vmem>>, vector<16x128xf32>
    %c0_1 = arith.constant 0 : index
    %c0_2 = arith.constant 0 : index
    %1 = vector.load %arg1[%c0_1, %c0_2] : memref<16x1xf32, #tpu.memory_space<vmem>>, vector<16x1xf32>
    %c0_3 = arith.constant 0 : index
    %c0_4 = arith.constant 0 : index
    %2 = vector.load %arg2[%c0_3, %c0_4] : memref<16x16xf32, #tpu.memory_space<vmem>>, vector<16x16xf32>
    %c0_5 = arith.constant 0 : index
    %c0_6 = arith.constant 0 : index
    %3 = vector.load %arg13[%c0_5, %c0_6] : memref<8x256xf32, #tpu.memory_space<vmem>>, vector<1x128xf32>
    %c1 = arith.constant 1 : index
    %c0_7 = arith.constant 0 : index
    %4 = vector.load %arg13[%c1, %c0_7] : memref<8x256xf32, #tpu.memory_space<vmem>>, vector<1x128xf32>
    %c2 = arith.constant 2 : index
    %c0_8 = arith.constant 0 : index
    %5 = vector.load %arg13[%c2, %c0_8] : memref<8x256xf32, #tpu.memory_space<vmem>>, vector<1x128xf32>
    %c3 = arith.constant 3 : index
    %c0_9 = arith.constant 0 : index
    %6 = vector.load %arg13[%c3, %c0_9] : memref<8x256xf32, #tpu.memory_space<vmem>>, vector<1x128xf32>
    %c4 = arith.constant 4 : index
    %c0_10 = arith.constant 0 : index
    %7 = vector.load %arg13[%c4, %c0_10] : memref<8x256xf32, #tpu.memory_space<vmem>>, vector<1x128xf32>
    %c5 = arith.constant 5 : index
    %c0_11 = arith.constant 0 : index
    %8 = vector.load %arg13[%c5, %c0_11] : memref<8x256xf32, #tpu.memory_space<vmem>>, vector<1x256xf32>
    %9 = arith.truncf %0 : vector<16x128xf32> to vector<16x128xbf16>
    %c0_12 = arith.constant 0 : index
    %c0_13 = arith.constant 0 : index
    %10 = vector.load %arg4[%c0_12, %c0_13] : memref<128x128xbf16, #tpu.memory_space<vmem>>, vector<128x128xbf16>
    %cst = arith.constant dense<0.000000e+00> : vector<16x128xf32>
    %11 = tpu.matmul %9, %10, %cst {dimension_numbers = #tpu.dot_dimension_numbers<[1], [0], [0], [1], [0, 0, 1, 1], [], []>} : vector<16x128xbf16>, vector<128x128xbf16>, vector<16x128xf32> -> vector<16x128xf32>
    %12 = vector.broadcast %3 : vector<1x128xf32> to vector<16x128xf32>
    %13 = arith.addf %11, %12 : vector<16x128xf32>
    %14 = vector.broadcast %1 : vector<16x1xf32> to vector<16x128xf32>
    %15 = arith.mulf %13, %14 : vector<16x128xf32>
    %cst_14 = arith.constant 1.000000e+00 : f32
    %16 = vector.broadcast %cst_14 : f32 to vector<16x1xf32>
    %17 = arith.subf %16, %1 : vector<16x1xf32>
    %18 = vector.broadcast %4 : vector<1x128xf32> to vector<16x128xf32>
    %19 = vector.broadcast %17 : vector<16x1xf32> to vector<16x128xf32>
    %20 = arith.mulf %18, %19 : vector<16x128xf32>
    %21 = arith.addf %15, %20 : vector<16x128xf32>
    %c0_15 = arith.constant 0 : index
    %c0_16 = arith.constant 0 : index
    %22 = vector.load %arg3[%c0_15, %c0_16] : memref<16x128xf32, #tpu.memory_space<vmem>>, vector<16x128xf32>
    %23 = arith.addf %21, %22 : vector<16x128xf32>
    %cst_17 = arith.constant 0.000000e+00 : f32
    %24 = vector.broadcast %cst_17 : f32 to vector<16x256xf32>
    %c0_18 = arith.constant 0 : index
    %c0_19 = arith.constant 0 : index
    %c0_20 = arith.constant 0 : index
    %25 = vector.load %arg12[%c0_18, %c0_19, %c0_20] : memref<2x8x128xf32, #tpu.memory_space<vmem>>, vector<1x1x128xf32>
    %26 = vector.shape_cast %25 : vector<1x1x128xf32> to vector<1x128xf32>
    %c0_21 = arith.constant 0 : index
    %c1_22 = arith.constant 1 : index
    %c0_23 = arith.constant 0 : index
    %27 = vector.load %arg12[%c0_21, %c1_22, %c0_23] : memref<2x8x128xf32, #tpu.memory_space<vmem>>, vector<1x1x128xf32>
    %28 = vector.shape_cast %27 : vector<1x1x128xf32> to vector<1x128xf32>
    %c0_24 = arith.constant 0 : index
    %c2_25 = arith.constant 2 : index
    %c0_26 = arith.constant 0 : index
    %29 = vector.load %arg12[%c0_24, %c2_25, %c0_26] : memref<2x8x128xf32, #tpu.memory_space<vmem>>, vector<1x1x128xf32>
    %30 = vector.shape_cast %29 : vector<1x1x128xf32> to vector<1x128xf32>
    %c0_27 = arith.constant 0 : index
    %c3_28 = arith.constant 3 : index
    %c0_29 = arith.constant 0 : index
    %31 = vector.load %arg12[%c0_27, %c3_28, %c0_29] : memref<2x8x128xf32, #tpu.memory_space<vmem>>, vector<1x1x128xf32>
    %32 = vector.shape_cast %31 : vector<1x1x128xf32> to vector<1x128xf32>
    %c0_30 = arith.constant 0 : index
    %c4_31 = arith.constant 4 : index
    %c0_32 = arith.constant 0 : index
    %33 = vector.load %arg12[%c0_30, %c4_31, %c0_32] : memref<2x8x128xf32, #tpu.memory_space<vmem>>, vector<1x1x128xf32>
    %34 = vector.shape_cast %33 : vector<1x1x128xf32> to vector<1x128xf32>
    %c0_33 = arith.constant 0 : index
    %c5_34 = arith.constant 5 : index
    %c0_35 = arith.constant 0 : index
    %35 = vector.load %arg12[%c0_33, %c5_34, %c0_35] : memref<2x8x128xf32, #tpu.memory_space<vmem>>, vector<1x1x128xf32>
    %36 = vector.shape_cast %35 : vector<1x1x128xf32> to vector<1x128xf32>
    %c0_36 = arith.constant 0 : index
    %c6 = arith.constant 6 : index
    %c0_37 = arith.constant 0 : index
    %37 = vector.load %arg12[%c0_36, %c6, %c0_37] : memref<2x8x128xf32, #tpu.memory_space<vmem>>, vector<1x1x128xf32>
    %38 = vector.shape_cast %37 : vector<1x1x128xf32> to vector<1x128xf32>
    %cst_38 = arith.constant dense<0.000000e+00> : vector<16xf32>
    %39 = vector.multi_reduction <add>, %23, %cst_38 [1] : vector<16x128xf32> to vector<16xf32>
    %40 = vector.shape_cast %39 : vector<16xf32> to vector<16x1xf32>
    %cst_39 = arith.constant 1.280000e+02 : f32
    %41 = vector.broadcast %cst_39 : f32 to vector<16x1xf32>
    %42 = arith.divf %40, %41 : vector<16x1xf32>
    %43 = arith.mulf %23, %23 : vector<16x128xf32>
    %cst_40 = arith.constant dense<0.000000e+00> : vector<16xf32>
    %44 = vector.multi_reduction <add>, %43, %cst_40 [1] : vector<16x128xf32> to vector<16xf32>
    %45 = vector.shape_cast %44 : vector<16xf32> to vector<16x1xf32>
    %cst_41 = arith.constant 1.280000e+02 : f32
    %46 = vector.broadcast %cst_41 : f32 to vector<16x1xf32>
    %47 = arith.divf %45, %46 : vector<16x1xf32>
    %48 = arith.mulf %42, %42 : vector<16x1xf32>
    %49 = arith.subf %47, %48 : vector<16x1xf32>
    %cst_42 = arith.constant 0.000000e+00 : f32
    %50 = vector.broadcast %cst_42 : f32 to vector<16x1xf32>
    %51 = arith.maximumf %49, %50 : vector<16x1xf32>
    %52 = vector.broadcast %42 : vector<16x1xf32> to vector<16x128xf32>
    %53 = arith.subf %23, %52 : vector<16x128xf32>
    %cst_43 = arith.constant 9.99999974E-6 : f32
    %54 = vector.broadcast %cst_43 : f32 to vector<16x1xf32>
    %55 = arith.addf %51, %54 : vector<16x1xf32>
    %56 = math.rsqrt %55 : vector<16x1xf32>
    %57 = vector.broadcast %56 : vector<16x1xf32> to vector<16x128xf32>
    %58 = arith.mulf %53, %57 : vector<16x128xf32>
    %59 = vector.broadcast %26 : vector<1x128xf32> to vector<16x128xf32>
    %60 = arith.mulf %58, %59 : vector<16x128xf32>
    %61 = vector.broadcast %28 : vector<1x128xf32> to vector<16x128xf32>
    %62 = arith.addf %60, %61 : vector<16x128xf32>
    %63 = arith.truncf %62 : vector<16x128xf32> to vector<16x128xbf16>
    %c0_44 = arith.constant 0 : index
    %c0_45 = arith.constant 0 : index
    %c0_46 = arith.constant 0 : index
    %64 = vector.load %arg5[%c0_44, %c0_45, %c0_46] : memref<2x128x384xbf16, #tpu.memory_space<vmem>>, vector<1x128x384xbf16>
    %65 = vector.shape_cast %64 : vector<1x128x384xbf16> to vector<128x384xbf16>
    %cst_47 = arith.constant dense<0.000000e+00> : vector<16x384xf32>
    %66 = tpu.matmul %63, %65, %cst_47 {dimension_numbers = #tpu.dot_dimension_numbers<[1], [0], [0], [1], [0, 0, 1, 1], [], []>} : vector<16x128xbf16>, vector<128x384xbf16>, vector<16x384xf32> -> vector<16x384xf32>
    %67 = arith.truncf %66 : vector<16x384xf32> to vector<16x384xbf16>
    %c0_48 = arith.constant 0 : index
    %c0_49 = arith.constant 0 : index
    %c0_50 = arith.constant 0 : index
    %68 = vector.load %arg6[%c0_48, %c0_49, %c0_50] : memref<2x128x128xbf16, #tpu.memory_space<vmem>>, vector<1x128x128xbf16>
    %69 = vector.shape_cast %68 : vector<1x128x128xbf16> to vector<128x128xbf16>
    %70 = vector.extract_strided_slice %67 {offsets = [0, 0], sizes = [16, 32], strides = [1, 1]} : vector<16x384xbf16> to vector<16x32xbf16>
    %71 = vector.extract_strided_slice %67 {offsets = [0, 128], sizes = [16, 32], strides = [1, 1]} : vector<16x384xbf16> to vector<16x32xbf16>
    %cst_51 = arith.constant dense<0.000000e+00> : vector<16x16xf32>
    %72 = tpu.matmul %70, %71, %cst_51 {dimension_numbers = #tpu.dot_dimension_numbers<[1], [1], [0], [0], [0, 0, 1, 0], [], []>} : vector<16x32xbf16>, vector<16x32xbf16>, vector<16x16xf32> -> vector<16x16xf32>
    %73 = arith.addf %72, %2 : vector<16x16xf32>
    %74 = vector.extract_strided_slice %67 {offsets = [0, 32], sizes = [16, 32], strides = [1, 1]} : vector<16x384xbf16> to vector<16x32xbf16>
    %75 = vector.extract_strided_slice %67 {offsets = [0, 160], sizes = [16, 32], strides = [1, 1]} : vector<16x384xbf16> to vector<16x32xbf16>
    %cst_52 = arith.constant dense<0.000000e+00> : vector<16x16xf32>
    %76 = tpu.matmul %74, %75, %cst_52 {dimension_numbers = #tpu.dot_dimension_numbers<[1], [1], [0], [0], [0, 0, 1, 0], [], []>} : vector<16x32xbf16>, vector<16x32xbf16>, vector<16x16xf32> -> vector<16x16xf32>
    %77 = arith.addf %76, %2 : vector<16x16xf32>
    %78 = vector.extract_strided_slice %67 {offsets = [0, 64], sizes = [16, 32], strides = [1, 1]} : vector<16x384xbf16> to vector<16x32xbf16>
    %79 = vector.extract_strided_slice %67 {offsets = [0, 192], sizes = [16, 32], strides = [1, 1]} : vector<16x384xbf16> to vector<16x32xbf16>
    %cst_53 = arith.constant dense<0.000000e+00> : vector<16x16xf32>
    %80 = tpu.matmul %78, %79, %cst_53 {dimension_numbers = #tpu.dot_dimension_numbers<[1], [1], [0], [0], [0, 0, 1, 0], [], []>} : vector<16x32xbf16>, vector<16x32xbf16>, vector<16x16xf32> -> vector<16x16xf32>
    %81 = arith.addf %80, %2 : vector<16x16xf32>
    %82 = vector.extract_strided_slice %67 {offsets = [0, 96], sizes = [16, 32], strides = [1, 1]} : vector<16x384xbf16> to vector<16x32xbf16>
    %83 = vector.extract_strided_slice %67 {offsets = [0, 224], sizes = [16, 32], strides = [1, 1]} : vector<16x384xbf16> to vector<16x32xbf16>
    %cst_54 = arith.constant dense<0.000000e+00> : vector<16x16xf32>
    %84 = tpu.matmul %82, %83, %cst_54 {dimension_numbers = #tpu.dot_dimension_numbers<[1], [1], [0], [0], [0, 0, 1, 0], [], []>} : vector<16x32xbf16>, vector<16x32xbf16>, vector<16x16xf32> -> vector<16x16xf32>
    %85 = arith.addf %84, %2 : vector<16x16xf32>
    %86 = tpu.concatenate %73, %77, %81, %85 in 0 : vector<16x16xf32>, vector<16x16xf32>, vector<16x16xf32>, vector<16x16xf32> -> vector<64x16xf32>
    %cst_55 = arith.constant dense<0xFF800000> : vector<64xf32>
    %87 = vector.multi_reduction <maximumf>, %86, %cst_55 [1] : vector<64x16xf32> to vector<64xf32>
    %88 = vector.shape_cast %87 : vector<64xf32> to vector<64x1xf32>
    %89 = vector.broadcast %88 : vector<64x1xf32> to vector<64x16xf32>
    %90 = arith.subf %86, %89 : vector<64x16xf32>
    %91 = math.exp %90 : vector<64x16xf32>
    %cst_56 = arith.constant dense<0.000000e+00> : vector<64xf32>
    %92 = vector.multi_reduction <add>, %91, %cst_56 [1] : vector<64x16xf32> to vector<64xf32>
    %93 = vector.shape_cast %92 : vector<64xf32> to vector<64x1xf32>
    %94 = tpu.reciprocal %93 {approx = true} : vector<64x1xf32> -> vector<64x1xf32>
    %95 = vector.broadcast %94 : vector<64x1xf32> to vector<64x16xf32>
    %96 = arith.mulf %91, %95 : vector<64x16xf32>
    %97 = arith.truncf %96 : vector<64x16xf32> to vector<64x16xbf16>
    %cst_57 = arith.constant 0.000000e+00 : f32
    %98 = vector.broadcast %cst_57 : f32 to vector<16x128xf32>
    %99 = vector.extract_strided_slice %67 {offsets = [0, 256], sizes = [16, 32], strides = [1, 1]} : vector<16x384xbf16> to vector<16x32xbf16>
    %100 = vector.extract_strided_slice %97 {offsets = [0, 0], sizes = [16, 16], strides = [1, 1]} : vector<64x16xbf16> to vector<16x16xbf16>
    %cst_58 = arith.constant dense<0.000000e+00> : vector<16x32xf32>
    %101 = tpu.matmul %100, %99, %cst_58 {dimension_numbers = #tpu.dot_dimension_numbers<[1], [0], [0], [1], [0, 0, 1, 1], [], []>} : vector<16x16xbf16>, vector<16x32xbf16>, vector<16x32xf32> -> vector<16x32xf32>
    %102 = arith.truncf %101 : vector<16x32xf32> to vector<16x32xbf16>
    %103 = vector.extract_strided_slice %69 {offsets = [0, 0], sizes = [32, 128], strides = [1, 1]} : vector<128x128xbf16> to vector<32x128xbf16>
    %cst_59 = arith.constant dense<0.000000e+00> : vector<16x128xf32>
    %104 = tpu.matmul %102, %103, %cst_59 {dimension_numbers = #tpu.dot_dimension_numbers<[1], [0], [0], [1], [0, 0, 1, 1], [], []>} : vector<16x32xbf16>, vector<32x128xbf16>, vector<16x128xf32> -> vector<16x128xf32>
    %105 = arith.addf %98, %104 : vector<16x128xf32>
    %106 = vector.extract_strided_slice %67 {offsets = [0, 288], sizes = [16, 32], strides = [1, 1]} : vector<16x384xbf16> to vector<16x32xbf16>
    %107 = vector.extract_strided_slice %97 {offsets = [16, 0], sizes = [16, 16], strides = [1, 1]} : vector<64x16xbf16> to vector<16x16xbf16>
    %cst_60 = arith.constant dense<0.000000e+00> : vector<16x32xf32>
    %108 = tpu.matmul %107, %106, %cst_60 {dimension_numbers = #tpu.dot_dimension_numbers<[1], [0], [0], [1], [0, 0, 1, 1], [], []>} : vector<16x16xbf16>, vector<16x32xbf16>, vector<16x32xf32> -> vector<16x32xf32>
    %109 = arith.truncf %108 : vector<16x32xf32> to vector<16x32xbf16>
    %110 = vector.extract_strided_slice %69 {offsets = [32, 0], sizes = [32, 128], strides = [1, 1]} : vector<128x128xbf16> to vector<32x128xbf16>
    %cst_61 = arith.constant dense<0.000000e+00> : vector<16x128xf32>
    %111 = tpu.matmul %109, %110, %cst_61 {dimension_numbers = #tpu.dot_dimension_numbers<[1], [0], [0], [1], [0, 0, 1, 1], [], []>} : vector<16x32xbf16>, vector<32x128xbf16>, vector<16x128xf32> -> vector<16x128xf32>
    %112 = arith.addf %105, %111 : vector<16x128xf32>
    %113 = vector.extract_strided_slice %67 {offsets = [0, 320], sizes = [16, 32], strides = [1, 1]} : vector<16x384xbf16> to vector<16x32xbf16>
    %114 = vector.extract_strided_slice %97 {offsets = [32, 0], sizes = [16, 16], strides = [1, 1]} : vector<64x16xbf16> to vector<16x16xbf16>
    %cst_62 = arith.constant dense<0.000000e+00> : vector<16x32xf32>
    %115 = tpu.matmul %114, %113, %cst_62 {dimension_numbers = #tpu.dot_dimension_numbers<[1], [0], [0], [1], [0, 0, 1, 1], [], []>} : vector<16x16xbf16>, vector<16x32xbf16>, vector<16x32xf32> -> vector<16x32xf32>
    %116 = arith.truncf %115 : vector<16x32xf32> to vector<16x32xbf16>
    %117 = vector.extract_strided_slice %69 {offsets = [64, 0], sizes = [32, 128], strides = [1, 1]} : vector<128x128xbf16> to vector<32x128xbf16>
    %cst_63 = arith.constant dense<0.000000e+00> : vector<16x128xf32>
    %118 = tpu.matmul %116, %117, %cst_63 {dimension_numbers = #tpu.dot_dimension_numbers<[1], [0], [0], [1], [0, 0, 1, 1], [], []>} : vector<16x32xbf16>, vector<32x128xbf16>, vector<16x128xf32> -> vector<16x128xf32>
    %119 = arith.addf %112, %118 : vector<16x128xf32>
    %120 = vector.extract_strided_slice %67 {offsets = [0, 352], sizes = [16, 32], strides = [1, 1]} : vector<16x384xbf16> to vector<16x32xbf16>
    %121 = vector.extract_strided_slice %97 {offsets = [48, 0], sizes = [16, 16], strides = [1, 1]} : vector<64x16xbf16> to vector<16x16xbf16>
    %cst_64 = arith.constant dense<0.000000e+00> : vector<16x32xf32>
    %122 = tpu.matmul %121, %120, %cst_64 {dimension_numbers = #tpu.dot_dimension_numbers<[1], [0], [0], [1], [0, 0, 1, 1], [], []>} : vector<16x16xbf16>, vector<16x32xbf16>, vector<16x32xf32> -> vector<16x32xf32>
    %123 = arith.truncf %122 : vector<16x32xf32> to vector<16x32xbf16>
    %124 = vector.extract_strided_slice %69 {offsets = [96, 0], sizes = [32, 128], strides = [1, 1]} : vector<128x128xbf16> to vector<32x128xbf16>
    %cst_65 = arith.constant dense<0.000000e+00> : vector<16x128xf32>
    %125 = tpu.matmul %123, %124, %cst_65 {dimension_numbers = #tpu.dot_dimension_numbers<[1], [0], [0], [1], [0, 0, 1, 1], [], []>} : vector<16x32xbf16>, vector<32x128xbf16>, vector<16x128xf32> -> vector<16x128xf32>
    %126 = arith.addf %119, %125 : vector<16x128xf32>
    %127 = vector.broadcast %34 : vector<1x128xf32> to vector<16x128xf32>
    %128 = arith.addf %126, %127 : vector<16x128xf32>
    %129 = arith.addf %128, %23 : vector<16x128xf32>
    %cst_66 = arith.constant dense<0.000000e+00> : vector<16xf32>
    %130 = vector.multi_reduction <add>, %129, %cst_66 [1] : vector<16x128xf32> to vector<16xf32>
    %131 = vector.shape_cast %130 : vector<16xf32> to vector<16x1xf32>
    %cst_67 = arith.constant 1.280000e+02 : f32
    %132 = vector.broadcast %cst_67 : f32 to vector<16x1xf32>
    %133 = arith.divf %131, %132 : vector<16x1xf32>
    %134 = arith.mulf %129, %129 : vector<16x128xf32>
    %cst_68 = arith.constant dense<0.000000e+00> : vector<16xf32>
    %135 = vector.multi_reduction <add>, %134, %cst_68 [1] : vector<16x128xf32> to vector<16xf32>
    %136 = vector.shape_cast %135 : vector<16xf32> to vector<16x1xf32>
    %cst_69 = arith.constant 1.280000e+02 : f32
    %137 = vector.broadcast %cst_69 : f32 to vector<16x1xf32>
    %138 = arith.divf %136, %137 : vector<16x1xf32>
    %139 = arith.mulf %133, %133 : vector<16x1xf32>
    %140 = arith.subf %138, %139 : vector<16x1xf32>
    %cst_70 = arith.constant 0.000000e+00 : f32
    %141 = vector.broadcast %cst_70 : f32 to vector<16x1xf32>
    %142 = arith.maximumf %140, %141 : vector<16x1xf32>
    %143 = vector.broadcast %133 : vector<16x1xf32> to vector<16x128xf32>
    %144 = arith.subf %129, %143 : vector<16x128xf32>
    %cst_71 = arith.constant 9.99999974E-6 : f32
    %145 = vector.broadcast %cst_71 : f32 to vector<16x1xf32>
    %146 = arith.addf %142, %145 : vector<16x1xf32>
    %147 = math.rsqrt %146 : vector<16x1xf32>
    %148 = vector.broadcast %147 : vector<16x1xf32> to vector<16x128xf32>
    %149 = arith.mulf %144, %148 : vector<16x128xf32>
    %150 = vector.broadcast %30 : vector<1x128xf32> to vector<16x128xf32>
    %151 = arith.mulf %149, %150 : vector<16x128xf32>
    %152 = vector.broadcast %32 : vector<1x128xf32> to vector<16x128xf32>
    %153 = arith.addf %151, %152 : vector<16x128xf32>
    %154 = arith.truncf %153 : vector<16x128xf32> to vector<16x128xbf16>
    %c0_72 = arith.constant 0 : index
    %c0_73 = arith.constant 0 : index
    %c0_74 = arith.constant 0 : index
    %155 = vector.load %arg7[%c0_72, %c0_73, %c0_74] : memref<2x128x128xbf16, #tpu.memory_space<vmem>>, vector<1x128x128xbf16>
    %156 = vector.shape_cast %155 : vector<1x128x128xbf16> to vector<128x128xbf16>
    %cst_75 = arith.constant dense<0.000000e+00> : vector<16x128xf32>
    %157 = tpu.matmul %154, %156, %cst_75 {dimension_numbers = #tpu.dot_dimension_numbers<[1], [0], [0], [1], [0, 0, 1, 1], [], []>} : vector<16x128xbf16>, vector<128x128xbf16>, vector<16x128xf32> -> vector<16x128xf32>
    %158 = vector.broadcast %36 : vector<1x128xf32> to vector<16x128xf32>
    %159 = arith.addf %157, %158 : vector<16x128xf32>
    %160 = arith.mulf %159, %159 : vector<16x128xf32>
    %161 = arith.mulf %159, %160 : vector<16x128xf32>
    %cst_76 = arith.constant 4.471500e-02 : f32
    %162 = vector.broadcast %cst_76 : f32 to vector<16x128xf32>
    %163 = arith.mulf %162, %161 : vector<16x128xf32>
    %164 = arith.addf %159, %163 : vector<16x128xf32>
    %cst_77 = arith.constant 0.797884583 : f32
    %165 = vector.broadcast %cst_77 : f32 to vector<16x128xf32>
    %166 = arith.mulf %165, %164 : vector<16x128xf32>
    %167 = math.tanh %166 : vector<16x128xf32>
    %cst_78 = arith.constant 1.000000e+00 : f32
    %168 = vector.broadcast %cst_78 : f32 to vector<16x128xf32>
    %169 = arith.addf %168, %167 : vector<16x128xf32>
    %cst_79 = arith.constant 5.000000e-01 : f32
    %170 = vector.broadcast %cst_79 : f32 to vector<16x128xf32>
    %171 = arith.mulf %170, %169 : vector<16x128xf32>
    %172 = arith.mulf %159, %171 : vector<16x128xf32>
    %173 = arith.truncf %172 : vector<16x128xf32> to vector<16x128xbf16>
    %c0_80 = arith.constant 0 : index
    %c0_81 = arith.constant 0 : index
    %c0_82 = arith.constant 0 : index
    %174 = vector.load %arg8[%c0_80, %c0_81, %c0_82] : memref<2x128x128xbf16, #tpu.memory_space<vmem>>, vector<1x128x128xbf16>
    %175 = vector.shape_cast %174 : vector<1x128x128xbf16> to vector<128x128xbf16>
    %cst_83 = arith.constant dense<0.000000e+00> : vector<16x128xf32>
    %176 = tpu.matmul %173, %175, %cst_83 {dimension_numbers = #tpu.dot_dimension_numbers<[1], [0], [0], [1], [0, 0, 1, 1], [], []>} : vector<16x128xbf16>, vector<128x128xbf16>, vector<16x128xf32> -> vector<16x128xf32>
    %177 = vector.broadcast %38 : vector<1x128xf32> to vector<16x128xf32>
    %178 = arith.addf %176, %177 : vector<16x128xf32>
    %179 = arith.addf %178, %129 : vector<16x128xf32>
    %cst_84 = arith.constant dense<0.000000e+00> : vector<16xf32>
    %180 = vector.multi_reduction <add>, %179, %cst_84 [1] : vector<16x128xf32> to vector<16xf32>
    %181 = vector.shape_cast %180 : vector<16xf32> to vector<16x1xf32>
    %cst_85 = arith.constant 1.280000e+02 : f32
    %182 = vector.broadcast %cst_85 : f32 to vector<16x1xf32>
    %183 = arith.divf %181, %182 : vector<16x1xf32>
    %184 = arith.mulf %179, %179 : vector<16x128xf32>
    %cst_86 = arith.constant dense<0.000000e+00> : vector<16xf32>
    %185 = vector.multi_reduction <add>, %184, %cst_86 [1] : vector<16x128xf32> to vector<16xf32>
    %186 = vector.shape_cast %185 : vector<16xf32> to vector<16x1xf32>
    %cst_87 = arith.constant 1.280000e+02 : f32
    %187 = vector.broadcast %cst_87 : f32 to vector<16x1xf32>
    %188 = arith.divf %186, %187 : vector<16x1xf32>
    %189 = arith.mulf %183, %183 : vector<16x1xf32>
    %190 = arith.subf %188, %189 : vector<16x1xf32>
    %cst_88 = arith.constant 0.000000e+00 : f32
    %191 = vector.broadcast %cst_88 : f32 to vector<16x1xf32>
    %192 = arith.maximumf %190, %191 : vector<16x1xf32>
    %193 = vector.broadcast %183 : vector<16x1xf32> to vector<16x128xf32>
    %194 = arith.subf %179, %193 : vector<16x128xf32>
    %cst_89 = arith.constant 9.99999974E-6 : f32
    %195 = vector.broadcast %cst_89 : f32 to vector<16x1xf32>
    %196 = arith.addf %192, %195 : vector<16x1xf32>
    %197 = math.rsqrt %196 : vector<16x1xf32>
    %198 = vector.broadcast %197 : vector<16x1xf32> to vector<16x128xf32>
    %199 = arith.mulf %194, %198 : vector<16x128xf32>
    %200 = vector.broadcast %5 : vector<1x128xf32> to vector<16x128xf32>
    %201 = arith.mulf %199, %200 : vector<16x128xf32>
    %202 = vector.broadcast %6 : vector<1x128xf32> to vector<16x128xf32>
    %203 = arith.addf %201, %202 : vector<16x128xf32>
    %204 = arith.truncf %203 : vector<16x128xf32> to vector<16x128xbf16>
    %c0_90 = arith.constant 0 : index
    %c0_91 = arith.constant 0 : index
    %205 = vector.load %arg9[%c0_90, %c0_91] : memref<128x128xbf16, #tpu.memory_space<vmem>>, vector<128x128xbf16>
    %cst_92 = arith.constant dense<0.000000e+00> : vector<16x128xf32>
    %206 = tpu.matmul %204, %205, %cst_92 {dimension_numbers = #tpu.dot_dimension_numbers<[1], [0], [0], [1], [0, 0, 1, 1], [], []>} : vector<16x128xbf16>, vector<128x128xbf16>, vector<16x128xf32> -> vector<16x128xf32>
    %207 = vector.broadcast %7 : vector<1x128xf32> to vector<16x128xf32>
    %208 = arith.addf %206, %207 : vector<16x128xf32>
    %209 = arith.mulf %208, %208 : vector<16x128xf32>
    %210 = arith.mulf %208, %209 : vector<16x128xf32>
    %cst_93 = arith.constant 4.471500e-02 : f32
    %211 = vector.broadcast %cst_93 : f32 to vector<16x128xf32>
    %212 = arith.mulf %211, %210 : vector<16x128xf32>
    %213 = arith.addf %208, %212 : vector<16x128xf32>
    %cst_94 = arith.constant 0.797884583 : f32
    %214 = vector.broadcast %cst_94 : f32 to vector<16x128xf32>
    %215 = arith.mulf %214, %213 : vector<16x128xf32>
    %216 = math.tanh %215 : vector<16x128xf32>
    %cst_95 = arith.constant 1.000000e+00 : f32
    %217 = vector.broadcast %cst_95 : f32 to vector<16x128xf32>
    %218 = arith.addf %217, %216 : vector<16x128xf32>
    %cst_96 = arith.constant 5.000000e-01 : f32
    %219 = vector.broadcast %cst_96 : f32 to vector<16x128xf32>
    %220 = arith.mulf %219, %218 : vector<16x128xf32>
    %221 = arith.mulf %208, %220 : vector<16x128xf32>
    %222 = arith.truncf %221 : vector<16x128xf32> to vector<16x128xbf16>
    %c0_97 = arith.constant 0 : index
    %c0_98 = arith.constant 0 : index
    %223 = vector.load %arg11[%c0_97, %c0_98] : memref<128x256xbf16, #tpu.memory_space<vmem>>, vector<128x256xbf16>
    %cst_99 = arith.constant dense<0.000000e+00> : vector<16x256xf32>
    %224 = tpu.matmul %222, %223, %cst_99 {dimension_numbers = #tpu.dot_dimension_numbers<[1], [0], [0], [1], [0, 0, 1, 1], [], []>} : vector<16x128xbf16>, vector<128x256xbf16>, vector<16x256xf32> -> vector<16x256xf32>
    %225 = arith.addf %24, %224 : vector<16x256xf32>
    %226 = vector.broadcast %8 : vector<1x256xf32> to vector<16x256xf32>
    %227 = arith.addf %225, %226 : vector<16x256xf32>
    %c1_100 = arith.constant 1 : index
    %c0_101 = arith.constant 0 : index
    %c0_102 = arith.constant 0 : index
    %228 = vector.load %arg12[%c1_100, %c0_101, %c0_102] : memref<2x8x128xf32, #tpu.memory_space<vmem>>, vector<1x1x128xf32>
    %229 = vector.shape_cast %228 : vector<1x1x128xf32> to vector<1x128xf32>
    %c1_103 = arith.constant 1 : index
    %c1_104 = arith.constant 1 : index
    %c0_105 = arith.constant 0 : index
    %230 = vector.load %arg12[%c1_103, %c1_104, %c0_105] : memref<2x8x128xf32, #tpu.memory_space<vmem>>, vector<1x1x128xf32>
    %231 = vector.shape_cast %230 : vector<1x1x128xf32> to vector<1x128xf32>
    %c1_106 = arith.constant 1 : index
    %c2_107 = arith.constant 2 : index
    %c0_108 = arith.constant 0 : index
    %232 = vector.load %arg12[%c1_106, %c2_107, %c0_108] : memref<2x8x128xf32, #tpu.memory_space<vmem>>, vector<1x1x128xf32>
    %233 = vector.shape_cast %232 : vector<1x1x128xf32> to vector<1x128xf32>
    %c1_109 = arith.constant 1 : index
    %c3_110 = arith.constant 3 : index
    %c0_111 = arith.constant 0 : index
    %234 = vector.load %arg12[%c1_109, %c3_110, %c0_111] : memref<2x8x128xf32, #tpu.memory_space<vmem>>, vector<1x1x128xf32>
    %235 = vector.shape_cast %234 : vector<1x1x128xf32> to vector<1x128xf32>
    %c1_112 = arith.constant 1 : index
    %c4_113 = arith.constant 4 : index
    %c0_114 = arith.constant 0 : index
    %236 = vector.load %arg12[%c1_112, %c4_113, %c0_114] : memref<2x8x128xf32, #tpu.memory_space<vmem>>, vector<1x1x128xf32>
    %237 = vector.shape_cast %236 : vector<1x1x128xf32> to vector<1x128xf32>
    %c1_115 = arith.constant 1 : index
    %c5_116 = arith.constant 5 : index
    %c0_117 = arith.constant 0 : index
    %238 = vector.load %arg12[%c1_115, %c5_116, %c0_117] : memref<2x8x128xf32, #tpu.memory_space<vmem>>, vector<1x1x128xf32>
    %239 = vector.shape_cast %238 : vector<1x1x128xf32> to vector<1x128xf32>
    %c1_118 = arith.constant 1 : index
    %c6_119 = arith.constant 6 : index
    %c0_120 = arith.constant 0 : index
    %240 = vector.load %arg12[%c1_118, %c6_119, %c0_120] : memref<2x8x128xf32, #tpu.memory_space<vmem>>, vector<1x1x128xf32>
    %241 = vector.shape_cast %240 : vector<1x1x128xf32> to vector<1x128xf32>
    %cst_121 = arith.constant dense<0.000000e+00> : vector<16xf32>
    %242 = vector.multi_reduction <add>, %179, %cst_121 [1] : vector<16x128xf32> to vector<16xf32>
    %243 = vector.shape_cast %242 : vector<16xf32> to vector<16x1xf32>
    %cst_122 = arith.constant 1.280000e+02 : f32
    %244 = vector.broadcast %cst_122 : f32 to vector<16x1xf32>
    %245 = arith.divf %243, %244 : vector<16x1xf32>
    %246 = arith.mulf %179, %179 : vector<16x128xf32>
    %cst_123 = arith.constant dense<0.000000e+00> : vector<16xf32>
    %247 = vector.multi_reduction <add>, %246, %cst_123 [1] : vector<16x128xf32> to vector<16xf32>
    %248 = vector.shape_cast %247 : vector<16xf32> to vector<16x1xf32>
    %cst_124 = arith.constant 1.280000e+02 : f32
    %249 = vector.broadcast %cst_124 : f32 to vector<16x1xf32>
    %250 = arith.divf %248, %249 : vector<16x1xf32>
    %251 = arith.mulf %245, %245 : vector<16x1xf32>
    %252 = arith.subf %250, %251 : vector<16x1xf32>
    %cst_125 = arith.constant 0.000000e+00 : f32
    %253 = vector.broadcast %cst_125 : f32 to vector<16x1xf32>
    %254 = arith.maximumf %252, %253 : vector<16x1xf32>
    %255 = vector.broadcast %245 : vector<16x1xf32> to vector<16x128xf32>
    %256 = arith.subf %179, %255 : vector<16x128xf32>
    %cst_126 = arith.constant 9.99999974E-6 : f32
    %257 = vector.broadcast %cst_126 : f32 to vector<16x1xf32>
    %258 = arith.addf %254, %257 : vector<16x1xf32>
    %259 = math.rsqrt %258 : vector<16x1xf32>
    %260 = vector.broadcast %259 : vector<16x1xf32> to vector<16x128xf32>
    %261 = arith.mulf %256, %260 : vector<16x128xf32>
    %262 = vector.broadcast %229 : vector<1x128xf32> to vector<16x128xf32>
    %263 = arith.mulf %261, %262 : vector<16x128xf32>
    %264 = vector.broadcast %231 : vector<1x128xf32> to vector<16x128xf32>
    %265 = arith.addf %263, %264 : vector<16x128xf32>
    %266 = arith.truncf %265 : vector<16x128xf32> to vector<16x128xbf16>
    %c1_127 = arith.constant 1 : index
    %c0_128 = arith.constant 0 : index
    %c0_129 = arith.constant 0 : index
    %267 = vector.load %arg5[%c1_127, %c0_128, %c0_129] : memref<2x128x384xbf16, #tpu.memory_space<vmem>>, vector<1x128x384xbf16>
    %268 = vector.shape_cast %267 : vector<1x128x384xbf16> to vector<128x384xbf16>
    %cst_130 = arith.constant dense<0.000000e+00> : vector<16x384xf32>
    %269 = tpu.matmul %266, %268, %cst_130 {dimension_numbers = #tpu.dot_dimension_numbers<[1], [0], [0], [1], [0, 0, 1, 1], [], []>} : vector<16x128xbf16>, vector<128x384xbf16>, vector<16x384xf32> -> vector<16x384xf32>
    %270 = arith.truncf %269 : vector<16x384xf32> to vector<16x384xbf16>
    %c1_131 = arith.constant 1 : index
    %c0_132 = arith.constant 0 : index
    %c0_133 = arith.constant 0 : index
    %271 = vector.load %arg6[%c1_131, %c0_132, %c0_133] : memref<2x128x128xbf16, #tpu.memory_space<vmem>>, vector<1x128x128xbf16>
    %272 = vector.shape_cast %271 : vector<1x128x128xbf16> to vector<128x128xbf16>
    %273 = vector.extract_strided_slice %270 {offsets = [0, 0], sizes = [16, 32], strides = [1, 1]} : vector<16x384xbf16> to vector<16x32xbf16>
    %274 = vector.extract_strided_slice %270 {offsets = [0, 128], sizes = [16, 32], strides = [1, 1]} : vector<16x384xbf16> to vector<16x32xbf16>
    %cst_134 = arith.constant dense<0.000000e+00> : vector<16x16xf32>
    %275 = tpu.matmul %273, %274, %cst_134 {dimension_numbers = #tpu.dot_dimension_numbers<[1], [1], [0], [0], [0, 0, 1, 0], [], []>} : vector<16x32xbf16>, vector<16x32xbf16>, vector<16x16xf32> -> vector<16x16xf32>
    %276 = arith.addf %275, %2 : vector<16x16xf32>
    %277 = vector.extract_strided_slice %270 {offsets = [0, 32], sizes = [16, 32], strides = [1, 1]} : vector<16x384xbf16> to vector<16x32xbf16>
    %278 = vector.extract_strided_slice %270 {offsets = [0, 160], sizes = [16, 32], strides = [1, 1]} : vector<16x384xbf16> to vector<16x32xbf16>
    %cst_135 = arith.constant dense<0.000000e+00> : vector<16x16xf32>
    %279 = tpu.matmul %277, %278, %cst_135 {dimension_numbers = #tpu.dot_dimension_numbers<[1], [1], [0], [0], [0, 0, 1, 0], [], []>} : vector<16x32xbf16>, vector<16x32xbf16>, vector<16x16xf32> -> vector<16x16xf32>
    %280 = arith.addf %279, %2 : vector<16x16xf32>
    %281 = vector.extract_strided_slice %270 {offsets = [0, 64], sizes = [16, 32], strides = [1, 1]} : vector<16x384xbf16> to vector<16x32xbf16>
    %282 = vector.extract_strided_slice %270 {offsets = [0, 192], sizes = [16, 32], strides = [1, 1]} : vector<16x384xbf16> to vector<16x32xbf16>
    %cst_136 = arith.constant dense<0.000000e+00> : vector<16x16xf32>
    %283 = tpu.matmul %281, %282, %cst_136 {dimension_numbers = #tpu.dot_dimension_numbers<[1], [1], [0], [0], [0, 0, 1, 0], [], []>} : vector<16x32xbf16>, vector<16x32xbf16>, vector<16x16xf32> -> vector<16x16xf32>
    %284 = arith.addf %283, %2 : vector<16x16xf32>
    %285 = vector.extract_strided_slice %270 {offsets = [0, 96], sizes = [16, 32], strides = [1, 1]} : vector<16x384xbf16> to vector<16x32xbf16>
    %286 = vector.extract_strided_slice %270 {offsets = [0, 224], sizes = [16, 32], strides = [1, 1]} : vector<16x384xbf16> to vector<16x32xbf16>
    %cst_137 = arith.constant dense<0.000000e+00> : vector<16x16xf32>
    %287 = tpu.matmul %285, %286, %cst_137 {dimension_numbers = #tpu.dot_dimension_numbers<[1], [1], [0], [0], [0, 0, 1, 0], [], []>} : vector<16x32xbf16>, vector<16x32xbf16>, vector<16x16xf32> -> vector<16x16xf32>
    %288 = arith.addf %287, %2 : vector<16x16xf32>
    %289 = tpu.concatenate %276, %280, %284, %288 in 0 : vector<16x16xf32>, vector<16x16xf32>, vector<16x16xf32>, vector<16x16xf32> -> vector<64x16xf32>
    %cst_138 = arith.constant dense<0xFF800000> : vector<64xf32>
    %290 = vector.multi_reduction <maximumf>, %289, %cst_138 [1] : vector<64x16xf32> to vector<64xf32>
    %291 = vector.shape_cast %290 : vector<64xf32> to vector<64x1xf32>
    %292 = vector.broadcast %291 : vector<64x1xf32> to vector<64x16xf32>
    %293 = arith.subf %289, %292 : vector<64x16xf32>
    %294 = math.exp %293 : vector<64x16xf32>
    %cst_139 = arith.constant dense<0.000000e+00> : vector<64xf32>
    %295 = vector.multi_reduction <add>, %294, %cst_139 [1] : vector<64x16xf32> to vector<64xf32>
    %296 = vector.shape_cast %295 : vector<64xf32> to vector<64x1xf32>
    %297 = tpu.reciprocal %296 {approx = true} : vector<64x1xf32> -> vector<64x1xf32>
    %298 = vector.broadcast %297 : vector<64x1xf32> to vector<64x16xf32>
    %299 = arith.mulf %294, %298 : vector<64x16xf32>
    %300 = arith.truncf %299 : vector<64x16xf32> to vector<64x16xbf16>
    %cst_140 = arith.constant 0.000000e+00 : f32
    %301 = vector.broadcast %cst_140 : f32 to vector<16x128xf32>
    %302 = vector.extract_strided_slice %270 {offsets = [0, 256], sizes = [16, 32], strides = [1, 1]} : vector<16x384xbf16> to vector<16x32xbf16>
    %303 = vector.extract_strided_slice %300 {offsets = [0, 0], sizes = [16, 16], strides = [1, 1]} : vector<64x16xbf16> to vector<16x16xbf16>
    %cst_141 = arith.constant dense<0.000000e+00> : vector<16x32xf32>
    %304 = tpu.matmul %303, %302, %cst_141 {dimension_numbers = #tpu.dot_dimension_numbers<[1], [0], [0], [1], [0, 0, 1, 1], [], []>} : vector<16x16xbf16>, vector<16x32xbf16>, vector<16x32xf32> -> vector<16x32xf32>
    %305 = arith.truncf %304 : vector<16x32xf32> to vector<16x32xbf16>
    %306 = vector.extract_strided_slice %272 {offsets = [0, 0], sizes = [32, 128], strides = [1, 1]} : vector<128x128xbf16> to vector<32x128xbf16>
    %cst_142 = arith.constant dense<0.000000e+00> : vector<16x128xf32>
    %307 = tpu.matmul %305, %306, %cst_142 {dimension_numbers = #tpu.dot_dimension_numbers<[1], [0], [0], [1], [0, 0, 1, 1], [], []>} : vector<16x32xbf16>, vector<32x128xbf16>, vector<16x128xf32> -> vector<16x128xf32>
    %308 = arith.addf %301, %307 : vector<16x128xf32>
    %309 = vector.extract_strided_slice %270 {offsets = [0, 288], sizes = [16, 32], strides = [1, 1]} : vector<16x384xbf16> to vector<16x32xbf16>
    %310 = vector.extract_strided_slice %300 {offsets = [16, 0], sizes = [16, 16], strides = [1, 1]} : vector<64x16xbf16> to vector<16x16xbf16>
    %cst_143 = arith.constant dense<0.000000e+00> : vector<16x32xf32>
    %311 = tpu.matmul %310, %309, %cst_143 {dimension_numbers = #tpu.dot_dimension_numbers<[1], [0], [0], [1], [0, 0, 1, 1], [], []>} : vector<16x16xbf16>, vector<16x32xbf16>, vector<16x32xf32> -> vector<16x32xf32>
    %312 = arith.truncf %311 : vector<16x32xf32> to vector<16x32xbf16>
    %313 = vector.extract_strided_slice %272 {offsets = [32, 0], sizes = [32, 128], strides = [1, 1]} : vector<128x128xbf16> to vector<32x128xbf16>
    %cst_144 = arith.constant dense<0.000000e+00> : vector<16x128xf32>
    %314 = tpu.matmul %312, %313, %cst_144 {dimension_numbers = #tpu.dot_dimension_numbers<[1], [0], [0], [1], [0, 0, 1, 1], [], []>} : vector<16x32xbf16>, vector<32x128xbf16>, vector<16x128xf32> -> vector<16x128xf32>
    %315 = arith.addf %308, %314 : vector<16x128xf32>
    %316 = vector.extract_strided_slice %270 {offsets = [0, 320], sizes = [16, 32], strides = [1, 1]} : vector<16x384xbf16> to vector<16x32xbf16>
    %317 = vector.extract_strided_slice %300 {offsets = [32, 0], sizes = [16, 16], strides = [1, 1]} : vector<64x16xbf16> to vector<16x16xbf16>
    %cst_145 = arith.constant dense<0.000000e+00> : vector<16x32xf32>
    %318 = tpu.matmul %317, %316, %cst_145 {dimension_numbers = #tpu.dot_dimension_numbers<[1], [0], [0], [1], [0, 0, 1, 1], [], []>} : vector<16x16xbf16>, vector<16x32xbf16>, vector<16x32xf32> -> vector<16x32xf32>
    %319 = arith.truncf %318 : vector<16x32xf32> to vector<16x32xbf16>
    %320 = vector.extract_strided_slice %272 {offsets = [64, 0], sizes = [32, 128], strides = [1, 1]} : vector<128x128xbf16> to vector<32x128xbf16>
    %cst_146 = arith.constant dense<0.000000e+00> : vector<16x128xf32>
    %321 = tpu.matmul %319, %320, %cst_146 {dimension_numbers = #tpu.dot_dimension_numbers<[1], [0], [0], [1], [0, 0, 1, 1], [], []>} : vector<16x32xbf16>, vector<32x128xbf16>, vector<16x128xf32> -> vector<16x128xf32>
    %322 = arith.addf %315, %321 : vector<16x128xf32>
    %323 = vector.extract_strided_slice %270 {offsets = [0, 352], sizes = [16, 32], strides = [1, 1]} : vector<16x384xbf16> to vector<16x32xbf16>
    %324 = vector.extract_strided_slice %300 {offsets = [48, 0], sizes = [16, 16], strides = [1, 1]} : vector<64x16xbf16> to vector<16x16xbf16>
    %cst_147 = arith.constant dense<0.000000e+00> : vector<16x32xf32>
    %325 = tpu.matmul %324, %323, %cst_147 {dimension_numbers = #tpu.dot_dimension_numbers<[1], [0], [0], [1], [0, 0, 1, 1], [], []>} : vector<16x16xbf16>, vector<16x32xbf16>, vector<16x32xf32> -> vector<16x32xf32>
    %326 = arith.truncf %325 : vector<16x32xf32> to vector<16x32xbf16>
    %327 = vector.extract_strided_slice %272 {offsets = [96, 0], sizes = [32, 128], strides = [1, 1]} : vector<128x128xbf16> to vector<32x128xbf16>
    %cst_148 = arith.constant dense<0.000000e+00> : vector<16x128xf32>
    %328 = tpu.matmul %326, %327, %cst_148 {dimension_numbers = #tpu.dot_dimension_numbers<[1], [0], [0], [1], [0, 0, 1, 1], [], []>} : vector<16x32xbf16>, vector<32x128xbf16>, vector<16x128xf32> -> vector<16x128xf32>
    %329 = arith.addf %322, %328 : vector<16x128xf32>
    %330 = vector.broadcast %237 : vector<1x128xf32> to vector<16x128xf32>
    %331 = arith.addf %329, %330 : vector<16x128xf32>
    %332 = arith.addf %331, %179 : vector<16x128xf32>
    %cst_149 = arith.constant dense<0.000000e+00> : vector<16xf32>
    %333 = vector.multi_reduction <add>, %332, %cst_149 [1] : vector<16x128xf32> to vector<16xf32>
    %334 = vector.shape_cast %333 : vector<16xf32> to vector<16x1xf32>
    %cst_150 = arith.constant 1.280000e+02 : f32
    %335 = vector.broadcast %cst_150 : f32 to vector<16x1xf32>
    %336 = arith.divf %334, %335 : vector<16x1xf32>
    %337 = arith.mulf %332, %332 : vector<16x128xf32>
    %cst_151 = arith.constant dense<0.000000e+00> : vector<16xf32>
    %338 = vector.multi_reduction <add>, %337, %cst_151 [1] : vector<16x128xf32> to vector<16xf32>
    %339 = vector.shape_cast %338 : vector<16xf32> to vector<16x1xf32>
    %cst_152 = arith.constant 1.280000e+02 : f32
    %340 = vector.broadcast %cst_152 : f32 to vector<16x1xf32>
    %341 = arith.divf %339, %340 : vector<16x1xf32>
    %342 = arith.mulf %336, %336 : vector<16x1xf32>
    %343 = arith.subf %341, %342 : vector<16x1xf32>
    %cst_153 = arith.constant 0.000000e+00 : f32
    %344 = vector.broadcast %cst_153 : f32 to vector<16x1xf32>
    %345 = arith.maximumf %343, %344 : vector<16x1xf32>
    %346 = vector.broadcast %336 : vector<16x1xf32> to vector<16x128xf32>
    %347 = arith.subf %332, %346 : vector<16x128xf32>
    %cst_154 = arith.constant 9.99999974E-6 : f32
    %348 = vector.broadcast %cst_154 : f32 to vector<16x1xf32>
    %349 = arith.addf %345, %348 : vector<16x1xf32>
    %350 = math.rsqrt %349 : vector<16x1xf32>
    %351 = vector.broadcast %350 : vector<16x1xf32> to vector<16x128xf32>
    %352 = arith.mulf %347, %351 : vector<16x128xf32>
    %353 = vector.broadcast %233 : vector<1x128xf32> to vector<16x128xf32>
    %354 = arith.mulf %352, %353 : vector<16x128xf32>
    %355 = vector.broadcast %235 : vector<1x128xf32> to vector<16x128xf32>
    %356 = arith.addf %354, %355 : vector<16x128xf32>
    %357 = arith.truncf %356 : vector<16x128xf32> to vector<16x128xbf16>
    %c1_155 = arith.constant 1 : index
    %c0_156 = arith.constant 0 : index
    %c0_157 = arith.constant 0 : index
    %358 = vector.load %arg7[%c1_155, %c0_156, %c0_157] : memref<2x128x128xbf16, #tpu.memory_space<vmem>>, vector<1x128x128xbf16>
    %359 = vector.shape_cast %358 : vector<1x128x128xbf16> to vector<128x128xbf16>
    %cst_158 = arith.constant dense<0.000000e+00> : vector<16x128xf32>
    %360 = tpu.matmul %357, %359, %cst_158 {dimension_numbers = #tpu.dot_dimension_numbers<[1], [0], [0], [1], [0, 0, 1, 1], [], []>} : vector<16x128xbf16>, vector<128x128xbf16>, vector<16x128xf32> -> vector<16x128xf32>
    %361 = vector.broadcast %239 : vector<1x128xf32> to vector<16x128xf32>
    %362 = arith.addf %360, %361 : vector<16x128xf32>
    %363 = arith.mulf %362, %362 : vector<16x128xf32>
    %364 = arith.mulf %362, %363 : vector<16x128xf32>
    %cst_159 = arith.constant 4.471500e-02 : f32
    %365 = vector.broadcast %cst_159 : f32 to vector<16x128xf32>
    %366 = arith.mulf %365, %364 : vector<16x128xf32>
    %367 = arith.addf %362, %366 : vector<16x128xf32>
    %cst_160 = arith.constant 0.797884583 : f32
    %368 = vector.broadcast %cst_160 : f32 to vector<16x128xf32>
    %369 = arith.mulf %368, %367 : vector<16x128xf32>
    %370 = math.tanh %369 : vector<16x128xf32>
    %cst_161 = arith.constant 1.000000e+00 : f32
    %371 = vector.broadcast %cst_161 : f32 to vector<16x128xf32>
    %372 = arith.addf %371, %370 : vector<16x128xf32>
    %cst_162 = arith.constant 5.000000e-01 : f32
    %373 = vector.broadcast %cst_162 : f32 to vector<16x128xf32>
    %374 = arith.mulf %373, %372 : vector<16x128xf32>
    %375 = arith.mulf %362, %374 : vector<16x128xf32>
    %376 = arith.truncf %375 : vector<16x128xf32> to vector<16x128xbf16>
    %c1_163 = arith.constant 1 : index
    %c0_164 = arith.constant 0 : index
    %c0_165 = arith.constant 0 : index
    %377 = vector.load %arg8[%c1_163, %c0_164, %c0_165] : memref<2x128x128xbf16, #tpu.memory_space<vmem>>, vector<1x128x128xbf16>
    %378 = vector.shape_cast %377 : vector<1x128x128xbf16> to vector<128x128xbf16>
    %cst_166 = arith.constant dense<0.000000e+00> : vector<16x128xf32>
    %379 = tpu.matmul %376, %378, %cst_166 {dimension_numbers = #tpu.dot_dimension_numbers<[1], [0], [0], [1], [0, 0, 1, 1], [], []>} : vector<16x128xbf16>, vector<128x128xbf16>, vector<16x128xf32> -> vector<16x128xf32>
    %380 = vector.broadcast %241 : vector<1x128xf32> to vector<16x128xf32>
    %381 = arith.addf %379, %380 : vector<16x128xf32>
    %382 = arith.addf %381, %332 : vector<16x128xf32>
    %cst_167 = arith.constant dense<0.000000e+00> : vector<16xf32>
    %383 = vector.multi_reduction <add>, %382, %cst_167 [1] : vector<16x128xf32> to vector<16xf32>
    %384 = vector.shape_cast %383 : vector<16xf32> to vector<16x1xf32>
    %cst_168 = arith.constant 1.280000e+02 : f32
    %385 = vector.broadcast %cst_168 : f32 to vector<16x1xf32>
    %386 = arith.divf %384, %385 : vector<16x1xf32>
    %387 = arith.mulf %382, %382 : vector<16x128xf32>
    %cst_169 = arith.constant dense<0.000000e+00> : vector<16xf32>
    %388 = vector.multi_reduction <add>, %387, %cst_169 [1] : vector<16x128xf32> to vector<16xf32>
    %389 = vector.shape_cast %388 : vector<16xf32> to vector<16x1xf32>
    %cst_170 = arith.constant 1.280000e+02 : f32
    %390 = vector.broadcast %cst_170 : f32 to vector<16x1xf32>
    %391 = arith.divf %389, %390 : vector<16x1xf32>
    %392 = arith.mulf %386, %386 : vector<16x1xf32>
    %393 = arith.subf %391, %392 : vector<16x1xf32>
    %cst_171 = arith.constant 0.000000e+00 : f32
    %394 = vector.broadcast %cst_171 : f32 to vector<16x1xf32>
    %395 = arith.maximumf %393, %394 : vector<16x1xf32>
    %396 = vector.broadcast %386 : vector<16x1xf32> to vector<16x128xf32>
    %397 = arith.subf %382, %396 : vector<16x128xf32>
    %cst_172 = arith.constant 9.99999974E-6 : f32
    %398 = vector.broadcast %cst_172 : f32 to vector<16x1xf32>
    %399 = arith.addf %395, %398 : vector<16x1xf32>
    %400 = math.rsqrt %399 : vector<16x1xf32>
    %401 = vector.broadcast %400 : vector<16x1xf32> to vector<16x128xf32>
    %402 = arith.mulf %397, %401 : vector<16x128xf32>
    %403 = vector.broadcast %5 : vector<1x128xf32> to vector<16x128xf32>
    %404 = arith.mulf %402, %403 : vector<16x128xf32>
    %405 = vector.broadcast %6 : vector<1x128xf32> to vector<16x128xf32>
    %406 = arith.addf %404, %405 : vector<16x128xf32>
    %407 = arith.truncf %406 : vector<16x128xf32> to vector<16x128xbf16>
    %c0_173 = arith.constant 0 : index
    %c0_174 = arith.constant 0 : index
    %408 = vector.load %arg9[%c0_173, %c0_174] : memref<128x128xbf16, #tpu.memory_space<vmem>>, vector<128x128xbf16>
    %cst_175 = arith.constant dense<0.000000e+00> : vector<16x128xf32>
    %409 = tpu.matmul %407, %408, %cst_175 {dimension_numbers = #tpu.dot_dimension_numbers<[1], [0], [0], [1], [0, 0, 1, 1], [], []>} : vector<16x128xbf16>, vector<128x128xbf16>, vector<16x128xf32> -> vector<16x128xf32>
    %410 = vector.broadcast %7 : vector<1x128xf32> to vector<16x128xf32>
    %411 = arith.addf %409, %410 : vector<16x128xf32>
    %412 = arith.truncf %227 : vector<16x256xf32> to vector<16x256xbf16>
    %c0_176 = arith.constant 0 : index
    %c0_177 = arith.constant 0 : index
    %413 = vector.load %arg10[%c0_176, %c0_177] : memref<256x128xbf16, #tpu.memory_space<vmem>>, vector<256x128xbf16>
    %cst_178 = arith.constant dense<0.000000e+00> : vector<16x128xf32>
    %414 = tpu.matmul %412, %413, %cst_178 {dimension_numbers = #tpu.dot_dimension_numbers<[1], [0], [0], [1], [0, 0, 1, 1], [], []>} : vector<16x256xbf16>, vector<256x128xbf16>, vector<16x128xf32> -> vector<16x128xf32>
    %415 = arith.addf %411, %414 : vector<16x128xf32>
    %416 = arith.mulf %415, %415 : vector<16x128xf32>
    %417 = arith.mulf %415, %416 : vector<16x128xf32>
    %cst_179 = arith.constant 4.471500e-02 : f32
    %418 = vector.broadcast %cst_179 : f32 to vector<16x128xf32>
    %419 = arith.mulf %418, %417 : vector<16x128xf32>
    %420 = arith.addf %415, %419 : vector<16x128xf32>
    %cst_180 = arith.constant 0.797884583 : f32
    %421 = vector.broadcast %cst_180 : f32 to vector<16x128xf32>
    %422 = arith.mulf %421, %420 : vector<16x128xf32>
    %423 = math.tanh %422 : vector<16x128xf32>
    %cst_181 = arith.constant 1.000000e+00 : f32
    %424 = vector.broadcast %cst_181 : f32 to vector<16x128xf32>
    %425 = arith.addf %424, %423 : vector<16x128xf32>
    %cst_182 = arith.constant 5.000000e-01 : f32
    %426 = vector.broadcast %cst_182 : f32 to vector<16x128xf32>
    %427 = arith.mulf %426, %425 : vector<16x128xf32>
    %428 = arith.mulf %415, %427 : vector<16x128xf32>
    %429 = arith.truncf %428 : vector<16x128xf32> to vector<16x128xbf16>
    %c0_183 = arith.constant 0 : index
    %c0_184 = arith.constant 0 : index
    %430 = vector.load %arg11[%c0_183, %c0_184] : memref<128x256xbf16, #tpu.memory_space<vmem>>, vector<128x256xbf16>
    %cst_185 = arith.constant dense<0.000000e+00> : vector<16x256xf32>
    %431 = tpu.matmul %429, %430, %cst_185 {dimension_numbers = #tpu.dot_dimension_numbers<[1], [0], [0], [1], [0, 0, 1, 1], [], []>} : vector<16x128xbf16>, vector<128x256xbf16>, vector<16x256xf32> -> vector<16x256xf32>
    %432 = arith.addf %227, %431 : vector<16x256xf32>
    %433 = vector.broadcast %8 : vector<1x256xf32> to vector<16x256xf32>
    %434 = arith.addf %432, %433 : vector<16x256xf32>
    %c0_186 = arith.constant 0 : index
    %c0_187 = arith.constant 0 : index
    %435 = vector.load %arg14[%c0_186, %c0_187] : memref<16x256xf32, #tpu.memory_space<vmem>>, vector<16x256xf32>
    tpu.vector_store %arg14[%c0_186, %c0_187], %434 {strides = array<i32>} : memref<16x256xf32, #tpu.memory_space<vmem>>, vector<16x256xf32>,
    return
  }
}

</mosaic_0001>

<bundles_post_ra>
// kernel: temporal_pose_forward.1
= control target key start
LH: loop header
LB: loop body
LE: loop exit
PB: predicated region body
PF: predicated region fallthrough
CT: control target
= control target key end

     0   :  { %19 = vsyncpa [#allocation3], 0  ;;  %s5509_s0 = inlined_call_operand.vmem [shape: f32[16,128], index: 0, kind: input, shape index: {}]   ;;  %s5510_s1 = inlined_call_operand.vmem [shape: f32[16,1], index: 1, kind: input, shape index: {}]   ;;  %s5511_s2 = inlined_call_operand.vmem [shape: f32[16,16], index: 2, kind: input, shape index: {}]   ;;  %s5512_s3 = inlined_call_operand.hbm [shape: f32[16,128], index: 3, kind: input, shape index: {}]   ;;  %s5513_s4 = inlined_call_operand.hbm [shape: bf16[128,128], index: 4, kind: input, shape index: {}]   ;;  %s5514_s5 = inlined_call_operand.hbm [shape: bf16[2,128,384], index: 5, kind: input, shape index: {}]   ;;  %s5515_s6 = inlined_call_operand.hbm [shape: bf16[2,128,128], index: 6, kind: input, shape index: {}]   ;;  %s5516_s7 = inlined_call_operand.hbm [shape: bf16[2,128,128], index: 7, kind: input, shape index: {}]   ;;  %s5517_s8 = inlined_call_operand.hbm [shape: bf16[2,128,128], index: 8, kind: input, shape index: {}]   ;;  %s5518_s9 = inlined_call_operand.vmem [shape: bf16[128,128], index: 9, kind: input, shape index: {}]   ;;  %s5519_s10 = inlined_call_operand.hbm [shape: bf16[256,128], index: 10, kind: input, shape index: {}]   ;;  %s5520_s11 = inlined_call_operand.hbm [shape: bf16[128,256], index: 11, kind: input, shape index: {}]   ;;  %s5521_s12 = inlined_call_operand.hbm [shape: f32[2,8,128], index: 12, kind: input, shape index: {}]   ;;  %s5522_s13 = inlined_call_operand.vmem [shape: f32[8,256], index: 13, kind: input, shape index: {}]   ;;  %s5523_s14 = inlined_call_operand.vmem [shape: f32[16,256], index: 14, kind: output, shape index: {}]  }
   0x1   :  { %20 = vsyncpa [#allocation5], 0 }
   0x2   :  { %21 = vsyncpa [#allocation8], 0 }
   0x3   :  { %22 = vsyncpa [#allocation11], 0 }
   0x4   :  { %23 = vsyncpa [#allocation14], 0  ;;  %s4768_s29 = smov [#allocation4]   ;;  %s4560_s17 = scalar_lea.hbm %s5513_s4, 1024 }
   0x5   :  { %s47_s30 = sshll.u32 %s4768_s29, 4  ;;  %p4561_p0 = scmp.ne.s32.totalorder %s5513_s4, %s4560_s17  ;;  %s48_s30 = int_to_ptr.vmem [resolvable:$true] %s47_s30 }
   0x6   :  { %p4564_p1 = scmp.lt.u32.totalorder %s4560_s17, %s5513_s4 }
   0x8   :  { %p4566_p2 = pnand %p4564_p1, %p4561_p0 }
   0xa   :  { %4569 = shalt.err (!%p4566_p2)
}
   0xb   :  { %s4570_s22 = scalar_lea.vmem %s48_s30, 1024  ;;  %p4575_p4 = scmp.lt.s32.totalorder %s48_s30, %s48_s30 }
   0xc   :  { %p4571_p3 = scmp.ne.s32.totalorder %s48_s30, %s4570_s22  ;;  %p4576_p5 = scmp.lt.s32.totalorder %s4570_s22, %s4570_s22 }
   0xe   :  { %p4577_p6 = por %p4576_p5, %p4575_p4 }
  0x10   :  { %p4578_p7 = pnand %p4577_p6, %p4571_p3 }
  0x12   :  { %4581 = shalt.err (!%p4578_p7)
}
  0x13   :  { %s4769_s23 = smov 64   ;;  %s4770_s24 = smov 4  }
  0x14   :  { %53 = dma.hbm_to_vmem [thread:$0]  %s5513_s4, 1024, %s48_s30, [#allocation5], %s4769_s23, %s4769_s23, %s4770_s24  }
  0x15   :  { %s4771_s27 = smov [#allocation7]   ;;  %s4772_s29 = smov [#allocation10]  }
  0x16   :  { %s71_s28 = sshll.u32 %s4771_s27, 4  ;;  %s95_s15 = sshll.u32 %s4772_s29, 4  ;;  %s72_s28 = int_to_ptr.vmem [resolvable:$true] %s71_s28  ;;  %s96_s15 = int_to_ptr.vmem [resolvable:$true] %s95_s15 }
  0x17   :  { %s4582_s18 = scalar_lea.hbm %s5515_s6, 2048 }
  0x18   :  { %p4583_p8 = scmp.ne.s32.totalorder %s5515_s6, %s4582_s18  ;;  %p4586_p9 = scmp.lt.u32.totalorder %s4582_s18, %s5515_s6 }
  0x1a   :  { %p4588_p10 = pnand %p4586_p9, %p4583_p8 }
  0x1c   :  { %4591 = shalt.err (!%p4588_p10)
}
  0x1d   :  { %s4592_s4 = scalar_lea.vmem %s72_s28, 2048  ;;  %p4597_p12 = scmp.lt.s32.totalorder %s72_s28, %s72_s28 }
  0x1e   :  { %p4593_p11 = scmp.ne.s32.totalorder %s72_s28, %s4592_s4  ;;  %p4598_p13 = scmp.lt.s32.totalorder %s4592_s4, %s4592_s4 }
  0x20   :  { %p4599_p0 = por %p4598_p13, %p4597_p12 }
  0x22   :  { %p4600_p1 = pnand %p4599_p0, %p4593_p11 }
  0x24   :  { %4603 = shalt.err (!%p4600_p1)
}
  0x25   :  { %77 = dma.hbm_to_vmem [thread:$0]  %s5515_s6, 2048, %s72_s28, [#allocation8], %s4769_s23, %s4769_s23, %s4770_s24  }
  0x26   :  { %s4604_s29 = scalar_lea.hbm %s5517_s8, 2048 }
  0x27   :  { %p4605_p2 = scmp.ne.s32.totalorder %s5517_s8, %s4604_s29  ;;  %p4608_p3 = scmp.lt.u32.totalorder %s4604_s29, %s5517_s8 }
  0x29   :  { %p4610_p4 = pnand %p4608_p3, %p4605_p2 }
  0x2b   :  { %4613 = shalt.err (!%p4610_p4)
}
  0x2c   :  { %s4614_s20 = scalar_lea.vmem %s96_s15, 2048  ;;  %p4619_p6 = scmp.lt.s32.totalorder %s96_s15, %s96_s15 }
  0x2d   :  { %p4615_p5 = scmp.ne.s32.totalorder %s96_s15, %s4614_s20  ;;  %p4620_p7 = scmp.lt.s32.totalorder %s4614_s20, %s4614_s20 }
  0x2f   :  { %p4621_p8 = por %p4620_p7, %p4619_p6 }
  0x31   :  { %p4622_p9 = pnand %p4621_p8, %p4615_p5 }
  0x33   :  { %4625 = shalt.err (!%p4622_p9)
}
  0x34   :  { %101 = dma.hbm_to_vmem [thread:$0]  %s5517_s8, 2048, %s96_s15, [#allocation11], %s4769_s23, %s4769_s23, %s4770_s24  }
  0x35   :  { %s4773_s21 = smov [#allocation13]   ;;  %s4774_s4 = smov [#allocation2]  }
  0x36   :  { %s121_s22 = sshll.u32 %s4773_s21, 4  ;;  %s35_s30 = sshll.u32 %s4774_s4, 4  ;;  %s122_s22 = int_to_ptr.vmem [resolvable:$true] %s121_s22  ;;  %s36_s30 = int_to_ptr.vmem [resolvable:$true] %s35_s30 }
  0x37   :  { %s4626_s27 = scalar_lea.hbm %s5520_s11, 2048 }
  0x38   :  { %p4627_p10 = scmp.ne.s32.totalorder %s5520_s11, %s4626_s27  ;;  %p4630_p11 = scmp.lt.u32.totalorder %s4626_s27, %s5520_s11 }
  0x3a   :  { %p4632_p12 = pnand %p4630_p11, %p4627_p10 }
  0x3c   :  { %4635 = shalt.err (!%p4632_p12)
}
  0x3d   :  { %s4636_s8 = scalar_lea.vmem %s122_s22, 2048  ;;  %p4641_p0 = scmp.lt.s32.totalorder %s122_s22, %s122_s22 }
  0x3e   :  { %p4637_p13 = scmp.ne.s32.totalorder %s122_s22, %s4636_s8  ;;  %p4642_p1 = scmp.lt.s32.totalorder %s4636_s8, %s4636_s8 }
  0x40   :  { %p4643_p2 = por %p4642_p1, %p4641_p0 }
  0x42   :  { %p4644_p3 = pnand %p4643_p2, %p4637_p13 }
  0x44   :  { %4647 = shalt.err (!%p4644_p3)
}
  0x45   :  { %s4775_s15 = smov 128   ;;  %s4776_s19 = smov 8  }
  0x46   :  { %127 = dma.hbm_to_vmem [thread:$0]  %s5520_s11, 2048, %s122_s22, [#allocation14], %s4775_s15, %s4775_s15, %s4776_s19  }
  0x47   :  { %s4648_s4 = scalar_lea.hbm %s5512_s3, 256 }
  0x48   :  { %p4649_p4 = scmp.ne.s32.totalorder %s5512_s3, %s4648_s4  ;;  %p4652_p5 = scmp.lt.u32.totalorder %s4648_s4, %s5512_s3 }
  0x4a   :  { %p4654_p6 = pnand %p4652_p5, %p4649_p4 }
  0x4c   :  { %4657 = shalt.err (!%p4654_p6)
}
  0x4d   :  { %s4658_s16 = scalar_lea.vmem %s36_s30, 256  ;;  %p4663_p8 = scmp.lt.s32.totalorder %s36_s30, %s36_s30 }
  0x4e   :  { %p4659_p7 = scmp.ne.s32.totalorder %s36_s30, %s4658_s16  ;;  %p4664_p9 = scmp.lt.s32.totalorder %s4658_s16, %s4658_s16 }
  0x50   :  { %p4665_p10 = por %p4664_p9, %p4663_p8 }
  0x52   :  { %p4666_p11 = pnand %p4665_p10, %p4659_p7 }
  0x54   :  { %4669 = shalt.err (!%p4666_p11)
}
  0x55   :  { %41 = dma.hbm_to_vmem [thread:$0]  %s5512_s3, 256, %s36_s30, [#allocation3], %s4775_s15, %s4775_s15, %s4776_s19  }
  0x56   :  { %s4777_s17 = smov [#allocation6]   ;;  %s4670_s6 = scalar_lea.hbm %s5514_s5, 6144 }
  0x57   :  { %s59_s18 = sshll.u32 %s4777_s17, 4  ;;  %p4671_p12 = scmp.ne.s32.totalorder %s5514_s5, %s4670_s6  ;;  %s60_s18 = int_to_ptr.vmem [resolvable:$true] %s59_s18 }
  0x58   :  { %p4674_p13 = scmp.lt.u32.totalorder %s4670_s6, %s5514_s5 }
  0x5a   :  { %p4676_p0 = pnand %p4674_p13, %p4671_p12 }
  0x5c   :  { %4679 = shalt.err (!%p4676_p0)
}
  0x5d   :  { %s4680_s26 = scalar_lea.vmem %s60_s18, 6144  ;;  %p4685_p2 = scmp.lt.s32.totalorder %s60_s18, %s60_s18 }
  0x5e   :  { %p4681_p1 = scmp.ne.s32.totalorder %s60_s18, %s4680_s26  ;;  %p4686_p3 = scmp.lt.s32.totalorder %s4680_s26, %s4680_s26 }
  0x60   :  { %p4687_p4 = por %p4686_p3, %p4685_p2 }
  0x62   :  { %p4688_p5 = pnand %p4687_p4, %p4681_p1 }
  0x64   :  { %4691 = shalt.err (!%p4688_p5)
}
  0x65   :  { %s4778_s3 = smov 192   ;;  %s4779_s30 = smov 12  }
  0x66   :  { %65 = dma.hbm_to_vmem [thread:$0]  %s5514_s5, 6144, %s60_s18, [#allocation5], %s4778_s3, %s4778_s3, %s4779_s30  }
  0x67   :  { %s4780_s16 = smov [#allocation9]   ;;  %s4781_s22 = smov [#allocation12]  }
  0x68   :  { %s83_s11 = sshll.u32 %s4780_s16, 4  ;;  %s109_s17 = sshll.u32 %s4781_s22, 4  ;;  %s84_s11 = int_to_ptr.vmem [resolvable:$true] %s83_s11  ;;  %s4950_s17 = int_to_ptr.vmem [resolvable:$true] %s109_s17 }
  0x69   :  { %s4692_s6 = scalar_lea.hbm %s5516_s7, 2048 }
  0x6a   :  { %p4693_p6 = scmp.ne.s32.totalorder %s5516_s7, %s4692_s6  ;;  %p4696_p7 = scmp.lt.u32.totalorder %s4692_s6, %s5516_s7 }
  0x6c   :  { %p4698_p8 = pnand %p4696_p7, %p4693_p6 }
  0x6e   :  { %4701 = shalt.err (!%p4698_p8)
}
  0x6f   :  { %s4702_s5 = scalar_lea.vmem %s84_s11, 2048  ;;  %p4707_p10 = scmp.lt.s32.totalorder %s84_s11, %s84_s11 }
  0x70   :  { %p4703_p9 = scmp.ne.s32.totalorder %s84_s11, %s4702_s5  ;;  %p4708_p11 = scmp.lt.s32.totalorder %s4702_s5, %s4702_s5 }
  0x72   :  { %p4709_p12 = por %p4708_p11, %p4707_p10 }
  0x74   :  { %p4710_p13 = pnand %p4709_p12, %p4703_p9 }
  0x76   :  { %4713 = shalt.err (!%p4710_p13)
}
  0x77   :  { %89 = dma.hbm_to_vmem [thread:$0]  %s5516_s7, 2048, %s84_s11, [#allocation8], %s4769_s23, %s4769_s23, %s4770_s24  }
  0x78   :  { %s4714_s27 = scalar_lea.hbm %s5519_s10, 2048 }
  0x79   :  { %p4715_p0 = scmp.ne.s32.totalorder %s5519_s10, %s4714_s27  ;;  %p4718_p1 = scmp.lt.u32.totalorder %s4714_s27, %s5519_s10 }
  0x7b   :  { %p4720_p2 = pnand %p4718_p1, %p4715_p0 }
  0x7d   :  { %4723 = shalt.err (!%p4720_p2)
}
  0x7e   :  { %s4724_s20 = scalar_lea.vmem %s4950_s17, 2048  ;;  %p4729_p4 = scmp.lt.s32.totalorder %s4950_s17, %s4950_s17 }
  0x7f   :  { %p4725_p3 = scmp.ne.s32.totalorder %s4950_s17, %s4724_s20  ;;  %p4730_p5 = scmp.lt.s32.totalorder %s4724_s20, %s4724_s20 }
  0x81   :  { %p4731_p6 = por %p4730_p5, %p4729_p4 }
  0x83   :  { %p4732_p7 = pnand %p4731_p6, %p4725_p3 }
  0x85   :  { %4735 = shalt.err (!%p4732_p7)
}
  0x86   :  { %115 = dma.hbm_to_vmem [thread:$0]  %s5519_s10, 2048, %s4950_s17, [#allocation11], %s4769_s23, %s4769_s23, %s4770_s24  }
  0x87   :  { %s4782_s6 = smov [#allocation15]   ;;  %s4736_s25 = scalar_lea.hbm %s5521_s12, 256 }
  0x88   :  { %s133_s28 = sshll.u32 %s4782_s6, 4  ;;  %p4737_p8 = scmp.ne.s32.totalorder %s5521_s12, %s4736_s25  ;;  %s134_s28 = int_to_ptr.vmem [resolvable:$true] %s133_s28 }
  0x89   :  { %p4740_p9 = scmp.lt.u32.totalorder %s4736_s25, %s5521_s12 }
  0x8b   :  { %p4742_p10 = pnand %p4740_p9, %p4737_p8 }
  0x8d   :  { %4745 = shalt.err (!%p4742_p10)
}
  0x8e   :  { %s4746_s30 = scalar_lea.vmem %s134_s28, 256  ;;  %p4751_p12 = scmp.lt.s32.totalorder %s134_s28, %s134_s28 }
  0x8f   :  { %p4747_p11 = scmp.ne.s32.totalorder %s134_s28, %s4746_s30  ;;  %p4752_p13 = scmp.lt.s32.totalorder %s4746_s30, %s4746_s30 }
  0x91   :  { %p4753_p0 = por %p4752_p13, %p4751_p12 }
  0x93   :  { %p4754_p1 = pnand %p4753_p0, %p4747_p11 }
  0x95   :  { %4757 = shalt.err (!%p4754_p1)
}
  0x96   :  { %139 = dma.hbm_to_vmem [thread:$0]  %s5521_s12, 256, %s134_s28, [#allocation14], %s4775_s15, %s4775_s15, %s4776_s19  }
  0x97   :  { %4758 = dma.done.wait [#allocation3], 256  }
  0x98   :  { %4759 = vsyncadd [#allocation3], 4294967040 }
  0x99   :  { %4760 = dma.done.wait [#allocation5], 7168  }
  0x9a   :  { %4761 = vsyncadd [#allocation5], 4294960128 }
  0x9b   :  { %4762 = dma.done.wait [#allocation8], 4096  }
  0x9c   :  { %4763 = vsyncadd [#allocation8], 4294963200 }
  0x9d   :  { %4764 = dma.done.wait [#allocation11], 4096  }
  0x9e   :  { %4765 = vsyncadd [#allocation11], 4294963200 }
  0x9f   :  { %4766 = dma.done.wait [#allocation14], 2304  }
  0xa0   :  { %4767 = vsyncadd [#allocation14], 4294964992  ;;  %v4783_v0 = vmov 0.0   ;;  %vm4784_vm0 = vmmov 0   ;;  %v4785_v1 = vmov 0   ;;  %v4264_v2 = vld [vmem:[#allocation4] sm:$0xff]  }
  0xa1   :  { %3902 = vmatprep.subr.bf16.mxu0 %v4783_v0  ;;  %3918 = vmatprep.mubr.msk.bf16.mxu0 %vm4784_vm0, %v4783_v0  ;;  %v4265_v3 = vld [vmem:[#allocation4 + $0x8] sm:$0xff]   ;;  %v4266_v4 = vld [vmem:[#allocation4 + $0x10] sm:$0xff]   ;;  %v4267_v6 = vld [vmem:[#allocation4 + $0x18] sm:$0xff]   ;;  %vm633_vm1 = vcmask 261120   ;;  %s4787_s11 = smov 32   ;;  %vm836_vm2 = vcmask 130048  }
  0xa2   :  { %4263 = vset.pattern.permute.xlu1 %v4785_v1  ;;  %4262 = vset.pattern.permute.xlu0 %v4785_v1  ;;  %v172_v5 = vld [vmem:[%s5510_s1] sm:$0xff]  ;;  %v173_v8 = vld [vmem:[%s5510_s1 + $0x8] sm:$0xff]  ;;  %v4268_v10 = vld [vmem:[#allocation4 + $0x20] sm:$0xff]  }
  0xa3   :  { %562 = vmatprep.mubr.bf16.mxu1 %v4785_v1  ;;  %3903 = vmatpush3.bf16.msra.mxu0 %v4264_v2  ;;  %v301_v7 = vsub.f32 1.0, %v172_v5  ;;  %v302_v9 = vsub.f32 1.0, %v173_v8  ;;  %v4269_v11 = vld [vmem:[#allocation4 + $0x28] sm:$0xff]   ;;  %v4270_v12 = vld [vmem:[#allocation4 + $0x30] sm:$0xff]   ;;  %v4271_v13 = vld [vmem:[#allocation4 + $0x38] sm:$0xff]  }
  0xa4   :  { %3904 = vmatprep.subr.bf16.mxu0 %v4783_v0  ;;  %291 = vperm.xlu0 %4262, %v172_v5   ;;  %v170_v14 = vld [vmem:[%s5509_s0] sm:$0xff]  ;;  %v171_v15 = vld [vmem:[%s5509_s0 + $0x8] sm:$0xff]  ;;  %v4274_v42 = vld [vmem:[#allocation6] ss:$12 sps:$4 sm:$0xff]   ;;  %s4786_s0 = smov 96  }
  0xa5   :  { %305 = vperm.xlu1 %4263, %v301_v7   ;;  %v183_v16 = vpack.c.bf16 %v171_v15, %v170_v14  ;;  %v177_v19 = vld [vmem:[%s5522_s13 + $0x1] ss:$0 sm:$0xff]  ;;  %v176_v20 = vld [vmem:[%s5522_s13] ss:$0 sm:$0xff]  ;;  %v318_v35 = vld [vmem:[#allocation2 + $0x8] sm:$0xff] }
  0xa6   :  { %v317_v30 = vld [vmem:[#allocation2] sm:$0xff]  ;;  %v4276_v44 = vld [vmem:[#allocation6 + $0x1c] ss:$12 sps:$4 sm:$0xff]   ;;  %v4278_v45 = vld [vmem:[#allocation6 + $0x18] ss:$12 sps:$4 sm:$0xff]  }
  0xa7   :  { %3905 = vmatpush3.bf16.msra.mxu0 %v4265_v3  ;;  %v4272_v41 = vld [vmem:[#allocation6 + $0x4] ss:$12 sps:$4 sm:$0xff]   ;;  %v4275_v43 = vld [vmem:[#allocation6 + $0x8] ss:$12 sps:$4 sm:$0xff]   ;;  %v4279_v46 = vld [vmem:[#allocation6 + $0x20] ss:$12 sps:$4 sm:$0xff]  }
  0xa8   :  { %3906 = vmatprep.subr.bf16.mxu0 %v4783_v0  ;;  %296 = vperm.xlu0 %4262, %v173_v8   ;;  %v4280_v47 = vld [vmem:[#allocation6 + $0x34] ss:$12 sps:$4 sm:$0xff]   ;;  %v4282_v48 = vld [vmem:[#allocation6 + $0x30] ss:$12 sps:$4 sm:$0xff]   ;;  %v4283_v49 = vld [vmem:[#allocation6 + $0x38] ss:$12 sps:$4 sm:$0xff]  }
  0xa9   :  { %310 = vperm.xlu1 %4263, %v302_v9   ;;  %530 = vmatprep.subr.bf16.mxu1 %v4272_v41  ;;  %v4284_v50 = vld [vmem:[#allocation6 + $0x4c] ss:$12 sps:$4 sm:$0xff]   ;;  %v4286_v51 = vld [vmem:[#allocation6 + $0x48] ss:$12 sps:$4 sm:$0xff]   ;;  %v4287_v52 = vld [vmem:[#allocation6 + $0x50] ss:$12 sps:$4 sm:$0xff]  }
  0xaa   :  { %531 = vmatpush1.bf16.msra.mxu1 %v4274_v42  ;;  %v4288_v53 = vld [vmem:[#allocation6 + $0x64] ss:$12 sps:$4 sm:$0xff]   ;;  %v4290_v54 = vld [vmem:[#allocation6 + $0x60] ss:$12 sps:$4 sm:$0xff]   ;;  %v4291_v55 = vld [vmem:[#allocation6 + $0x68] ss:$12 sps:$4 sm:$0xff]  }
  0xab   :  { %3907 = vmatpush3.bf16.msra.mxu0 %v4266_v4  ;;  %532 = vmatprep.subr.bf16.mxu1 %v4276_v44  ;;  %v4292_v56 = vld [vmem:[#allocation6 + $0x7c] ss:$12 sps:$4 sm:$0xff]   ;;  %v4294_v57 = vld [vmem:[#allocation6 + $0x78] ss:$12 sps:$4 sm:$0xff]   ;;  %v4295_v58 = vld [vmem:[#allocation6 + $0x80] ss:$12 sps:$4 sm:$0xff]  }
  0xac   :  { %3908 = vmatprep.subr.bf16.mxu0 %v4783_v0  ;;  %v4296_v59 = vld [vmem:[#allocation6 + $0x94] ss:$12 sps:$4 sm:$0xff]   ;;  %v4298_v60 = vld [vmem:[#allocation6 + $0x90] ss:$12 sps:$4 sm:$0xff]   ;;  %v4299_v61 = vld [vmem:[#allocation6 + $0x98] ss:$12 sps:$4 sm:$0xff]  }
  0xad   :  { %v4300_v62 = vld [vmem:[#allocation6 + $0xac] ss:$12 sps:$4 sm:$0xff]   ;;  %v4302_v63 = vld [vmem:[#allocation6 + $0xa8] ss:$12 sps:$4 sm:$0xff]   ;;  %v4303_v2 = vld [vmem:[#allocation6 + $0xb0] ss:$12 sps:$4 sm:$0xff]  }
  0xae   :  { %533 = vmatpush1.bf16.msra.mxu1 %v4278_v45 }
  0xaf   :  { %3909 = vmatpush3.bf16.msra.mxu0 %v4267_v6  ;;  %534 = vmatprep.subr.bf16.mxu1 %v4280_v47 }
  0xb0   :  { %3910 = vmatprep.subr.bf16.mxu0 %v4783_v0 }
  0xb2   :  { %535 = vmatpush1.bf16.msra.mxu1 %v4282_v48 }
  0xb3   :  { %3911 = vmatpush3.bf16.msra.mxu0 %v4268_v10  ;;  %536 = vmatprep.subr.bf16.mxu1 %v4284_v50 }
  0xb4   :  { %3912 = vmatprep.subr.bf16.mxu0 %v4783_v0 }
  0xb6   :  { %537 = vmatpush1.bf16.msra.mxu1 %v4286_v51 }
  0xb7   :  { %3913 = vmatpush3.bf16.msra.mxu0 %v4269_v11  ;;  %538 = vmatprep.subr.bf16.mxu1 %v4288_v53 }
  0xb8   :  { %3914 = vmatprep.subr.bf16.mxu0 %v4783_v0 }
  0xba   :  { %539 = vmatpush1.bf16.msra.mxu1 %v4290_v54 }
  0xbb   :  { %3915 = vmatpush3.bf16.msra.mxu0 %v4270_v12  ;;  %540 = vmatprep.subr.bf16.mxu1 %v4292_v56 }
  0xbc   :  { %3916 = vmatprep.subr.bf16.mxu0 %v4783_v0 }
  0xbe   :  { %541 = vmatpush1.bf16.msra.mxu1 %v4294_v57  ;;  %v175_v57 = vld [vmem:[%s5511_s2 + $0x8] sm:$0xff] }
  0xbf   :  { %3917 = vmatpush3.bf16.msra.mxu0 %v4271_v13  ;;  %542 = vmatprep.subr.bf16.mxu1 %v4296_v59 }
  0xc0   :  { %3922 = vmatprep.subr.bf16.mxu0 %v4783_v0 }
  0xc2   :  { %3919 = vmatmul.mubr.bf16.vlgmr.msra.gmra.mrb[0].mxu0 %v183_v16  ;;  %543 = vmatpush1.bf16.msra.mxu1 %v4298_v60 }
  0xc3   :  { %3938 = vmatprep.mubr.msk.bf16.mxu0 %vm4784_vm0, %v4783_v0  ;;  %3923 = vmatpush3.bf16.msra.mxu0 %v4275_v43 }
  0xc4   :  { %3924 = vmatprep.subr.bf16.mxu0 %v4783_v0  ;;  %544 = vmatprep.subr.bf16.mxu1 %v4300_v62 }
  0xc6   :  { %545 = vmatpush1.bf16.msra.mxu1 %v4302_v63 }
  0xc7   :  { %3925 = vmatpush3.bf16.msra.mxu0 %v4279_v46  ;;  %3942 = vmatprep.subr.bf16.mxu1 %v4783_v0 }
  0xc8   :  { %3926 = vmatprep.subr.bf16.mxu0 %v4783_v0 }
  0xcb   :  { %3927 = vmatpush3.bf16.msra.mxu0 %v4283_v49 }
  0xcc   :  { %3928 = vmatprep.subr.bf16.mxu0 %v4783_v0 }
  0xcf   :  { %3929 = vmatpush3.bf16.msra.mxu0 %v4287_v52 }
  0xd0   :  { %3930 = vmatprep.subr.bf16.mxu0 %v4783_v0 }
  0xd3   :  { %3931 = vmatpush3.bf16.msra.mxu0 %v4291_v55  ;;  %v174_v55 = vld [vmem:[%s5511_s2] sm:$0xff] }
  0xd4   :  { %3932 = vmatprep.subr.bf16.mxu0 %v4783_v0 }
  0xd7   :  { %3933 = vmatpush3.bf16.msra.mxu0 %v4295_v58 }
  0xd8   :  { %3934 = vmatprep.subr.bf16.mxu0 %v4783_v0 }
  0xdb   :  { %3935 = vmatpush3.bf16.msra.mxu0 %v4299_v61 }
  0xdc   :  { %3936 = vmatprep.subr.bf16.mxu0 %v4783_v0 }
  0xdf   :  { %3937 = vmatpush3.bf16.msra.mxu0 %v4303_v2 }
  0xe0   :  { %3994 = vmatprep.subr.bf16.mxu0 %v4783_v0 }
 0x123   :  { %v292_v18 = vpop.permute.xlu0 %291 }
 0x124   :  { %v306_v17 = vpop.permute.xlu1 %305 }
 0x125   :  { %v313_v22 = vmul.f32 %v306_v17, %v177_v19 }
 0x127   :  { %v297_v31 = vpop.permute.xlu0 %296 }
 0x128   :  { %v311_v25 = vpop.permute.xlu1 %310 }
 0x129   :  { %v314_v33 = vmul.f32 %v311_v25, %v177_v19 }
 0x195   :  { %v282_v21 = vpop.f32.mrb[0].mxu0 }
 0x196   :  { %v283_v23 = vadd.f32 %v282_v21, %v176_v20  ;;  %v3920_v24 = vpop.f32.mrb[1].mxu0 }
 0x197   :  { %v285_v26 = vpop.f32.mrb[2].mxu0 }
 0x198   :  { %v299_v27 = vmul.f32 %v292_v18, %v283_v23  ;;  %v286_v28 = vadd.f32 %v285_v26, %v176_v20  ;;  %v3921_v29 = vpop.f32.mrb[3].mxu0 }
 0x19a   :  { %v315_v32 = vadd.f32 %v313_v22, %v299_v27  ;;  %v300_v34 = vmul.f32 %v297_v31, %v286_v28  ;;  %v3569_v22 = vld [vmem:[#allocation15] ss:$0 sm:$0xff]  ;;  %v3570_v27 = vld [vmem:[#allocation15 + $0x1] ss:$0 sm:$0xff] }
 0x19c   :  { %v5036_v36 = vadd.f32 %v317_v30, %v315_v32  ;;  %v316_v37 = vadd.f32 %v314_v33, %v300_v34 }
 0x19e   :  { %v5038_v38 = vadd.f32 %v318_v35, %v316_v37  ;;  %328 = vadd.xlane.f32.xlu0 %v5036_v36  ;;  %v335_v39 = vmul.f32 %v5036_v36, %v5036_v36 }
 0x1a0   :  { %330 = vadd.xlane.f32.xlu1 %v5038_v38  ;;  %v336_v40 = vmul.f32 %v5038_v38, %v5038_v38 }
 0x1a2   :  { %337 = vadd.xlane.f32.xlu0 %v335_v39 }
 0x1a6   :  { %339 = vadd.xlane.f32.xlu0 %v336_v40 }
 0x22b   :  { %v329_v3 = vpop.xlane.xlu0 %328 }
 0x22c   :  { %v333_v4 = vmul.f32 0.0078125, %v329_v3 }
 0x22d   :  { %v331_v5 = vpop.xlane.xlu1 %330 }
 0x22e   :  { %v343_v7 = vmul.f32 %v333_v4, %v333_v4  ;;  %v334_v8 = vmul.f32 0.0078125, %v331_v5  ;;  %v349_v19 = vsub.f32 %v5036_v36, %v333_v4 }
 0x22f   :  { %v338_v6 = vpop.xlane.xlu0 %337 }
 0x230   :  { %v341_v9 = vmul.f32 0.0078125, %v338_v6  ;;  %v344_v12 = vmul.f32 %v334_v8, %v334_v8  ;;  %v350_v23 = vsub.f32 %v5038_v38, %v334_v8 }
 0x232   :  { %v345_v10 = vsub.f32 %v341_v9, %v343_v7 }
 0x233   :  { %v340_v11 = vpop.xlane.xlu0 %339 }
 0x234   :  { %v347_v13 = vmax.f32 %v345_v10, 0.0  ;;  %v342_v14 = vmul.f32 0.0078125, %v340_v11 }
 0x236   :  { %v351_v15 = vadd.f32 1e-05, %v347_v13  ;;  %v346_v16 = vsub.f32 %v342_v14, %v344_v12 }
 0x238   :  { %4432 = vrsqrt.f32 %v351_v15  ;;  %v348_v17 = vmax.f32 %v346_v16, 0.0 }
 0x23a   :  { %v352_v18 = vadd.f32 1e-05, %v348_v17 }
 0x23c   :  { %4434 = vrsqrt.f32 %v352_v18 }
 0x242   :  { %v4433_v20 = vpop.eup %4432 }
 0x243   :  { %v355_v21 = vmul.f32 %v4433_v20, %v349_v19 }
 0x245   :  { %v361_v26 = vmul.f32 %v3569_v22, %v355_v21 }
 0x246   :  { %v4435_v24 = vpop.eup %4434 }
 0x247   :  { %v356_v25 = vmul.f32 %v4435_v24, %v350_v23  ;;  %v367_v29 = vadd.f32 %v3570_v27, %v361_v26 }
 0x249   :  { %v362_v28 = vmul.f32 %v3569_v22, %v356_v25 }
 0x24b   :  { %v368_v30 = vadd.f32 %v3570_v27, %v362_v28 }
 0x24d   :  { %v369_v31 = vpack.c.bf16 %v368_v30, %v367_v29 }
 0x24f   :  { %563 = vmatmul.mubr.bf16.vlgmr.msra.gmra.mrb[0].mxu1 %v369_v31  ;;  %3939 = vmatmul.mubr.bf16.vlgmr.msra.gmra.mrb[4].mxu0 %v369_v31 }
 0x250   :  { %3944 = vmatprep.mubr.msk.bf16.mxu1 %vm4784_vm0, %v4783_v0  ;;  %3996 = vmatprep.mubr.msk.bf16.mxu0 %vm4784_vm0, %v4783_v0 }
 0x322   :  { %v564_v32 = vpop.f32.mrb[0].mxu1  ;;  %v607_v33 = vpop.f32.mrb[4].mxu0 }
 0x323   :  { %v566_v34 = vpop.f32.mrb[1].mxu1  ;;  %v3940_v35 = vpop.f32.mrb[5].mxu0 }
 0x324   :  { %v568_v37 = vpop.f32.mrb[2].mxu1  ;;  %v610_v39 = vpop.f32.mrb[6].mxu0 }
 0x325   :  { %v614_v40 = vpack.c.bf16 %v568_v37, %v564_v32  ;;  %v5061_v41 = vpack.c.bf16 %v610_v39, %v607_v33  ;;  %v570_v42 = vpop.f32.mrb[3].mxu1  ;;  %v3941_v43 = vpop.f32.mrb[7].mxu0 }
 0x326   :  { %v615_v44 = vpack.c.bf16 %v570_v42, %v566_v34 }
 0x327   :  { %682 = vrot.lane.b32.xlu0 %v614_v40, %s4786_s0 }
 0x328   :  { %685 = vrot.lane.b32.xlu1 %v615_v44, %s4786_s0  ;;  %v638_v45 = vsel %vm633_vm1, %v615_v44, 0 }
 0x329   :  { %3943 = vmatpush3.bf16.xpose.msra.mxu1 %v638_v45 }
 0x32a   :  { %3948 = vmatprep.subr.bf16.mxu1 %v4783_v0 }
 0x32b   :  { %787 = vrot.lane.b32.xlu0 %v615_v44, %s4787_s11 }
 0x32c   :  { %736 = vrot.lane.b32.xlu1 %v615_v44, %s4769_s23 }
 0x330   :  { %734 = vrot.lane.b32.xlu1 %v614_v40, %s4769_s23  ;;  %3945 = vmatmul.mubr.msk.bf16.vlgmr.msra.gmra.mrb[4].mxu1 %vm633_vm1, %v614_v40 }
 0x331   :  { %3950 = vmatprep.mubr.msk.bf16.mxu1 %vm4784_vm0, %v4783_v0 }
 0x334   :  { %785 = vrot.lane.b32.xlu1 %v614_v40, %s4787_s11 }
 0x399   :  { %v683_v49 = vpop.permute.xlu0 %682 }
 0x39a   :  { %v686_v46 = vpop.permute.xlu1 %685 }
 0x39b   :  { %v691_v47 = vsel %vm633_vm1, %v686_v46, 0 }
 0x39c   :  { %3949 = vmatpush3.bf16.xpose.msra.mxu1 %v691_v47 }
 0x39d   :  { %3954 = vmatprep.subr.bf16.mxu1 %v4783_v0  ;;  %v788_v51 = vpop.permute.xlu0 %787 }
 0x39e   :  { %v737_v48 = vpop.permute.xlu1 %736  ;;  %v793_v53 = vsel %vm633_vm1, %v788_v51, 0 }
 0x39f   :  { %v742_v50 = vsel %vm633_vm1, %v737_v48, 0 }
 0x3a2   :  { %v735_v52 = vpop.permute.xlu1 %734 }
 0x3a3   :  { %3951 = vmatmul.mubr.msk.bf16.vlgmr.msra.gmra.mrb[8].mxu1 %vm633_vm1, %v683_v49 }
 0x3a4   :  { %3955 = vmatpush3.bf16.xpose.msra.mxu1 %v742_v50  ;;  %3956 = vmatprep.mubr.msk.bf16.mxu1 %vm4784_vm0, %v4783_v0 }
 0x3a5   :  { %3960 = vmatprep.subr.bf16.mxu1 %v4783_v0 }
 0x3a6   :  { %v786_v54 = vpop.permute.xlu1 %785 }
 0x3ab   :  { %3957 = vmatmul.mubr.msk.bf16.vlgmr.msra.gmra.mrb[12].mxu1 %vm633_vm1, %v735_v52 }
 0x3ac   :  { %3961 = vmatpush3.bf16.xpose.msra.mxu1 %v793_v53  ;;  %3962 = vmatprep.mubr.msk.bf16.mxu1 %vm4784_vm0, %v4783_v0 }
 0x3ad   :  { %3966 = vmatprep.subr.bf16.mxu1 %v4783_v0 }
 0x3b3   :  { %3963 = vmatmul.mubr.msk.bf16.vlgmr.msra.gmra.mrb[16].mxu1 %vm633_vm1, %v786_v54 }
 0x3b4   :  { %3967 = vmatpush3.bf16.msra.mxu1 %v5061_v41  ;;  %3968 = vmatprep.mubr.msk.bf16.mxu1 %vm4784_vm0, %v4783_v0 }
 0x3b5   :  { %3972 = vmatprep.subr.bf16.mxu1 %v4783_v0 }
 0x403   :  { %v674_v56 = vpop.f32.mrb[4].mxu1 }
 0x404   :  { %v675_v58 = vadd.f32 %v674_v56, %v174_v55  ;;  %v3946_v59 = vpop.f32.mrb[5].mxu1 }
 0x405   :  { %v677_v60 = vpop.f32.mrb[6].mxu1 }
 0x406   :  { %v678_v61 = vadd.f32 %v677_v60, %v175_v57  ;;  %v3947_v62 = vpop.f32.mrb[7].mxu1  ;;  %v837_v63 = vsel %vm836_vm2, %v675_v58, -inf }
 0x407   :  { %838 = vmax.xlane.f32.xlu0 %v837_v63 }
 0x408   :  { %v840_v2 = vsel %vm836_vm2, %v678_v61, -inf }
 0x409   :  { %841 = vmax.xlane.f32.xlu1 %v840_v2 }
 0x476   :  { %v727_v3 = vpop.f32.mrb[8].mxu1 }
 0x477   :  { %v728_v4 = vadd.f32 %v727_v3, %v174_v55  ;;  %v3952_v5 = vpop.f32.mrb[9].mxu1 }
 0x478   :  { %v730_v6 = vpop.f32.mrb[10].mxu1 }
 0x479   :  { %v731_v7 = vadd.f32 %v730_v6, %v175_v57  ;;  %v3953_v8 = vpop.f32.mrb[11].mxu1  ;;  %v843_v9 = vsel %vm836_vm2, %v728_v4, -inf }
 0x47a   :  { %844 = vmax.xlane.f32.xlu0 %v843_v9 }
 0x47b   :  { %v846_v10 = vsel %vm836_vm2, %v731_v7, -inf }
 0x47e   :  { %847 = vmax.xlane.f32.xlu0 %v846_v10  ;;  %v778_v11 = vpop.f32.mrb[12].mxu1 }
 0x47f   :  { %v5101_v12 = vadd.f32 %v778_v11, %v174_v55  ;;  %v3958_v13 = vpop.f32.mrb[13].mxu1 }
 0x480   :  { %v781_v14 = vpop.f32.mrb[14].mxu1 }
 0x481   :  { %v782_v15 = vadd.f32 %v781_v14, %v175_v57  ;;  %v3959_v16 = vpop.f32.mrb[15].mxu1  ;;  %v849_v17 = vsel %vm836_vm2, %v5101_v12, -inf }
 0x482   :  { %850 = vmax.xlane.f32.xlu1 %v849_v17 }
 0x483   :  { %v852_v18 = vsel %vm836_vm2, %v782_v15, -inf }
 0x484   :  { %853 = vmax.xlane.f32.xlu0 %v852_v18 }
 0x486   :  { %v829_v19 = vpop.f32.mrb[16].mxu1 }
 0x487   :  { %v5106_v20 = vadd.f32 %v829_v19, %v174_v55  ;;  %v3964_v21 = vpop.f32.mrb[17].mxu1 }
 0x488   :  { %v832_v22 = vpop.f32.mrb[18].mxu1 }
 0x489   :  { %v833_v23 = vadd.f32 %v832_v22, %v175_v57  ;;  %v3965_v24 = vpop.f32.mrb[19].mxu1  ;;  %v855_v25 = vsel %vm836_vm2, %v5106_v20, -inf }
 0x48a   :  { %856 = vmax.xlane.f32.xlu1 %v855_v25 }
 0x48b   :  { %v858_v26 = vsel %vm836_vm2, %v833_v23, -inf }
 0x48c   :  { %859 = vmax.xlane.f32.xlu0 %v858_v26 }
 0x494   :  { %v839_v27 = vpop.xlane.xlu0 %838 }
 0x495   :  { %v861_v28 = vsub.f32 %v675_v58, %v839_v27 }
 0x496   :  { %v842_v29 = vpop.xlane.xlu1 %841 }
 0x497   :  { %v869_v30 = vmul.f32 1.442695, %v861_v28  ;;  %v862_v31 = vsub.f32 %v678_v61, %v842_v29 }
 0x499   :  { %4436 = vpow2.f32 %v869_v30  ;;  %v871_v32 = vmul.f32 1.442695, %v862_v31 }
 0x49b   :  { %4438 = vpow2.f32 %v871_v32 }
 0x4a3   :  { %v4437_v33 = vpop.eup %4436 }
 0x4a4   :  { %v885_v34 = vsel %vm836_vm2, %v4437_v33, 0.0 }
 0x4a5   :  { %v4439_v35 = vpop.eup %4438  ;;  %886 = vadd.xlane.f32.xlu1 %v885_v34 }
 0x4a6   :  { %v888_v37 = vsel %vm836_vm2, %v4439_v35, 0.0 }
 0x4a7   :  { %889 = vadd.xlane.f32.xlu0 %v888_v37 }
 0x507   :  { %v845_v39 = vpop.xlane.xlu0 %844 }
 0x508   :  { %v863_v40 = vsub.f32 %v728_v4, %v845_v39 }
 0x50a   :  { %v873_v42 = vmul.f32 1.442695, %v863_v40 }
 0x50b   :  { %v848_v43 = vpop.xlane.xlu0 %847 }
 0x50c   :  { %4440 = vpow2.f32 %v873_v42  ;;  %v864_v44 = vsub.f32 %v731_v7, %v848_v43  ;;  %v4305_v42 = vld [vmem:[#allocation7 + $0x18] sm:$0xff]  }
 0x50e   :  { %v875_v45 = vmul.f32 1.442695, %v864_v44 }
 0x50f   :  { %v851_v60 = vpop.xlane.xlu1 %850 }
 0x510   :  { %4442 = vpow2.f32 %v875_v45  ;;  %v865_v2 = vsub.f32 %v5101_v12, %v851_v60  ;;  %v4310_v60 = vld [vmem:[#allocation7 + $0x30] sm:$0xff]  }
 0x511   :  { %v854_v46 = vpop.xlane.xlu0 %853 }
 0x512   :  { %v866_v47 = vsub.f32 %v782_v15, %v854_v46  ;;  %v877_v3 = vmul.f32 1.442695, %v865_v2 }
 0x514   :  { %v879_v48 = vmul.f32 1.442695, %v866_v47 }
 0x516   :  { %v4441_v49 = vpop.eup %4440  ;;  %4444 = vpow2.f32 %v879_v48 }
 0x517   :  { %v891_v50 = vsel %vm836_vm2, %v4441_v49, 0.0  ;;  %v857_v61 = vpop.xlane.xlu1 %856 }
 0x518   :  { %892 = vadd.xlane.f32.xlu1 %v891_v50  ;;  %v867_v4 = vsub.f32 %v5106_v20, %v857_v61 }
 0x519   :  { %v860_v51 = vpop.xlane.xlu0 %859 }
 0x51a   :  { %v4443_v52 = vpop.eup %4442  ;;  %v868_v53 = vsub.f32 %v833_v23, %v860_v51  ;;  %v881_v7 = vmul.f32 1.442695, %v867_v4  ;;  %v4304_v23 = vld [vmem:[#allocation7 + $0x10] sm:$0xff]   ;;  %v4306_v51 = vld [vmem:[#allocation7] sm:$0xff]  }
 0x51b   :  { %v894_v54 = vsel %vm836_vm2, %v4443_v52, 0.0 }
 0x51c   :  { %v883_v55 = vmul.f32 1.442695, %v868_v53  ;;  %895 = vadd.xlane.f32.xlu0 %v894_v54  ;;  %v4307_v54 = vld [vmem:[#allocation7 + $0x8] sm:$0xff]  }
 0x51e   :  { %4446 = vpow2.f32 %v883_v55  ;;  %v4308_v55 = vld [vmem:[#allocation7 + $0x20] sm:$0xff]  }
 0x520   :  { %v5115_v56 = vpop.eup %4444 }
 0x521   :  { %v900_v57 = vsel %vm836_vm2, %v5115_v56, 0.0 }
 0x522   :  { %901 = vadd.xlane.f32.xlu0 %v900_v57 }
 0x528   :  { %v5119_v58 = vpop.eup %4446 }
 0x529   :  { %975 = vrot.lane.b32.xlu1 %v5061_v41, %s4786_s0  ;;  %v906_v59 = vsel %vm836_vm2, %v5119_v58, 0.0 }
 0x52a   :  { %907 = vadd.xlane.f32.xlu0 %v906_v59 }
 0x532   :  { %v887_v62 = vpop.xlane.xlu1 %886 }
 0x533   :  { %4448 = vrcp.f32 %v887_v62 }
 0x534   :  { %v890_v63 = vpop.xlane.xlu0 %889 }
 0x535   :  { %4450 = vrcp.f32 %v890_v63  ;;  %v4311_v63 = vld [vmem:[#allocation7 + $0x38] sm:$0xff]  }
 0x536   :  { %4452 = vpow2.f32 %v877_v3 }
 0x537   :  { %4454 = vpow2.f32 %v881_v7 }
 0x53d   :  { %v4449_v5 = vpop.eup %4448 }
 0x53e   :  { %v917_v8 = vmul.f32 %v4449_v5, %v4437_v33 }
 0x53f   :  { %v4451_v6 = vpop.eup %4450 }
 0x540   :  { %v918_v9 = vmul.f32 %v4451_v6, %v4439_v35  ;;  %1135 = vrot.lane.b32.xlu0 %v5061_v41, %s4769_s23  ;;  %v4453_v11 = vpop.eup %4452 }
 0x541   :  { %v897_v12 = vsel %vm836_vm2, %v4453_v11, 0.0  ;;  %v4455_v13 = vpop.eup %4454 }
 0x542   :  { %v925_v10 = vpack.c.bf16 %v918_v9, %v917_v8  ;;  %v903_v14 = vsel %vm836_vm2, %v4455_v13, 0.0 }
 0x544   :  { %3969 = vmatmul.mubr.msk.bf16.vlgmr.msra.gmra.mrb[20].mxu1 %vm836_vm2, %v925_v10 }
 0x545   :  { %3974 = vmatprep.mubr.msk.bf16.mxu1 %vm4784_vm0, %v4783_v0 }
 0x54d   :  { %898 = vadd.xlane.f32.xlu1 %v897_v12 }
 0x551   :  { %904 = vadd.xlane.f32.xlu1 %v903_v14 }
 0x562   :  { %1241 = vrot.lane.b32.xlu1 %v5061_v41, %s4787_s11 }
 0x5a5   :  { %v893_v15 = vpop.xlane.xlu1 %892 }
 0x5a6   :  { %4456 = vrcp.f32 %v893_v15 }
 0x5a9   :  { %v896_v16 = vpop.xlane.xlu0 %895  ;;  %v976_v17 = vpop.permute.xlu1 %975 }
 0x5aa   :  { %4458 = vrcp.f32 %v896_v16  ;;  %3973 = vmatpush3.bf16.msra.mxu1 %v976_v17 }
 0x5ab   :  { %3978 = vmatprep.subr.bf16.mxu1 %v4783_v0 }
 0x5af   :  { %v902_v19 = vpop.xlane.xlu0 %901 }
 0x5b0   :  { %v4457_v18 = vpop.eup %4456  ;;  %4460 = vrcp.f32 %v902_v19 }
 0x5b1   :  { %v919_v21 = vmul.f32 %v4457_v18, %v4441_v49 }
 0x5b4   :  { %v4459_v20 = vpop.eup %4458 }
 0x5b5   :  { %v920_v22 = vmul.f32 %v4459_v20, %v4443_v52 }
 0x5b7   :  { %v908_v24 = vpop.xlane.xlu0 %907  ;;  %v926_v25 = vpack.c.bf16 %v920_v22, %v919_v21 }
 0x5b9   :  { %3975 = vmatmul.mubr.msk.bf16.vlgmr.msra.gmra.mrb[24].mxu1 %vm836_vm2, %v926_v25 }
 0x5ba   :  { %3979 = vmatpush3.bf16.msra.mxu1 %v4304_v23  ;;  %3982 = vmatprep.mubr.msk.bf16.mxu1 %vm4784_vm0, %v4783_v0  ;;  %v4461_v28 = vpop.eup %4460  ;;  %v3615_v23 = vld [vmem:[#allocation15 + $0x4] ss:$0 sm:$0xff] }
 0x5bb   :  { %v1136_v41 = vpop.permute.xlu0 %1135  ;;  %3980 = vmatprep.subr.bf16.mxu1 %v4783_v0  ;;  %v922_v30 = vmul.f32 %v4461_v28, %v5115_v56  ;;  %v4309_v56 = vld [vmem:[#allocation7 + $0x28] sm:$0xff]  }
 0x5bc   :  { %3995 = vmatpush3.bf16.msra.mxu0 %v1136_v41 }
 0x5bd   :  { %4008 = vmatprep.subr.bf16.mxu0 %v4783_v0 }
 0x5be   :  { %3981 = vmatpush3.bf16.msra.mxu1 %v4305_v42  ;;  %v4318_v42 = vld [vmem:[#allocation9 + $0x30] sm:$0xff]  }
 0x5bf   :  { %3986 = vmatprep.subr.bf16.mxu1 %v4783_v0 }
 0x5da   :  { %v899_v26 = vpop.xlane.xlu1 %898 }
 0x5db   :  { %4462 = vrcp.f32 %v899_v26 }
 0x5de   :  { %v905_v27 = vpop.xlane.xlu1 %904 }
 0x5df   :  { %4464 = vrcp.f32 %v905_v27 }
 0x5e0   :  { %4466 = vrcp.f32 %v908_v24 }
 0x5e2   :  { %v1242_v34 = vpop.permute.xlu1 %1241 }
 0x5e5   :  { %v4463_v29 = vpop.eup %4462 }
 0x5e6   :  { %v921_v31 = vmul.f32 %v4463_v29, %v4453_v11 }
 0x5e8   :  { %v927_v32 = vpack.c.bf16 %v922_v30, %v921_v31 }
 0x5e9   :  { %v4465_v33 = vpop.eup %4464 }
 0x5ea   :  { %3997 = vmatmul.mubr.msk.bf16.vlgmr.msra.gmra.mrb[8].mxu0 %vm836_vm2, %v927_v32  ;;  %v4467_v35 = vpop.eup %4466  ;;  %v923_v37 = vmul.f32 %v4465_v33, %v4455_v13 }
 0x5eb   :  { %4009 = vmatpush3.bf16.msra.mxu0 %v1242_v34  ;;  %4010 = vmatprep.mubr.msk.bf16.mxu0 %vm4784_vm0, %v4783_v0  ;;  %v924_v39 = vmul.f32 %v4467_v35, %v5119_v58  ;;  %v4312_v35 = vld [vmem:[#allocation9] sm:$0xff]  }
 0x5ec   :  { %4022 = vmatprep.subr.bf16.mxu0 %v4783_v0 }
 0x5ed   :  { %v928_v40 = vpack.c.bf16 %v924_v39, %v923_v37  ;;  %v4315_v37 = vld [vmem:[#allocation9 + $0x18] sm:$0xff]   ;;  %v4316_v39 = vld [vmem:[#allocation9 + $0x20] sm:$0xff]  }
 0x5f2   :  { %4011 = vmatmul.mubr.msk.bf16.vlgmr.msra.gmra.mrb[12].mxu0 %vm836_vm2, %v928_v40  ;;  %v4317_v40 = vld [vmem:[#allocation9 + $0x28] sm:$0xff]  }
 0x5f3   :  { %4038 = vmatprep.mubr.msk.bf16.mxu0 %vm4784_vm0, %v4783_v0  ;;  %4023 = vmatpush3.bf16.msra.mxu0 %v4312_v35 }
 0x5f4   :  { %4024 = vmatprep.subr.bf16.mxu0 %v4783_v0 }
 0x617   :  { %v966_v43 = vpop.f32.mrb[20].mxu1 }
 0x618   :  { %v3970_v44 = vpop.f32.mrb[21].mxu1 }
 0x619   :  { %v969_v45 = vpop.f32.mrb[22].mxu1 }
 0x61a   :  { %v973_v46 = vpack.c.bf16 %v969_v45, %v966_v43  ;;  %v3971_v47 = vpop.f32.mrb[23].mxu1  ;;  %v4319_v43 = vld [vmem:[#allocation9 + $0x38] sm:$0xff]  }
 0x68c   :  { %v1015_v48 = vpop.f32.mrb[24].mxu1 }
 0x68d   :  { %v3976_v49 = vpop.f32.mrb[25].mxu1 }
 0x68e   :  { %v1018_v50 = vpop.f32.mrb[26].mxu1 }
 0x68f   :  { %v1022_v52 = vpack.c.bf16 %v1018_v50, %v1015_v48  ;;  %v3977_v53 = vpop.f32.mrb[27].mxu1 }
 0x691   :  { %3983 = vmatmul.mubr.msk.bf16.vlgmr.msra.gmra.mrb[28].mxu1 %vm633_vm1, %v1022_v52 }
 0x692   :  { %3987 = vmatpush3.bf16.msra.mxu1 %v4306_v51  ;;  %3990 = vmatprep.mubr.msk.bf16.mxu1 %vm4784_vm0, %v4783_v0 }
 0x693   :  { %3988 = vmatprep.subr.bf16.mxu1 %v4783_v0 }
 0x696   :  { %3989 = vmatpush3.bf16.msra.mxu1 %v4307_v54 }
 0x697   :  { %4000 = vmatprep.subr.bf16.mxu1 %v4783_v0 }
 0x699   :  { %3991 = vmatmul.mubr.msk.bf16.vlgmr.msra.gmra.mrb[32].mxu1 %vm633_vm1, %v973_v46 }
 0x69a   :  { %4001 = vmatpush3.bf16.msra.mxu1 %v4308_v55  ;;  %4004 = vmatprep.mubr.msk.bf16.mxu1 %vm4784_vm0, %v4783_v0 }
 0x69b   :  { %4002 = vmatprep.subr.bf16.mxu1 %v4783_v0 }
 0x69e   :  { %4003 = vmatpush3.bf16.msra.mxu1 %v4309_v56 }
 0x69f   :  { %4014 = vmatprep.subr.bf16.mxu1 %v4783_v0 }
 0x6bd   :  { %v1175_v57 = vpop.f32.mrb[8].mxu0 }
 0x6be   :  { %v3998_v58 = vpop.f32.mrb[9].mxu0 }
 0x6bf   :  { %v1178_v59 = vpop.f32.mrb[10].mxu0 }
 0x6c0   :  { %v1182_v61 = vpack.c.bf16 %v1178_v59, %v1175_v57  ;;  %v3999_v62 = vpop.f32.mrb[11].mxu0 }
 0x6c1   :  { %v3616_v62 = vld [vmem:[#allocation15 + $0x2] ss:$0 sm:$0xff] }
 0x6c2   :  { %4005 = vmatmul.mubr.msk.bf16.vlgmr.msra.gmra.mrb[36].mxu1 %vm633_vm1, %v1182_v61 }
 0x6c3   :  { %4015 = vmatpush3.bf16.msra.mxu1 %v4310_v60  ;;  %4018 = vmatprep.mubr.msk.bf16.mxu1 %vm4784_vm0, %v4783_v0 }
 0x6c4   :  { %4016 = vmatprep.subr.bf16.mxu1 %v4783_v0 }
 0x6c5   :  { %v1281_v2 = vpop.f32.mrb[12].mxu0 }
 0x6c6   :  { %v4012_v3 = vpop.f32.mrb[13].mxu0 }
 0x6c7   :  { %v1284_v4 = vpop.f32.mrb[14].mxu0  ;;  %4017 = vmatpush3.bf16.msra.mxu1 %v4311_v63 }
 0x6c8   :  { %v1288_v5 = vpack.c.bf16 %v1284_v4, %v1281_v2  ;;  %v4013_v6 = vpop.f32.mrb[15].mxu0  ;;  %4042 = vmatprep.subr.bf16.mxu1 %v4783_v0 }
 0x6c9   :  { %v3617_v6 = vld [vmem:[#allocation15 + $0x3] ss:$0 sm:$0xff] }
 0x6ca   :  { %4019 = vmatmul.mubr.msk.bf16.vlgmr.msra.gmra.mrb[40].mxu1 %vm633_vm1, %v1288_v5 }
 0x6cb   :  { %4058 = vmatprep.mubr.msk.bf16.mxu1 %vm4784_vm0, %v4783_v0 }
 0x764   :  { %v1072_v7 = vpop.f32.mrb[28].mxu1 }
 0x765   :  { %v3984_v8 = vpop.f32.mrb[29].mxu1 }
 0x766   :  { %v1075_v9 = vpop.f32.mrb[30].mxu1 }
 0x767   :  { %v3985_v10 = vpop.f32.mrb[31].mxu1 }
 0x76c   :  { %v1128_v11 = vpop.f32.mrb[32].mxu1 }
 0x76d   :  { %v1129_v12 = vadd.f32 %v1128_v11, %v1072_v7  ;;  %v3992_v13 = vpop.f32.mrb[33].mxu1  ;;  %v4320_v11 = vld [vmem:[#allocation10] sm:$0xff]  }
 0x76e   :  { %v1131_v14 = vpop.f32.mrb[34].mxu1  ;;  %4043 = vmatpush3.bf16.msra.mxu1 %v4320_v11  ;;  %v4322_v13 = vld [vmem:[#allocation10 + $0x10] sm:$0xff]  }
 0x76f   :  { %v1132_v15 = vadd.f32 %v1131_v14, %v1075_v9  ;;  %v3993_v16 = vpop.f32.mrb[35].mxu1  ;;  %4044 = vmatprep.subr.bf16.mxu1 %v4783_v0  ;;  %v4323_v14 = vld [vmem:[#allocation10 + $0x18] sm:$0xff]  }
 0x770   :  { %v4325_v16 = vld [vmem:[#allocation10 + $0x28] sm:$0xff]  }
 0x795   :  { %v1232_v17 = vpop.f32.mrb[36].mxu1 }
 0x796   :  { %v1239_v18 = vadd.f32 %v1232_v17, %v1129_v12  ;;  %v4006_v19 = vpop.f32.mrb[37].mxu1  ;;  %v4321_v12 = vld [vmem:[#allocation10 + $0x8] sm:$0xff]   ;;  %v4326_v17 = vld [vmem:[#allocation10 + $0x30] sm:$0xff]  }
 0x797   :  { %v1235_v20 = vpop.f32.mrb[38].mxu1  ;;  %4045 = vmatpush3.bf16.msra.mxu1 %v4321_v12  ;;  %v3618_v19 = vld [vmem:[#allocation15 + $0x5] ss:$0 sm:$0xff] }
 0x798   :  { %v1240_v21 = vadd.f32 %v1235_v20, %v1132_v15  ;;  %v4007_v22 = vpop.f32.mrb[39].mxu1  ;;  %4046 = vmatprep.subr.bf16.mxu1 %v4783_v0  ;;  %v4324_v15 = vld [vmem:[#allocation10 + $0x20] sm:$0xff]  }
 0x79b   :  { %4047 = vmatpush3.bf16.msra.mxu1 %v4322_v13 }
 0x79c   :  { %4048 = vmatprep.subr.bf16.mxu1 %v4783_v0 }
 0x79d   :  { %v1338_v24 = vpop.f32.mrb[40].mxu1 }
 0x79e   :  { %v1345_v25 = vadd.f32 %v1338_v24, %v1239_v18  ;;  %v4020_v41 = vpop.f32.mrb[41].mxu1  ;;  %v4327_v18 = vld [vmem:[#allocation10 + $0x38] sm:$0xff]  }
 0x79f   :  { %v1341_v26 = vpop.f32.mrb[42].mxu1  ;;  %4049 = vmatpush3.bf16.msra.mxu1 %v4323_v14 }
 0x7a0   :  { %v1351_v27 = vadd.f32 %v3615_v23, %v1345_v25  ;;  %v1346_v28 = vadd.f32 %v1341_v26, %v1240_v21  ;;  %v4021_v29 = vpop.f32.mrb[43].mxu1  ;;  %4050 = vmatprep.subr.bf16.mxu1 %v4783_v0 }
 0x7a2   :  { %v5171_v30 = vadd.f32 %v1351_v27, %v5036_v36  ;;  %v1352_v31 = vadd.f32 %v3615_v23, %v1346_v28  ;;  %v4313_v36 = vld [vmem:[#allocation9 + $0x8] sm:$0xff]  }
 0x7a3   :  { %4025 = vmatpush3.bf16.msra.mxu0 %v4313_v36  ;;  %4051 = vmatpush3.bf16.msra.mxu1 %v4324_v15 }
 0x7a4   :  { %v5174_v32 = vadd.f32 %v1352_v31, %v5038_v38  ;;  %1355 = vadd.xlane.f32.xlu1 %v5171_v30  ;;  %v1361_v34 = vmul.f32 %v5171_v30, %v5171_v30  ;;  %4026 = vmatprep.subr.bf16.mxu0 %v4783_v0  ;;  %v4314_v38 = vld [vmem:[#allocation9 + $0x10] sm:$0xff]  }
 0x7a5   :  { %4052 = vmatprep.subr.bf16.mxu1 %v4783_v0 }
 0x7a6   :  { %1357 = vadd.xlane.f32.xlu0 %v5174_v32  ;;  %v1362_v33 = vmul.f32 %v5174_v32, %v5174_v32 }
 0x7a7   :  { %4027 = vmatpush3.bf16.msra.mxu0 %v4314_v38  ;;  %4053 = vmatpush3.bf16.msra.mxu1 %v4325_v16 }
 0x7a8   :  { %1365 = vadd.xlane.f32.xlu1 %v1362_v33  ;;  %4028 = vmatprep.subr.bf16.mxu0 %v4783_v0 }
 0x7a9   :  { %4054 = vmatprep.subr.bf16.mxu1 %v4783_v0 }
 0x7aa   :  { %1363 = vadd.xlane.f32.xlu0 %v1361_v34 }
 0x7ab   :  { %4029 = vmatpush3.bf16.msra.mxu0 %v4315_v37  ;;  %4055 = vmatpush3.bf16.msra.mxu1 %v4326_v17 }
 0x7ac   :  { %4030 = vmatprep.subr.bf16.mxu0 %v4783_v0  ;;  %4056 = vmatprep.subr.bf16.mxu1 %v4783_v0 }
 0x7af   :  { %4031 = vmatpush3.bf16.msra.mxu0 %v4316_v39  ;;  %4057 = vmatpush3.bf16.msra.mxu1 %v4327_v18 }
 0x7b0   :  { %4032 = vmatprep.subr.bf16.mxu0 %v4783_v0 }
 0x7b3   :  { %4033 = vmatpush3.bf16.msra.mxu0 %v4317_v40 }
 0x7b4   :  { %4034 = vmatprep.subr.bf16.mxu0 %v4783_v0 }
 0x7b7   :  { %4035 = vmatpush3.bf16.msra.mxu0 %v4318_v42 }
 0x7b8   :  { %4036 = vmatprep.subr.bf16.mxu0 %v4783_v0 }
 0x7bb   :  { %4037 = vmatpush3.bf16.msra.mxu0 %v4319_v43 }
 0x7bc   :  { %4062 = vmatprep.subr.bf16.mxu0 %v4783_v0 }
 0x831   :  { %v1356_v44 = vpop.xlane.xlu1 %1355 }
 0x832   :  { %v1359_v46 = vmul.f32 0.0078125, %v1356_v44 }
 0x833   :  { %v1358_v45 = vpop.xlane.xlu0 %1357 }
 0x834   :  { %v1360_v47 = vmul.f32 0.0078125, %v1358_v45  ;;  %v1369_v52 = vmul.f32 %v1359_v46, %v1359_v46  ;;  %v1375_v63 = vsub.f32 %v5171_v30, %v1359_v46 }
 0x835   :  { %v1366_v48 = vpop.xlane.xlu1 %1365 }
 0x836   :  { %v1370_v49 = vmul.f32 %v1360_v47, %v1360_v47  ;;  %v1368_v50 = vmul.f32 0.0078125, %v1366_v48  ;;  %v1376_v60 = vsub.f32 %v5174_v32, %v1360_v47  ;;  %v3627_v47 = vld [vmem:[#allocation15 + $0x6] ss:$0 sm:$0xff] }
 0x837   :  { %v1364_v51 = vpop.xlane.xlu0 %1363 }
 0x838   :  { %v1372_v53 = vsub.f32 %v1368_v50, %v1370_v49  ;;  %v1367_v54 = vmul.f32 0.0078125, %v1364_v51 }
 0x83a   :  { %v1374_v55 = vmax.f32 %v1372_v53, 0.0  ;;  %v1371_v56 = vsub.f32 %v1367_v54, %v1369_v52 }
 0x83c   :  { %v1378_v57 = vadd.f32 1e-05, %v1374_v55  ;;  %v1373_v58 = vmax.f32 %v1371_v56, 0.0 }
 0x83e   :  { %4468 = vrsqrt.f32 %v1378_v57  ;;  %v1377_v59 = vadd.f32 1e-05, %v1373_v58  ;;  %v4330_v58 = vld [vmem:[%s5518_s9 + $0x10] sm:$0xff]  }
 0x840   :  { %4470 = vrsqrt.f32 %v1377_v59  ;;  %v4331_v59 = vld [vmem:[%s5518_s9 + $0x18] sm:$0xff]  }
 0x848   :  { %v4469_v61 = vpop.eup %4468 }
 0x849   :  { %v1382_v2 = vmul.f32 %v4469_v61, %v1376_v60  ;;  %v4332_v60 = vld [vmem:[%s5518_s9 + $0x20] sm:$0xff]   ;;  %v4333_v61 = vld [vmem:[%s5518_s9 + $0x28] sm:$0xff]  }
 0x84a   :  { %v4471_v3 = vpop.eup %4470 }
 0x84b   :  { %v1381_v4 = vmul.f32 %v4471_v3, %v1375_v63  ;;  %v1388_v5 = vmul.f32 %v3616_v62, %v1382_v2  ;;  %v4335_v63 = vld [vmem:[%s5518_s9 + $0x38] sm:$0xff]   ;;  %v4338_v2 = vld [vmem:[#allocation6 + $0xc4] ss:$12 sps:$4 sm:$0xff]  }
 0x84d   :  { %v1387_v7 = vmul.f32 %v3616_v62, %v1381_v4  ;;  %v1394_v9 = vadd.f32 %v3617_v6, %v1388_v5  ;;  %v4334_v62 = vld [vmem:[%s5518_s9 + $0x30] sm:$0xff]  }
 0x84f   :  { %v1393_v8 = vadd.f32 %v3617_v6, %v1387_v7 }
 0x851   :  { %v1395_v10 = vpack.c.bf16 %v1394_v9, %v1393_v8 }
 0x853   :  { %4039 = vmatmul.mubr.bf16.vlgmr.msra.gmra.mrb[16].mxu0 %v1395_v10 }
 0x854   :  { %4078 = vmatprep.mubr.msk.bf16.mxu0 %vm4784_vm0, %v4783_v0 }
 0x926   :  { %v1498_v20 = vpop.f32.mrb[16].mxu0 }
 0x927   :  { %v1499_v21 = vadd.f32 %v3618_v19, %v1498_v20  ;;  %v4040_v22 = vpop.f32.mrb[17].mxu0 }
 0x928   :  { %v1501_v23 = vpop.f32.mrb[18].mxu0 }
 0x929   :  { %v1505_v24 = vmul.f32 %v1499_v21, %v1499_v21  ;;  %v1502_v25 = vadd.f32 %v3618_v19, %v1501_v23  ;;  %v4041_v41 = vpop.f32.mrb[19].mxu0 }
 0x92b   :  { %v1507_v26 = vmul.f32 %v1505_v24, %v1499_v21  ;;  %v1506_v27 = vmul.f32 %v1502_v25, %v1502_v25 }
 0x92d   :  { %v1509_v28 = vmul.f32 0.044715, %v1507_v26  ;;  %v1508_v29 = vmul.f32 %v1506_v27, %v1502_v25  ;;  %v179_v26 = vld [vmem:[%s5522_s13 + $0x3] ss:$0 sm:$0xff] }
 0x92f   :  { %v1511_v31 = vadd.f32 %v1509_v28, %v1499_v21  ;;  %v1510_v33 = vmul.f32 0.044715, %v1508_v29 }
 0x931   :  { %v1513_v34 = vmul.f32 0.7978846, %v1511_v31  ;;  %v1512_v35 = vadd.f32 %v1510_v33, %v1502_v25  ;;  %v4336_v31 = vld [vmem:[#allocation6 + $0xc0] ss:$12 sps:$4 sm:$0xff]  }
 0x933   :  { %4472 = vtanh.f32 %v1513_v34  ;;  %v1514_v36 = vmul.f32 0.7978846, %v1512_v35  ;;  %v4341_v34 = vld [vmem:[#allocation6 + $0xdc] ss:$12 sps:$4 sm:$0xff]   ;;  %v4339_v35 = vld [vmem:[#allocation6 + $0xd8] ss:$12 sps:$4 sm:$0xff]  }
 0x935   :  { %4474 = vtanh.f32 %v1514_v36  ;;  %v4344_v36 = vld [vmem:[#allocation6 + $0xf4] ss:$12 sps:$4 sm:$0xff]  }
 0x93d   :  { %v4473_v38 = vpop.eup %4472 }
 0x93e   :  { %v1517_v37 = vadd.f32 1.0, %v4473_v38  ;;  %v4342_v38 = vld [vmem:[#allocation6 + $0xf0] ss:$12 sps:$4 sm:$0xff]  }
 0x93f   :  { %v4475_v39 = vpop.eup %4474 }
 0x940   :  { %v1519_v40 = vmul.f32 0.5, %v1517_v37  ;;  %v1518_v42 = vadd.f32 1.0, %v4475_v39  ;;  %v4347_v37 = vld [vmem:[#allocation6 + $0x10c] ss:$12 sps:$4 sm:$0xff]   ;;  %v4345_v39 = vld [vmem:[#allocation6 + $0x108] ss:$12 sps:$4 sm:$0xff]  }
 0x942   :  { %v1520_v43 = vmul.f32 0.5, %v1518_v42  ;;  %v1521_v44 = vmul.f32 %v1519_v40, %v1499_v21  ;;  %v178_v21 = vld [vmem:[%s5522_s13 + $0x2] ss:$0 sm:$0xff]  ;;  %v4348_v42 = vld [vmem:[#allocation6 + $0x120] ss:$12 sps:$4 sm:$0xff]  }
 0x943   :  { %v4350_v40 = vld [vmem:[#allocation6 + $0x124] ss:$12 sps:$4 sm:$0xff]  }
 0x944   :  { %v1522_v45 = vmul.f32 %v1520_v43, %v1502_v25  ;;  %v4353_v43 = vld [vmem:[#allocation6 + $0x13c] ss:$12 sps:$4 sm:$0xff]  }
 0x946   :  { %v1523_v46 = vpack.c.bf16 %v1522_v45, %v1521_v44  ;;  %v4351_v44 = vld [vmem:[#allocation6 + $0x138] ss:$12 sps:$4 sm:$0xff]   ;;  %v4356_v45 = vld [vmem:[#allocation6 + $0x154] ss:$12 sps:$4 sm:$0xff]  }
 0x948   :  { %4059 = vmatmul.mubr.bf16.vlgmr.msra.gmra.mrb[44].mxu1 %v1523_v46  ;;  %v4354_v46 = vld [vmem:[#allocation6 + $0x150] ss:$12 sps:$4 sm:$0xff]  }
 0x949   :  { %1931 = vmatprep.mubr.bf16.mxu1 %v4785_v1 }
 0xa1b   :  { %v1626_v48 = vpop.f32.mrb[44].mxu1 }
 0xa1c   :  { %v1627_v49 = vadd.f32 %v3627_v47, %v1626_v48  ;;  %v4060_v50 = vpop.f32.mrb[45].mxu1  ;;  %v4359_v48 = vld [vmem:[#allocation6 + $0x16c] ss:$12 sps:$4 sm:$0xff]  }
 0xa1d   :  { %v1629_v51 = vpop.f32.mrb[46].mxu1 }
 0xa1e   :  { %v5203_v52 = vadd.f32 %v1627_v49, %v5171_v30  ;;  %v1630_v53 = vadd.f32 %v3627_v47, %v1629_v51  ;;  %v4061_v54 = vpop.f32.mrb[47].mxu1  ;;  %v4328_v30 = vld [vmem:[%s5518_s9] sm:$0xff]   ;;  %v3660_v47 = vld [vmem:[#allocation15 + $0x8] ss:$0 sm:$0xff] }
 0xa1f   :  { %4063 = vmatpush3.bf16.msra.mxu0 %v4328_v30  ;;  %v4357_v51 = vld [vmem:[#allocation6 + $0x168] ss:$12 sps:$4 sm:$0xff]   ;;  %v5260_v30 = vld [vmem:[#allocation13 + $0x4] ss:$8 sps:$4 sm:$0xff]  }
 0xa20   :  { %v5206_v55 = vadd.f32 %v1630_v53, %v5174_v32  ;;  %1635 = vadd.xlane.f32.xlu0 %v5203_v52  ;;  %v1641_v56 = vmul.f32 %v5203_v52, %v5203_v52  ;;  %4064 = vmatprep.subr.bf16.mxu0 %v4783_v0  ;;  %v4329_v32 = vld [vmem:[%s5518_s9 + $0x8] sm:$0xff]   ;;  %v3661_v53 = vld [vmem:[#allocation15 + $0x9] ss:$0 sm:$0xff] }
 0xa21   :  { %1899 = vmatprep.subr.bf16.mxu1 %v5260_v30 }
 0xa22   :  { %1637 = vadd.xlane.f32.xlu1 %v5206_v55  ;;  %v1642_v57 = vmul.f32 %v5206_v55, %v5206_v55 }
 0xa23   :  { %4065 = vmatpush3.bf16.msra.mxu0 %v4329_v32  ;;  %v4360_v32 = vld [vmem:[#allocation13] ss:$8 sps:$4 sm:$0xff]  }
 0xa24   :  { %1643 = vadd.xlane.f32.xlu0 %v1641_v56  ;;  %4066 = vmatprep.subr.bf16.mxu0 %v4783_v0 }
 0xa25   :  { %1900 = vmatpush1.bf16.msra.mxu1 %v4360_v32 }
 0xa26   :  { %1645 = vadd.xlane.f32.xlu1 %v1642_v57 }
 0xa27   :  { %4067 = vmatpush3.bf16.msra.mxu0 %v4330_v58  ;;  %v4365_v58 = vld [vmem:[#allocation13 + $0x14] ss:$8 sps:$4 sm:$0xff]  }
 0xa28   :  { %4068 = vmatprep.subr.bf16.mxu0 %v4783_v0  ;;  %1901 = vmatprep.subr.bf16.mxu1 %v4365_v58 }
 0xa2b   :  { %4069 = vmatpush3.bf16.msra.mxu0 %v4331_v59  ;;  %v4363_v59 = vld [vmem:[#allocation13 + $0x10] ss:$8 sps:$4 sm:$0xff]  }
 0xa2c   :  { %4070 = vmatprep.subr.bf16.mxu0 %v4783_v0  ;;  %1902 = vmatpush1.bf16.msra.mxu1 %v4363_v59 }
 0xa2f   :  { %4071 = vmatpush3.bf16.msra.mxu0 %v4332_v60  ;;  %v4368_v60 = vld [vmem:[#allocation13 + $0x24] ss:$8 sps:$4 sm:$0xff]  }
 0xa30   :  { %4072 = vmatprep.subr.bf16.mxu0 %v4783_v0  ;;  %1903 = vmatprep.subr.bf16.mxu1 %v4368_v60 }
 0xa33   :  { %4073 = vmatpush3.bf16.msra.mxu0 %v4333_v61  ;;  %v4366_v61 = vld [vmem:[#allocation13 + $0x20] ss:$8 sps:$4 sm:$0xff]  }
 0xa34   :  { %4074 = vmatprep.subr.bf16.mxu0 %v4783_v0  ;;  %1904 = vmatpush1.bf16.msra.mxu1 %v4366_v61 }
 0xa37   :  { %4075 = vmatpush3.bf16.msra.mxu0 %v4334_v62  ;;  %v4371_v62 = vld [vmem:[#allocation13 + $0x34] ss:$8 sps:$4 sm:$0xff]  }
 0xa38   :  { %4076 = vmatprep.subr.bf16.mxu0 %v4783_v0  ;;  %1905 = vmatprep.subr.bf16.mxu1 %v4371_v62 }
 0xa3b   :  { %4077 = vmatpush3.bf16.msra.mxu0 %v4335_v63  ;;  %v4369_v63 = vld [vmem:[#allocation13 + $0x30] ss:$8 sps:$4 sm:$0xff]  }
 0xa3c   :  { %2124 = vmatprep.subr.bf16.mxu0 %v4338_v2  ;;  %1906 = vmatpush1.bf16.msra.mxu1 %v4369_v63  ;;  %v4374_v2 = vld [vmem:[#allocation13 + $0x44] ss:$8 sps:$4 sm:$0xff]  }
 0xa3d   :  { %1907 = vmatprep.subr.bf16.mxu1 %v4374_v2 }
 0xaad   :  { %v1636_v3 = vpop.xlane.xlu0 %1635 }
 0xaae   :  { %v1639_v4 = vmul.f32 0.0078125, %v1636_v3  ;;  %v4372_v3 = vld [vmem:[#allocation13 + $0x40] ss:$8 sps:$4 sm:$0xff]  }
 0xaaf   :  { %v1638_v5 = vpop.xlane.xlu1 %1637  ;;  %1908 = vmatpush1.bf16.msra.mxu1 %v4372_v3 }
 0xab0   :  { %v1640_v6 = vmul.f32 0.0078125, %v1638_v5  ;;  %v1649_v8 = vmul.f32 %v1639_v4, %v1639_v4  ;;  %v1655_v19 = vsub.f32 %v5203_v52, %v1639_v4  ;;  %v4377_v4 = vld [vmem:[#allocation13 + $0x54] ss:$8 sps:$4 sm:$0xff]   ;;  %v4375_v5 = vld [vmem:[#allocation13 + $0x50] ss:$8 sps:$4 sm:$0xff]  }
 0xab1   :  { %v1644_v7 = vpop.xlane.xlu0 %1643  ;;  %1909 = vmatprep.subr.bf16.mxu1 %v4377_v4 }
 0xab2   :  { %v1647_v9 = vmul.f32 0.0078125, %v1644_v7  ;;  %v1650_v11 = vmul.f32 %v1640_v6, %v1640_v6  ;;  %v1656_v22 = vsub.f32 %v5206_v55, %v1640_v6  ;;  %v4380_v6 = vld [vmem:[#allocation13 + $0x64] ss:$8 sps:$4 sm:$0xff]   ;;  %v4378_v7 = vld [vmem:[#allocation13 + $0x60] ss:$8 sps:$4 sm:$0xff]  }
 0xab3   :  { %v1646_v10 = vpop.xlane.xlu1 %1645  ;;  %1910 = vmatpush1.bf16.msra.mxu1 %v4375_v5 }
 0xab4   :  { %v1651_v12 = vsub.f32 %v1647_v9, %v1649_v8  ;;  %v1648_v13 = vmul.f32 0.0078125, %v1646_v10  ;;  %1911 = vmatprep.subr.bf16.mxu1 %v4380_v6  ;;  %v4383_v8 = vld [vmem:[#allocation13 + $0x74] ss:$8 sps:$4 sm:$0xff]   ;;  %v4381_v9 = vld [vmem:[#allocation13 + $0x70] ss:$8 sps:$4 sm:$0xff]  }
 0xab5   :  { %v180_v10 = vld [vmem:[%s5522_s13 + $0x4] ss:$0 sm:$0xff] }
 0xab6   :  { %v1653_v14 = vmax.f32 %v1651_v12, 0.0  ;;  %v1652_v15 = vsub.f32 %v1648_v13, %v1650_v11 }
 0xab7   :  { %1912 = vmatpush1.bf16.msra.mxu1 %v4378_v7 }
 0xab8   :  { %v1657_v16 = vadd.f32 1e-05, %v1653_v14  ;;  %v1654_v17 = vmax.f32 %v1652_v15, 0.0  ;;  %1913 = vmatprep.subr.bf16.mxu1 %v4383_v8 }
 0xaba   :  { %4476 = vrsqrt.f32 %v1657_v16  ;;  %v1658_v18 = vadd.f32 1e-05, %v1654_v17 }
 0xabb   :  { %1914 = vmatpush1.bf16.msra.mxu1 %v4381_v9 }
 0xabc   :  { %4478 = vrsqrt.f32 %v1658_v18  ;;  %4082 = vmatprep.subr.bf16.mxu1 %v4783_v0 }
 0xac4   :  { %v4477_v20 = vpop.eup %4476 }
 0xac5   :  { %v1661_v23 = vmul.f32 %v4477_v20, %v1655_v19 }
 0xac6   :  { %v4479_v24 = vpop.eup %4478 }
 0xac7   :  { %v1662_v25 = vmul.f32 %v4479_v24, %v1656_v22  ;;  %v1663_v41 = vmul.f32 %v1661_v23, %v178_v21  ;;  %v1954_v50 = vmul.f32 %v3660_v47, %v1661_v23 }
 0xac9   :  { %v1664_v27 = vmul.f32 %v1662_v25, %v178_v21  ;;  %v1665_v28 = vadd.f32 %v1663_v41, %v179_v26  ;;  %v1955_v49 = vmul.f32 %v3660_v47, %v1662_v25  ;;  %v1960_v56 = vadd.f32 %v3661_v53, %v1954_v50  ;;  %v4386_v47 = vld [vmem:[#allocation6 + $0xf8] ss:$12 sps:$4 sm:$0xff]   ;;  %v4389_v50 = vld [vmem:[#allocation6 + $0x140] ss:$12 sps:$4 sm:$0xff]  }
 0xacb   :  { %v1666_v29 = vadd.f32 %v1664_v27, %v179_v26  ;;  %v1961_v54 = vadd.f32 %v3661_v53, %v1955_v49  ;;  %v4388_v49 = vld [vmem:[#allocation6 + $0x128] ss:$12 sps:$4 sm:$0xff]   ;;  %v4391_v53 = vld [vmem:[#allocation6 + $0x170] ss:$12 sps:$4 sm:$0xff]  }
 0xacd   :  { %v1667_v33 = vpack.c.bf16 %v1666_v29, %v1665_v28  ;;  %v5254_v57 = vpack.c.bf16 %v1961_v54, %v1960_v56 }
 0xacf   :  { %4079 = vmatmul.mubr.bf16.vlgmr.msra.gmra.mrb[20].mxu0 %v1667_v33 }
 0xad0   :  { %2125 = vmatpush1.bf16.msra.mxu0 %v4336_v31  ;;  %2156 = vmatprep.mubr.bf16.mxu0 %v4785_v1 }
 0xad1   :  { %2126 = vmatprep.subr.bf16.mxu0 %v4341_v34 }
 0xad4   :  { %2127 = vmatpush1.bf16.msra.mxu0 %v4339_v35 }
 0xad5   :  { %2128 = vmatprep.subr.bf16.mxu0 %v4344_v36  ;;  %v4384_v36 = vld [vmem:[#allocation6 + $0xc8] ss:$12 sps:$4 sm:$0xff]  }
 0xad8   :  { %2129 = vmatpush1.bf16.msra.mxu0 %v4342_v38 }
 0xad9   :  { %2130 = vmatprep.subr.bf16.mxu0 %v4347_v37 }
 0xadc   :  { %2131 = vmatpush1.bf16.msra.mxu0 %v4345_v39 }
 0xadd   :  { %2132 = vmatprep.subr.bf16.mxu0 %v4350_v40 }
 0xae0   :  { %2133 = vmatpush1.bf16.msra.mxu0 %v4348_v42 }
 0xae1   :  { %2134 = vmatprep.subr.bf16.mxu0 %v4353_v43 }
 0xae4   :  { %2135 = vmatpush1.bf16.msra.mxu0 %v4351_v44  ;;  %v4385_v44 = vld [vmem:[#allocation6 + $0xe0] ss:$12 sps:$4 sm:$0xff]  }
 0xae5   :  { %2136 = vmatprep.subr.bf16.mxu0 %v4356_v45 }
 0xae8   :  { %2137 = vmatpush1.bf16.msra.mxu0 %v4354_v46 }
 0xae9   :  { %2138 = vmatprep.subr.bf16.mxu0 %v4359_v48  ;;  %v4387_v48 = vld [vmem:[#allocation6 + $0x110] ss:$12 sps:$4 sm:$0xff]  }
 0xaec   :  { %2139 = vmatpush1.bf16.msra.mxu0 %v4357_v51  ;;  %v4390_v51 = vld [vmem:[#allocation6 + $0x158] ss:$12 sps:$4 sm:$0xff]  }
 0xaed   :  { %4102 = vmatprep.subr.bf16.mxu0 %v4783_v0 }
 0xaef   :  { %2157 = vmatmul.mubr.bf16.vlgmr.msra.gmra.mrb[24].mxu0 %v5254_v57 }
 0xaf0   :  { %4104 = vmatprep.mubr.msk.bf16.mxu0 %vm4784_vm0, %v4783_v0 }
 0xba2   :  { %v1766_v11 = vpop.f32.mrb[20].mxu0 }
 0xba3   :  { %v1767_v12 = vadd.f32 %v1766_v11, %v180_v10  ;;  %v4080_v13 = vpop.f32.mrb[21].mxu0 }
 0xba4   :  { %v1769_v14 = vpop.f32.mrb[22].mxu0 }
 0xba5   :  { %v1773_v15 = vmul.f32 %v1767_v12, %v1767_v12  ;;  %v1770_v16 = vadd.f32 %v1769_v14, %v180_v10  ;;  %v4081_v17 = vpop.f32.mrb[23].mxu0 }
 0xba7   :  { %v1775_v18 = vmul.f32 %v1773_v15, %v1767_v12  ;;  %v1774_v19 = vmul.f32 %v1770_v16, %v1770_v16  ;;  %v4532_v15 = vld [vmem:[%s5511_s2] sm:$0xff] }
 0xba9   :  { %v1777_v20 = vmul.f32 0.044715, %v1775_v18  ;;  %v1776_v21 = vmul.f32 %v1774_v19, %v1770_v16  ;;  %v4533_v19 = vld [vmem:[%s5511_s2 + $0x8] sm:$0xff] }
 0xbab   :  { %v1779_v22 = vadd.f32 %v1777_v20, %v1767_v12  ;;  %v1778_v23 = vmul.f32 0.044715, %v1776_v21 }
 0xbad   :  { %v1781_v24 = vmul.f32 0.7978846, %v1779_v22  ;;  %v1780_v25 = vadd.f32 %v1778_v23, %v1770_v16 }
 0xbaf   :  { %4480 = vtanh.f32 %v1781_v24  ;;  %v1782_v41 = vmul.f32 0.7978846, %v1780_v25 }
 0xbb1   :  { %4482 = vtanh.f32 %v1782_v41 }
 0xbb9   :  { %v4481_v26 = vpop.eup %4480 }
 0xbba   :  { %v1785_v27 = vadd.f32 1.0, %v4481_v26 }
 0xbbb   :  { %v4483_v28 = vpop.eup %4482 }
 0xbbc   :  { %v1787_v29 = vmul.f32 0.5, %v1785_v27  ;;  %v1786_v31 = vadd.f32 1.0, %v4483_v28 }
 0xbbe   :  { %v1788_v33 = vmul.f32 0.5, %v1786_v31  ;;  %v1789_v34 = vmul.f32 %v1787_v29, %v1767_v12 }
 0xbc0   :  { %v1790_v35 = vmul.f32 %v1788_v33, %v1770_v16 }
 0xbc2   :  { %v2158_v38 = vpop.f32.mrb[24].mxu0  ;;  %v1791_v37 = vpack.c.bf16 %v1790_v35, %v1789_v34 }
 0xbc3   :  { %v2160_v39 = vpop.f32.mrb[25].mxu0 }
 0xbc4   :  { %v2162_v40 = vpop.f32.mrb[26].mxu0  ;;  %1932 = vmatmul.mubr.bf16.vlgmr.msra.gmra.mrb[48].mxu1 %v1791_v37 }
 0xbc5   :  { %v2208_v42 = vpack.c.bf16 %v2162_v40, %v2158_v38  ;;  %v2164_v43 = vpop.f32.mrb[27].mxu0  ;;  %4083 = vmatpush3.bf16.msra.mxu1 %v4384_v36  ;;  %4098 = vmatprep.mubr.msk.bf16.mxu1 %vm4784_vm0, %v4783_v0 }
 0xbc6   :  { %v2209_v45 = vpack.c.bf16 %v2164_v43, %v2160_v39  ;;  %4084 = vmatprep.subr.bf16.mxu1 %v4783_v0 }
 0xbc7   :  { %2276 = vrot.lane.b32.xlu1 %v2208_v42, %s4786_s0 }
 0xbc8   :  { %2279 = vrot.lane.b32.xlu0 %v2209_v45, %s4786_s0  ;;  %v2232_v46 = vsel %vm633_vm1, %v2209_v45, 0 }
 0xbc9   :  { %4085 = vmatpush3.bf16.msra.mxu1 %v4385_v44  ;;  %4103 = vmatpush3.bf16.xpose.msra.mxu0 %v2232_v46 }
 0xbca   :  { %4086 = vmatprep.subr.bf16.mxu1 %v4783_v0  ;;  %4114 = vmatprep.subr.bf16.mxu0 %v4783_v0 }
 0xbcb   :  { %2330 = vrot.lane.b32.xlu1 %v2209_v45, %s4769_s23 }
 0xbcc   :  { %2328 = vrot.lane.b32.xlu0 %v2208_v42, %s4769_s23 }
 0xbcd   :  { %4087 = vmatpush3.bf16.msra.mxu1 %v4386_v47 }
 0xbce   :  { %4088 = vmatprep.subr.bf16.mxu1 %v4783_v0 }
 0xbcf   :  { %2381 = vrot.lane.b32.xlu1 %v2209_v45, %s4787_s11 }
 0xbd0   :  { %2379 = vrot.lane.b32.xlu0 %v2208_v42, %s4787_s11  ;;  %4105 = vmatmul.mubr.msk.bf16.vlgmr.msra.gmra.mrb[28].mxu0 %vm633_vm1, %v2208_v42 }
 0xbd1   :  { %4089 = vmatpush3.bf16.msra.mxu1 %v4387_v48  ;;  %4116 = vmatprep.mubr.msk.bf16.mxu0 %vm4784_vm0, %v4783_v0 }
 0xbd2   :  { %4090 = vmatprep.subr.bf16.mxu1 %v4783_v0 }
 0xbd5   :  { %4091 = vmatpush3.bf16.msra.mxu1 %v4388_v49 }
 0xbd6   :  { %4092 = vmatprep.subr.bf16.mxu1 %v4783_v0 }
 0xbd9   :  { %4093 = vmatpush3.bf16.msra.mxu1 %v4389_v50 }
 0xbda   :  { %4094 = vmatprep.subr.bf16.mxu1 %v4783_v0 }
 0xbdd   :  { %4095 = vmatpush3.bf16.msra.mxu1 %v4390_v51 }
 0xbde   :  { %4096 = vmatprep.subr.bf16.mxu1 %v4783_v0 }
 0xbe1   :  { %4097 = vmatpush3.bf16.msra.mxu1 %v4391_v53 }
 0xbe2   :  { %4108 = vmatprep.subr.bf16.mxu1 %v4783_v0 }
 0xbe4   :  { %4099 = vmatmul.mubr.bf16.vlgmr.msra.gmra.mrb[52].mxu1 %v5254_v57 }
 0xbe5   :  { %4110 = vmatprep.mubr.msk.bf16.mxu1 %vm4784_vm0, %v4783_v0 }
 0xc39   :  { %v2277_v54 = vpop.permute.xlu1 %2276 }
 0xc3a   :  { %v2280_v56 = vpop.permute.xlu0 %2279 }
 0xc3b   :  { %v2285_v32 = vsel %vm633_vm1, %v2280_v56, 0 }
 0xc3c   :  { %4109 = vmatpush3.bf16.xpose.msra.mxu1 %v2285_v32 }
 0xc3d   :  { %v2331_v58 = vpop.permute.xlu1 %2330  ;;  %4120 = vmatprep.subr.bf16.mxu1 %v4783_v0 }
 0xc3e   :  { %v2336_v59 = vsel %vm633_vm1, %v2331_v58, 0  ;;  %v2329_v57 = vpop.permute.xlu0 %2328 }
 0xc3f   :  { %4115 = vmatpush3.bf16.xpose.msra.mxu0 %v2336_v59 }
 0xc40   :  { %4126 = vmatprep.subr.bf16.mxu0 %v4783_v0 }
 0xc41   :  { %v2382_v60 = vpop.permute.xlu1 %2381 }
 0xc42   :  { %v2387_v61 = vsel %vm633_vm1, %v2382_v60, 0  ;;  %v2380_v62 = vpop.permute.xlu0 %2379 }
 0xc43   :  { %4111 = vmatmul.mubr.msk.bf16.vlgmr.msra.gmra.mrb[56].mxu1 %vm633_vm1, %v2277_v54 }
 0xc44   :  { %4121 = vmatpush3.bf16.xpose.msra.mxu1 %v2387_v61  ;;  %4122 = vmatprep.mubr.msk.bf16.mxu1 %vm4784_vm0, %v4783_v0 }
 0xc45   :  { %4132 = vmatprep.subr.bf16.mxu1 %v4783_v0 }
 0xc46   :  { %4117 = vmatmul.mubr.msk.bf16.vlgmr.msra.gmra.mrb[32].mxu0 %vm633_vm1, %v2329_v57 }
 0xc47   :  { %4128 = vmatprep.mubr.msk.bf16.mxu0 %vm4784_vm0, %v4783_v0 }
 0xc4b   :  { %4123 = vmatmul.mubr.msk.bf16.vlgmr.msra.gmra.mrb[60].mxu1 %vm633_vm1, %v2380_v62 }
 0xc4c   :  { %4134 = vmatprep.mubr.msk.bf16.mxu1 %vm4784_vm0, %v4783_v0 }
 0xc97   :  { %v5306_v63 = vpop.f32.mrb[48].mxu1 }
 0xc98   :  { %v5308_v2 = vpop.f32.mrb[49].mxu1 }
 0xc99   :  { %v5310_v3 = vpop.f32.mrb[50].mxu1 }
 0xc9a   :  { %v5312_v4 = vpop.f32.mrb[51].mxu1 }
 0xca3   :  { %v2268_v5 = vpop.f32.mrb[28].mxu0 }
 0xca4   :  { %v4106_v6 = vpop.f32.mrb[29].mxu0  ;;  %v2269_v43 = vadd.f32 %v4532_v15, %v2268_v5 }
 0xca5   :  { %v2271_v7 = vpop.f32.mrb[30].mxu0 }
 0xca6   :  { %v4107_v8 = vpop.f32.mrb[31].mxu0  ;;  %v2272_v45 = vadd.f32 %v4533_v19, %v2271_v7  ;;  %v2430_v46 = vsel %vm836_vm2, %v2269_v43, -inf }
 0xca8   :  { %v2433_v48 = vsel %vm836_vm2, %v2272_v45, -inf }
 0xcb7   :  { %v2201_v9 = vpop.f32.mrb[52].mxu1 }
 0xcb8   :  { %v4100_v10 = vpop.f32.mrb[53].mxu1 }
 0xcb9   :  { %v2204_v11 = vpop.f32.mrb[54].mxu1 }
 0xcba   :  { %v5314_v12 = vpack.c.bf16 %v2204_v11, %v2201_v9  ;;  %v4101_v13 = vpop.f32.mrb[55].mxu1 }
 0xcbc   :  { %4127 = vmatpush3.bf16.msra.mxu0 %v5314_v12 }
 0xcbd   :  { %4138 = vmatprep.subr.bf16.mxu0 %v4783_v0 }
 0xd16   :  { %v2321_v14 = vpop.f32.mrb[56].mxu1 }
 0xd17   :  { %v2322_v16 = vadd.f32 %v4532_v15, %v2321_v14  ;;  %v4112_v17 = vpop.f32.mrb[57].mxu1 }
 0xd18   :  { %v2324_v18 = vpop.f32.mrb[58].mxu1 }
 0xd19   :  { %v2325_v20 = vadd.f32 %v4533_v19, %v2324_v18  ;;  %v4113_v21 = vpop.f32.mrb[59].mxu1  ;;  %v2372_v22 = vpop.f32.mrb[32].mxu0  ;;  %v2436_v23 = vsel %vm836_vm2, %v2322_v16, -inf }
 0xd1a   :  { %2437 = vmax.xlane.f32.xlu1 %v2436_v23  ;;  %v4118_v24 = vpop.f32.mrb[33].mxu0  ;;  %v2373_v47 = vadd.f32 %v4532_v15, %v2372_v22 }
 0xd1b   :  { %v2375_v25 = vpop.f32.mrb[34].mxu0  ;;  %v2439_v41 = vsel %vm836_vm2, %v2325_v20, -inf }
 0xd1c   :  { %2440 = vmax.xlane.f32.xlu0 %v2439_v41  ;;  %v4119_v26 = vpop.f32.mrb[35].mxu0  ;;  %v2376_v49 = vadd.f32 %v4533_v19, %v2375_v25  ;;  %v2442_v50 = vsel %vm836_vm2, %v2373_v47, -inf }
 0xd1e   :  { %v2423_v27 = vpop.f32.mrb[60].mxu1  ;;  %v2445_v53 = vsel %vm836_vm2, %v2376_v49, -inf }
 0xd1f   :  { %v4124_v28 = vpop.f32.mrb[61].mxu1  ;;  %v2424_v51 = vadd.f32 %v4532_v15, %v2423_v27 }
 0xd20   :  { %v2426_v29 = vpop.f32.mrb[62].mxu1 }
 0xd21   :  { %v4125_v31 = vpop.f32.mrb[63].mxu1  ;;  %v2427_v54 = vadd.f32 %v4533_v19, %v2426_v29  ;;  %v2448_v56 = vsel %vm836_vm2, %v2424_v51, -inf }
 0xd23   :  { %v2451_v32 = vsel %vm836_vm2, %v2427_v54, -inf }
 0xda7   :  { %v2438_v33 = vpop.xlane.xlu1 %2437 }
 0xda8   :  { %v2456_v34 = vsub.f32 %v2322_v16, %v2438_v33 }
 0xda9   :  { %v2441_v35 = vpop.xlane.xlu0 %2440 }
 0xdaa   :  { %v2466_v36 = vmul.f32 1.442695, %v2456_v34  ;;  %v2457_v38 = vsub.f32 %v2325_v20, %v2441_v35 }
 0xdac   :  { %4484 = vpow2.f32 %v2466_v36  ;;  %v2468_v37 = vmul.f32 1.442695, %v2457_v38 }
 0xdae   :  { %4486 = vpow2.f32 %v2468_v37 }
 0xdb6   :  { %v4485_v39 = vpop.eup %4484 }
 0xdb7   :  { %v2484_v40 = vsel %vm836_vm2, %v4485_v39, 0.0 }
 0xdb8   :  { %v4487_v42 = vpop.eup %4486  ;;  %2485 = vadd.xlane.f32.xlu0 %v2484_v40 }
 0xdb9   :  { %v2487_v44 = vsel %vm836_vm2, %v4487_v42, 0.0 }
 0xdba   :  { %2488 = vadd.xlane.f32.xlu1 %v2487_v44 }
 0xdbe   :  { %2431 = vmax.xlane.f32.xlu1 %v2430_v46 }
 0xdc2   :  { %2434 = vmax.xlane.f32.xlu1 %v2433_v48 }
 0xdc6   :  { %2443 = vmax.xlane.f32.xlu1 %v2442_v50 }
 0xdca   :  { %2446 = vmax.xlane.f32.xlu1 %v2445_v53 }
 0xdce   :  { %2568 = vrot.lane.b32.xlu0 %v5314_v12, %s4786_s0  ;;  %2449 = vmax.xlane.f32.xlu1 %v2448_v56 }
 0xdd2   :  { %2452 = vmax.xlane.f32.xlu1 %v2451_v32 }
 0xe45   :  { %v2486_v58 = vpop.xlane.xlu0 %2485 }
 0xe46   :  { %4488 = vrcp.f32 %v2486_v58 }
 0xe47   :  { %v2489_v59 = vpop.xlane.xlu1 %2488 }
 0xe48   :  { %4490 = vrcp.f32 %v2489_v59 }
 0xe49   :  { %v2569_v60 = vpop.permute.xlu0 %2568 }
 0xe4a   :  { %4133 = vmatpush3.bf16.msra.mxu1 %v2569_v60 }
 0xe4b   :  { %v2432_v61 = vpop.xlane.xlu1 %2431  ;;  %4146 = vmatprep.subr.bf16.mxu1 %v4783_v0 }
 0xe4c   :  { %v2454_v57 = vsub.f32 %v2269_v43, %v2432_v61 }
 0xe4e   :  { %v2462_v62 = vmul.f32 1.442695, %v2454_v57 }
 0xe4f   :  { %v2435_v5 = vpop.xlane.xlu1 %2434 }
 0xe50   :  { %v4489_v6 = vpop.eup %4488  ;;  %4492 = vpow2.f32 %v2462_v62  ;;  %v2455_v7 = vsub.f32 %v2272_v45, %v2435_v5 }
 0xe51   :  { %v2512_v10 = vmul.f32 %v4489_v6, %v4485_v39  ;;  %v4394_v39 = vld [vmem:[#allocation7 + $0x40] sm:$0xff]  }
 0xe52   :  { %v4491_v8 = vpop.eup %4490  ;;  %v2464_v9 = vmul.f32 1.442695, %v2455_v7 }
 0xe53   :  { %v2513_v11 = vmul.f32 %v4491_v8, %v4487_v42  ;;  %v2444_v13 = vpop.xlane.xlu1 %2443 }
 0xe54   :  { %4494 = vpow2.f32 %v2464_v9  ;;  %v2458_v14 = vsub.f32 %v2373_v47, %v2444_v13  ;;  %v4392_v47 = vld [vmem:[#allocation7 + $0x50] sm:$0xff]  }
 0xe55   :  { %v2519_v15 = vpack.c.bf16 %v2513_v11, %v2512_v10 }
 0xe56   :  { %v2470_v16 = vmul.f32 1.442695, %v2458_v14  ;;  %v4395_v14 = vld [vmem:[#allocation7 + $0x48] sm:$0xff]  }
 0xe57   :  { %4135 = vmatmul.mubr.msk.bf16.vlgmr.msra.gmra.mrb[64].mxu1 %vm836_vm2, %v2519_v15  ;;  %v2447_v17 = vpop.xlane.xlu1 %2446 }
 0xe58   :  { %4496 = vpow2.f32 %v2470_v16  ;;  %v2459_v18 = vsub.f32 %v2376_v49, %v2447_v17  ;;  %4150 = vmatprep.mubr.msk.bf16.mxu1 %vm4784_vm0, %v4783_v0  ;;  %4147 = vmatpush3.bf16.msra.mxu1 %v4394_v39  ;;  %v4393_v49 = vld [vmem:[#allocation7 + $0x58] sm:$0xff]  }
 0xe59   :  { %4148 = vmatprep.subr.bf16.mxu1 %v4783_v0 }
 0xe5a   :  { %v4493_v19 = vpop.eup %4492  ;;  %v2472_v20 = vmul.f32 1.442695, %v2459_v18  ;;  %v4396_v18 = vld [vmem:[#allocation7 + $0x60] sm:$0xff]  }
 0xe5b   :  { %v2450_v21 = vpop.xlane.xlu1 %2449  ;;  %v2478_v22 = vsel %vm836_vm2, %v4493_v19, 0.0 }
 0xe5c   :  { %4498 = vpow2.f32 %v2472_v20  ;;  %v2460_v23 = vsub.f32 %v2424_v51, %v2450_v21  ;;  %2479 = vadd.xlane.f32.xlu0 %v2478_v22  ;;  %4149 = vmatpush3.bf16.msra.mxu1 %v4395_v14  ;;  %v4397_v21 = vld [vmem:[#allocation7 + $0x68] sm:$0xff]  }
 0xe5d   :  { %4160 = vmatprep.subr.bf16.mxu1 %v4783_v0 }
 0xe5e   :  { %v4495_v24 = vpop.eup %4494  ;;  %v2474_v25 = vmul.f32 1.442695, %v2460_v23 }
 0xe5f   :  { %v2453_v41 = vpop.xlane.xlu1 %2452  ;;  %v2481_v26 = vsel %vm836_vm2, %v4495_v24, 0.0 }
 0xe60   :  { %4500 = vpow2.f32 %v2474_v25  ;;  %v2461_v27 = vsub.f32 %v2427_v54, %v2453_v41  ;;  %2482 = vadd.xlane.f32.xlu1 %v2481_v26 }
 0xe62   :  { %v4497_v28 = vpop.eup %4496  ;;  %v2476_v29 = vmul.f32 1.442695, %v2461_v27 }
 0xe63   :  { %v2490_v31 = vsel %vm836_vm2, %v4497_v28, 0.0 }
 0xe64   :  { %4502 = vpow2.f32 %v2476_v29  ;;  %2491 = vadd.xlane.f32.xlu1 %v2490_v31 }
 0xe66   :  { %v4499_v33 = vpop.eup %4498 }
 0xe67   :  { %v2493_v34 = vsel %vm836_vm2, %v4499_v33, 0.0 }
 0xe68   :  { %2494 = vadd.xlane.f32.xlu1 %v2493_v34 }
 0xe6a   :  { %v4501_v35 = vpop.eup %4500 }
 0xe6b   :  { %v2496_v36 = vsel %vm836_vm2, %v4501_v35, 0.0 }
 0xe6c   :  { %2497 = vadd.xlane.f32.xlu1 %v2496_v36 }
 0xe6e   :  { %v4503_v38 = vpop.eup %4502 }
 0xe6f   :  { %v2499_v37 = vsel %vm836_vm2, %v4503_v38, 0.0 }
 0xe70   :  { %2500 = vadd.xlane.f32.xlu1 %v2499_v37 }
 0xe72   :  { %2834 = vrot.lane.b32.xlu0 %v5314_v12, %s4787_s11 }
 0xe81   :  { %2728 = vrot.lane.b32.xlu1 %v5314_v12, %s4769_s23 }
 0xee9   :  { %v2480_v40 = vpop.xlane.xlu0 %2479 }
 0xeea   :  { %4504 = vrcp.f32 %v2480_v40 }
 0xeed   :  { %v2483_v42 = vpop.xlane.xlu1 %2482  ;;  %v2835_v8 = vpop.permute.xlu0 %2834 }
 0xeee   :  { %4506 = vrcp.f32 %v2483_v42 }
 0xef1   :  { %v2492_v12 = vpop.xlane.xlu1 %2491 }
 0xef4   :  { %v4505_v43 = vpop.eup %4504 }
 0xef5   :  { %v2510_v45 = vmul.f32 %v4505_v43, %v4493_v19  ;;  %v2495_v50 = vpop.xlane.xlu1 %2494 }
 0xef6   :  { %4508 = vrcp.f32 %v2495_v50 }
 0xef7   :  { %4510 = vrcp.f32 %v2492_v12 }
 0xef8   :  { %v4507_v44 = vpop.eup %4506 }
 0xef9   :  { %v2511_v46 = vmul.f32 %v4507_v44, %v4495_v24  ;;  %v2498_v51 = vpop.xlane.xlu1 %2497 }
 0xefb   :  { %v2518_v48 = vpack.c.bf16 %v2511_v46, %v2510_v45 }
 0xefd   :  { %4129 = vmatmul.mubr.msk.bf16.vlgmr.msra.gmra.mrb[36].mxu0 %vm836_vm2, %v2518_v48  ;;  %v2501_v53 = vpop.xlane.xlu1 %2500 }
 0xefe   :  { %4139 = vmatpush3.bf16.msra.mxu0 %v4392_v47  ;;  %4142 = vmatprep.mubr.msk.bf16.mxu0 %vm4784_vm0, %v4783_v0  ;;  %4512 = vrcp.f32 %v2501_v53 }
 0xeff   :  { %4140 = vmatprep.subr.bf16.mxu0 %v4783_v0  ;;  %4514 = vrcp.f32 %v2498_v51  ;;  %v3706_v51 = vld [vmem:[#allocation15 + $0xc] ss:$0 sm:$0xff] }
 0xf00   :  { %v4509_v60 = vpop.eup %4508 }
 0xf01   :  { %v2729_v61 = vpop.permute.xlu1 %2728  ;;  %v4511_v57 = vpop.eup %4510  ;;  %v2515_v62 = vmul.f32 %v4509_v60, %v4499_v33  ;;  %v4399_v33 = vld [vmem:[#allocation7 + $0x78] sm:$0xff]  }
 0xf02   :  { %4141 = vmatpush3.bf16.msra.mxu0 %v4393_v49  ;;  %v2514_v5 = vmul.f32 %v4511_v57, %v4497_v28  ;;  %v4398_v28 = vld [vmem:[#allocation7 + $0x70] sm:$0xff]  }
 0xf03   :  { %4154 = vmatprep.subr.bf16.mxu0 %v4783_v0 }
 0xf04   :  { %v2520_v6 = vpack.c.bf16 %v2515_v62, %v2514_v5 }
 0xf08   :  { %v4513_v7 = vpop.eup %4512 }
 0xf09   :  { %v4515_v9 = vpop.eup %4514  ;;  %v2517_v10 = vmul.f32 %v4513_v7, %v4503_v38  ;;  %v4400_v7 = vld [vmem:[#allocation9 + $0x40] sm:$0xff]  }
 0xf0a   :  { %v2516_v11 = vmul.f32 %v4515_v9, %v4501_v35  ;;  %v4404_v9 = vld [vmem:[#allocation9 + $0x60] sm:$0xff]  }
 0xf0c   :  { %v2521_v13 = vpack.c.bf16 %v2517_v10, %v2516_v11  ;;  %v4405_v10 = vld [vmem:[#allocation9 + $0x68] sm:$0xff]   ;;  %v4406_v11 = vld [vmem:[#allocation9 + $0x70] sm:$0xff]  }
 0xf2a   :  { %v2608_v54 = vpop.f32.mrb[64].mxu1 }
 0xf2b   :  { %v4136_v56 = vpop.f32.mrb[65].mxu1 }
 0xf2c   :  { %v2611_v32 = vpop.f32.mrb[66].mxu1 }
 0xf2d   :  { %v2615_v58 = vpack.c.bf16 %v2611_v32, %v2608_v54  ;;  %v4137_v59 = vpop.f32.mrb[67].mxu1 }
 0xf2f   :  { %4143 = vmatmul.mubr.msk.bf16.vlgmr.msra.gmra.mrb[40].mxu0 %vm633_vm1, %v2615_v58 }
 0xf30   :  { %4155 = vmatpush3.bf16.msra.mxu0 %v2729_v61  ;;  %4156 = vmatprep.mubr.msk.bf16.mxu0 %vm4784_vm0, %v4783_v0 }
 0xf31   :  { %4168 = vmatprep.subr.bf16.mxu0 %v4783_v0 }
 0xf37   :  { %4157 = vmatmul.mubr.msk.bf16.vlgmr.msra.gmra.mrb[44].mxu0 %vm836_vm2, %v2520_v6 }
 0xf38   :  { %4169 = vmatpush3.bf16.msra.mxu0 %v2835_v8  ;;  %4170 = vmatprep.mubr.msk.bf16.mxu0 %vm4784_vm0, %v4783_v0  ;;  %v4403_v8 = vld [vmem:[#allocation9 + $0x58] sm:$0xff]  }
 0xf39   :  { %4182 = vmatprep.subr.bf16.mxu0 %v4783_v0 }
 0xf3f   :  { %4171 = vmatmul.mubr.msk.bf16.vlgmr.msra.gmra.mrb[48].mxu0 %vm836_vm2, %v2521_v13  ;;  %v4407_v13 = vld [vmem:[#allocation9 + $0x78] sm:$0xff]  }
 0xf40   :  { %4198 = vmatprep.mubr.msk.bf16.mxu0 %vm4784_vm0, %v4783_v0  ;;  %4183 = vmatpush3.bf16.msra.mxu0 %v4400_v7 }
 0xf41   :  { %4184 = vmatprep.subr.bf16.mxu0 %v4783_v0 }
 0xfd0   :  { %v2559_v15 = vpop.f32.mrb[36].mxu0 }
 0xfd1   :  { %v4130_v16 = vpop.f32.mrb[37].mxu0 }
 0xfd2   :  { %v2562_v17 = vpop.f32.mrb[38].mxu0 }
 0xfd3   :  { %v2566_v19 = vpack.c.bf16 %v2562_v17, %v2559_v15  ;;  %v4131_v20 = vpop.f32.mrb[39].mxu0 }
 0xfd5   :  { %4151 = vmatmul.mubr.msk.bf16.vlgmr.msra.gmra.mrb[68].mxu1 %vm633_vm1, %v2566_v19 }
 0xfd6   :  { %4161 = vmatpush3.bf16.msra.mxu1 %v4396_v18  ;;  %4164 = vmatprep.mubr.msk.bf16.mxu1 %vm4784_vm0, %v4783_v0 }
 0xfd7   :  { %4162 = vmatprep.subr.bf16.mxu1 %v4783_v0 }
 0xfda   :  { %4163 = vmatpush3.bf16.msra.mxu1 %v4397_v21 }
 0xfdb   :  { %4174 = vmatprep.subr.bf16.mxu1 %v4783_v0 }
0x1002   :  { %v2665_v22 = vpop.f32.mrb[40].mxu0 }
0x1003   :  { %v4144_v23 = vpop.f32.mrb[41].mxu0 }
0x1004   :  { %v2668_v24 = vpop.f32.mrb[42].mxu0 }
0x1005   :  { %v4145_v25 = vpop.f32.mrb[43].mxu0 }
0x100a   :  { %v2768_v41 = vpop.f32.mrb[44].mxu0 }
0x100b   :  { %v4158_v26 = vpop.f32.mrb[45].mxu0 }
0x100c   :  { %v2771_v27 = vpop.f32.mrb[46].mxu0 }
0x100d   :  { %v2775_v29 = vpack.c.bf16 %v2771_v27, %v2768_v41  ;;  %v4159_v31 = vpop.f32.mrb[47].mxu0 }
0x100f   :  { %4165 = vmatmul.mubr.msk.bf16.vlgmr.msra.gmra.mrb[72].mxu1 %vm633_vm1, %v2775_v29 }
0x1010   :  { %4175 = vmatpush3.bf16.msra.mxu1 %v4398_v28  ;;  %4178 = vmatprep.mubr.msk.bf16.mxu1 %vm4784_vm0, %v4783_v0 }
0x1011   :  { %4176 = vmatprep.subr.bf16.mxu1 %v4783_v0 }
0x1012   :  { %v2874_v34 = vpop.f32.mrb[48].mxu0 }
0x1013   :  { %v4172_v35 = vpop.f32.mrb[49].mxu0 }
0x1014   :  { %v2877_v36 = vpop.f32.mrb[50].mxu0  ;;  %4177 = vmatpush3.bf16.msra.mxu1 %v4399_v33 }
0x1015   :  { %v2881_v38 = vpack.c.bf16 %v2877_v36, %v2874_v34  ;;  %v4173_v37 = vpop.f32.mrb[51].mxu0  ;;  %4202 = vmatprep.subr.bf16.mxu1 %v4783_v0  ;;  %v3707_v34 = vld [vmem:[#allocation15 + $0xa] ss:$0 sm:$0xff] }
0x1017   :  { %4179 = vmatmul.mubr.msk.bf16.vlgmr.msra.gmra.mrb[76].mxu1 %vm633_vm1, %v2881_v38 }
0x1018   :  { %4218 = vmatprep.mubr.msk.bf16.mxu1 %vm4784_vm0, %v4783_v0 }
0x10a8   :  { %v2721_v39 = vpop.f32.mrb[68].mxu1 }
0x10a9   :  { %v2722_v40 = vadd.f32 %v2721_v39, %v2665_v22  ;;  %v4152_v42 = vpop.f32.mrb[69].mxu1  ;;  %v3708_v39 = vld [vmem:[#allocation15 + $0xb] ss:$0 sm:$0xff] }
0x10aa   :  { %v2724_v43 = vpop.f32.mrb[70].mxu1 }
0x10ab   :  { %v2725_v44 = vadd.f32 %v2724_v43, %v2668_v24  ;;  %v4153_v45 = vpop.f32.mrb[71].mxu1 }
0x10ac   :  { %v4534_v45 = vld [vmem:[%s5518_s9] sm:$0xff]  }
0x10e2   :  { %v2825_v46 = vpop.f32.mrb[72].mxu1 }
0x10e3   :  { %v2832_v47 = vadd.f32 %v2825_v46, %v2722_v40  ;;  %v4166_v48 = vpop.f32.mrb[73].mxu1  ;;  %v4535_v46 = vld [vmem:[%s5518_s9 + $0x8] sm:$0xff]  }
0x10e4   :  { %v2828_v49 = vpop.f32.mrb[74].mxu1  ;;  %v4537_v48 = vld [vmem:[%s5518_s9 + $0x18] sm:$0xff]  }
0x10e5   :  { %v2833_v12 = vadd.f32 %v2828_v49, %v2725_v44  ;;  %v4167_v50 = vpop.f32.mrb[75].mxu1  ;;  %v4538_v49 = vld [vmem:[%s5518_s9 + $0x20] sm:$0xff]  }
0x10e6   :  { %v4540_v50 = vld [vmem:[%s5518_s9 + $0x30] sm:$0xff]  }
0x10ea   :  { %v2931_v53 = vpop.f32.mrb[76].mxu1 }
0x10eb   :  { %v2938_v54 = vadd.f32 %v2931_v53, %v2832_v47  ;;  %v4180_v56 = vpop.f32.mrb[77].mxu1  ;;  %v4536_v47 = vld [vmem:[%s5518_s9 + $0x10] sm:$0xff]  }
0x10ec   :  { %v2934_v32 = vpop.f32.mrb[78].mxu1  ;;  %v4408_v53 = vld [vmem:[#allocation10 + $0x40] sm:$0xff]   ;;  %v4410_v56 = vld [vmem:[#allocation10 + $0x50] sm:$0xff]  }
0x10ed   :  { %v2944_v58 = vadd.f32 %v3706_v51, %v2938_v54  ;;  %v2939_v59 = vadd.f32 %v2934_v32, %v2833_v12  ;;  %v4181_v60 = vpop.f32.mrb[79].mxu1  ;;  %v4539_v12 = vld [vmem:[%s5518_s9 + $0x28] sm:$0xff]   ;;  %4203 = vmatpush3.bf16.msra.mxu1 %v4408_v53  ;;  %v4409_v54 = vld [vmem:[#allocation10 + $0x48] sm:$0xff]  }
0x10ee   :  { %4204 = vmatprep.subr.bf16.mxu1 %v4783_v0  ;;  %v4411_v32 = vld [vmem:[#allocation10 + $0x58] sm:$0xff]  }
0x10ef   :  { %v5382_v61 = vadd.f32 %v2944_v58, %v5203_v52  ;;  %v2945_v57 = vadd.f32 %v3706_v51, %v2939_v59  ;;  %v4401_v52 = vld [vmem:[#allocation9 + $0x48] sm:$0xff]   ;;  %v4412_v58 = vld [vmem:[#allocation10 + $0x60] sm:$0xff]   ;;  %v4414_v59 = vld [vmem:[#allocation10 + $0x70] sm:$0xff]  }
0x10f0   :  { %4185 = vmatpush3.bf16.msra.mxu0 %v4401_v52  ;;  %v4541_v51 = vld [vmem:[%s5518_s9 + $0x38] sm:$0xff]   ;;  %v4415_v60 = vld [vmem:[#allocation10 + $0x78] sm:$0xff]  }
0x10f1   :  { %v5385_v62 = vadd.f32 %v2945_v57, %v5206_v55  ;;  %2948 = vadd.xlane.f32.xlu1 %v5382_v61  ;;  %v2954_v5 = vmul.f32 %v5382_v61, %v5382_v61  ;;  %4186 = vmatprep.subr.bf16.mxu0 %v4783_v0  ;;  %v4402_v55 = vld [vmem:[#allocation9 + $0x50] sm:$0xff]   ;;  %v4416_v57 = vld [vmem:[#allocation12 + $0x40] sm:$0xff]   ;;  %v4431_v53 = vld [vmem:[#allocation12 + $0x38] sm:$0xff]  }
0x10f2   :  { %4205 = vmatpush3.bf16.msra.mxu1 %v4409_v54 }
0x10f3   :  { %2950 = vadd.xlane.f32.xlu0 %v5385_v62  ;;  %v2955_v6 = vmul.f32 %v5385_v62, %v5385_v62  ;;  %4206 = vmatprep.subr.bf16.mxu1 %v4783_v0 }
0x10f4   :  { %4187 = vmatpush3.bf16.msra.mxu0 %v4402_v55 }
0x10f5   :  { %2956 = vadd.xlane.f32.xlu1 %v2954_v5  ;;  %4188 = vmatprep.subr.bf16.mxu0 %v4783_v0  ;;  %v3709_v5 = vld [vmem:[#allocation15 + $0xd] ss:$0 sm:$0xff] }
0x10f6   :  { %4207 = vmatpush3.bf16.msra.mxu1 %v4410_v56 }
0x10f7   :  { %4208 = vmatprep.subr.bf16.mxu1 %v4783_v0 }
0x10f8   :  { %4189 = vmatpush3.bf16.msra.mxu0 %v4403_v8 }
0x10f9   :  { %2958 = vadd.xlane.f32.xlu1 %v2955_v6  ;;  %4190 = vmatprep.subr.bf16.mxu0 %v4783_v0 }
0x10fa   :  { %4209 = vmatpush3.bf16.msra.mxu1 %v4411_v32 }
0x10fb   :  { %4210 = vmatprep.subr.bf16.mxu1 %v4783_v0 }
0x10fc   :  { %4191 = vmatpush3.bf16.msra.mxu0 %v4404_v9 }
0x10fd   :  { %4192 = vmatprep.subr.bf16.mxu0 %v4783_v0 }
0x10fe   :  { %4211 = vmatpush3.bf16.msra.mxu1 %v4412_v58  ;;  %v3718_v58 = vld [vmem:[#allocation15 + $0xe] ss:$0 sm:$0xff] }
0x10ff   :  { %4212 = vmatprep.subr.bf16.mxu1 %v4783_v0 }
0x1100   :  { %4193 = vmatpush3.bf16.msra.mxu0 %v4405_v10 }
0x1101   :  { %4194 = vmatprep.subr.bf16.mxu0 %v4783_v0 }
0x1104   :  { %4195 = vmatpush3.bf16.msra.mxu0 %v4406_v11 }
0x1105   :  { %4196 = vmatprep.subr.bf16.mxu0 %v4783_v0 }
0x1108   :  { %4197 = vmatpush3.bf16.msra.mxu0 %v4407_v13 }
0x1109   :  { %4222 = vmatprep.subr.bf16.mxu0 %v4783_v0 }
0x117e   :  { %v2949_v14 = vpop.xlane.xlu1 %2948 }
0x117f   :  { %v2952_v15 = vmul.f32 0.0078125, %v2949_v14 }
0x1180   :  { %v2951_v16 = vpop.xlane.xlu0 %2950 }
0x1181   :  { %v2962_v18 = vmul.f32 %v2952_v15, %v2952_v15  ;;  %v2953_v19 = vmul.f32 0.0078125, %v2951_v16  ;;  %v2968_v29 = vsub.f32 %v5382_v61, %v2952_v15 }
0x1182   :  { %v2957_v17 = vpop.xlane.xlu1 %2956 }
0x1183   :  { %v2960_v20 = vmul.f32 0.0078125, %v2957_v17  ;;  %v2963_v23 = vmul.f32 %v2953_v19, %v2953_v19  ;;  %v2969_v35 = vsub.f32 %v5385_v62, %v2953_v19 }
0x1185   :  { %v2964_v21 = vsub.f32 %v2960_v20, %v2962_v18  ;;  %v1809_v20 = vlaneseq }
0x1186   :  { %v2959_v22 = vpop.xlane.xlu1 %2958 }
0x1187   :  { %v2966_v24 = vmax.f32 %v2964_v21, 0.0  ;;  %v2961_v25 = vmul.f32 0.0078125, %v2959_v22  ;;  %v1810_v21 = vshrl.u32 %v1809_v20, 7 }
0x1189   :  { %v2970_v41 = vadd.f32 1e-05, %v2966_v24  ;;  %v2965_v26 = vsub.f32 %v2961_v25, %v2963_v23  ;;  %v1815_v23 = vsub.s32 1, %v1810_v21  ;;  %v3560_v24 = vld [vmem:[%s5522_s13 + $0x5] ss:$8 sm:$0x3] }
0x118b   :  { %4516 = vrsqrt.f32 %v2970_v41  ;;  %v2967_v27 = vmax.f32 %v2965_v26, 0.0 }
0x118d   :  { %v2971_v28 = vadd.f32 1e-05, %v2967_v27 }
0x118f   :  { %4518 = vrsqrt.f32 %v2971_v28  ;;  %v5447_v28 = vrot.slane %v3560_v24, %v1815_v23 }
0x1195   :  { %v4517_v31 = vpop.eup %4516 }
0x1196   :  { %v2974_v33 = vmul.f32 %v4517_v31, %v2968_v29  ;;  %v5451_v31 = vadd.f32 %v5312_v4, %v5447_v28  ;;  %v4421_v4 = vld [vmem:[#allocation12 + $0x10] sm:$0xff]  }
0x1198   :  { %v2980_v37 = vmul.f32 %v3707_v34, %v2974_v33 }
0x1199   :  { %v4519_v36 = vpop.eup %4518 }
0x119a   :  { %v2975_v38 = vmul.f32 %v4519_v36, %v2969_v35  ;;  %v2986_v42 = vadd.f32 %v3708_v39, %v2980_v37  ;;  %v5455_v35 = vadd.f32 %v5308_v2, %v5447_v28  ;;  %v4417_v36 = vld [vmem:[#allocation12] sm:$0xff]   ;;  %v4418_v37 = vld [vmem:[#allocation12 + $0x48] sm:$0xff]  }
0x119b   :  { %v4424_v2 = vld [vmem:[#allocation12 + $0x60] sm:$0xff]  }
0x119c   :  { %v2981_v40 = vmul.f32 %v3707_v34, %v2975_v38 }
0x119e   :  { %v2987_v43 = vadd.f32 %v3708_v39, %v2981_v40  ;;  %v3305_v39 = vpack.c.bf16 %v5451_v31, %v5455_v35  ;;  %v4419_v40 = vld [vmem:[#allocation12 + $0x8] sm:$0xff]  }
0x11a0   :  { %v2988_v44 = vpack.c.bf16 %v2987_v43, %v2986_v42  ;;  %v4420_v42 = vld [vmem:[#allocation12 + $0x50] sm:$0xff]   ;;  %v4422_v43 = vld [vmem:[#allocation12 + $0x58] sm:$0xff]  }
0x11a2   :  { %4199 = vmatmul.mubr.bf16.vlgmr.msra.gmra.mrb[52].mxu0 %v2988_v44  ;;  %v4423_v44 = vld [vmem:[#allocation12 + $0x18] sm:$0xff]  }
0x11a3   :  { %4223 = vmatpush3.bf16.msra.mxu0 %v4534_v45  ;;  %4238 = vmatprep.mubr.msk.bf16.mxu0 %vm4784_vm0, %v4783_v0  ;;  %v4425_v45 = vld [vmem:[#allocation12 + $0x20] sm:$0xff]  }
0x11a4   :  { %4224 = vmatprep.subr.bf16.mxu0 %v4783_v0 }
0x11a7   :  { %4225 = vmatpush3.bf16.msra.mxu0 %v4535_v46  ;;  %v4426_v46 = vld [vmem:[#allocation12 + $0x68] sm:$0xff]  }
0x11a8   :  { %4226 = vmatprep.subr.bf16.mxu0 %v4783_v0 }
0x11ab   :  { %4227 = vmatpush3.bf16.msra.mxu0 %v4536_v47  ;;  %v4427_v47 = vld [vmem:[#allocation12 + $0x28] sm:$0xff]  }
0x11ac   :  { %4228 = vmatprep.subr.bf16.mxu0 %v4783_v0 }
0x11af   :  { %4229 = vmatpush3.bf16.msra.mxu0 %v4537_v48  ;;  %v4428_v48 = vld [vmem:[#allocation12 + $0x70] sm:$0xff]  }
0x11b0   :  { %4230 = vmatprep.subr.bf16.mxu0 %v4783_v0 }
0x11b3   :  { %4231 = vmatpush3.bf16.msra.mxu0 %v4538_v49  ;;  %v1811_v49 = vsub.s32 0, %v1810_v21 }
0x11b4   :  { %4232 = vmatprep.subr.bf16.mxu0 %v4783_v0 }
0x11b7   :  { %4233 = vmatpush3.bf16.msra.mxu0 %v4539_v12  ;;  %v4429_v12 = vld [vmem:[#allocation12 + $0x30] sm:$0xff]  }
0x11b8   :  { %4234 = vmatprep.subr.bf16.mxu0 %v4783_v0 }
0x11bb   :  { %4235 = vmatpush3.bf16.msra.mxu0 %v4540_v50  ;;  %v4430_v50 = vld [vmem:[#allocation12 + $0x78] sm:$0xff]  }
0x11bc   :  { %4236 = vmatprep.subr.bf16.mxu0 %v4783_v0 }
0x11bf   :  { %4237 = vmatpush3.bf16.msra.mxu0 %v4541_v51  ;;  %v5459_v51 = vrot.slane %v3560_v24, %v1811_v49  ;;  %v4550_v49 = vld [vmem:[#allocation13 + $0x30] ss:$8 sps:$4 sm:$0xff]  }
0x11c0   :  { %3496 = vmatprep.subr.bf16.mxu0 %v5260_v30  ;;  %v4413_v30 = vld [vmem:[#allocation10 + $0x68] sm:$0xff]  }
0x11c1   :  { %4213 = vmatpush3.bf16.msra.mxu1 %v4413_v30  ;;  %v5463_v54 = vadd.f32 %v5310_v3, %v5459_v51  ;;  %v5467_v56 = vadd.f32 %v5306_v63, %v5459_v51 }
0x11c2   :  { %4214 = vmatprep.subr.bf16.mxu1 %v4783_v0 }
0x11c3   :  { %v3304_v32 = vpack.c.bf16 %v5463_v54, %v5467_v56 }
0x11c5   :  { %4215 = vmatpush3.bf16.msra.mxu1 %v4414_v59 }
0x11c6   :  { %4216 = vmatprep.subr.bf16.mxu1 %v4783_v0 }
0x11c9   :  { %4217 = vmatpush3.bf16.msra.mxu1 %v4415_v60 }
0x11ca   :  { %3880 = vmatprep.subr.bf16.mxu1 %v4416_v57 }
0x1275   :  { %v3092_v6 = vpop.f32.mrb[52].mxu0 }
0x1276   :  { %v3093_v7 = vadd.f32 %v3709_v5, %v3092_v6  ;;  %v4200_v52 = vpop.f32.mrb[53].mxu0 }
0x1277   :  { %v3095_v55 = vpop.f32.mrb[54].mxu0 }
0x1278   :  { %v3099_v8 = vmul.f32 %v3093_v7, %v3093_v7  ;;  %v3096_v9 = vadd.f32 %v3709_v5, %v3095_v55  ;;  %v4201_v10 = vpop.f32.mrb[55].mxu0 }
0x127a   :  { %v3101_v11 = vmul.f32 %v3099_v8, %v3093_v7  ;;  %v3100_v13 = vmul.f32 %v3096_v9, %v3096_v9 }
0x127c   :  { %v3103_v14 = vmul.f32 0.044715, %v3101_v11  ;;  %v3102_v15 = vmul.f32 %v3100_v13, %v3096_v9 }
0x127e   :  { %v3105_v16 = vadd.f32 %v3103_v14, %v3093_v7  ;;  %v3104_v17 = vmul.f32 0.044715, %v3102_v15 }
0x1280   :  { %v3107_v18 = vmul.f32 0.7978846, %v3105_v16  ;;  %v3106_v0 = vadd.f32 %v3104_v17, %v3096_v9 }
0x1282   :  { %4520 = vtanh.f32 %v3107_v18  ;;  %v3108_v19 = vmul.f32 0.7978846, %v3106_v0 }
0x1284   :  { %4522 = vtanh.f32 %v3108_v19 }
0x128c   :  { %v4521_v22 = vpop.eup %4520 }
0x128d   :  { %v3111_v25 = vadd.f32 1.0, %v4521_v22 }
0x128e   :  { %v4523_v41 = vpop.eup %4522 }
0x128f   :  { %v3113_v26 = vmul.f32 0.5, %v3111_v25  ;;  %v3112_v27 = vadd.f32 1.0, %v4523_v41 }
0x1291   :  { %v3114_v29 = vmul.f32 0.5, %v3112_v27  ;;  %v3115_v33 = vmul.f32 %v3113_v26, %v3093_v7 }
0x1293   :  { %v3116_v34 = vmul.f32 %v3114_v29, %v3096_v9 }
0x1295   :  { %v3117_v38 = vpack.c.bf16 %v3116_v34, %v3115_v33 }
0x1297   :  { %4219 = vmatmul.mubr.bf16.vlgmr.msra.gmra.mrb[80].mxu1 %v3117_v38  ;;  %v4542_v38 = vld [vmem:[%s5522_s13 + $0x2] ss:$0 sm:$0xff] }
0x1298   :  { %3881 = vmatpush3.bf16.msra.mxu1 %v4417_v36  ;;  %3466 = vmatprep.mubr.bf16.mxu1 %v3305_v39 }
0x1299   :  { %3882 = vmatprep.subr.bf16.mxu1 %v4418_v37 }
0x129c   :  { %3883 = vmatpush3.bf16.msra.mxu1 %v4419_v40  ;;  %v4543_v40 = vld [vmem:[%s5522_s13 + $0x3] ss:$0 sm:$0xff] }
0x129d   :  { %3884 = vmatprep.subr.bf16.mxu1 %v4420_v42 }
0x12a0   :  { %3885 = vmatpush3.bf16.msra.mxu1 %v4421_v4 }
0x12a1   :  { %3886 = vmatprep.subr.bf16.mxu1 %v4422_v43 }
0x12a4   :  { %3887 = vmatpush3.bf16.msra.mxu1 %v4423_v44  ;;  %v4544_v44 = vld [vmem:[#allocation13] ss:$8 sps:$4 sm:$0xff]  }
0x12a5   :  { %3888 = vmatprep.subr.bf16.mxu1 %v4424_v2  ;;  %v4545_v2 = vld [vmem:[#allocation13 + $0x14] ss:$8 sps:$4 sm:$0xff]  }
0x12a8   :  { %3889 = vmatpush3.bf16.msra.mxu1 %v4425_v45  ;;  %v4546_v45 = vld [vmem:[#allocation13 + $0x10] ss:$8 sps:$4 sm:$0xff]  }
0x12a9   :  { %3890 = vmatprep.subr.bf16.mxu1 %v4426_v46  ;;  %v4547_v46 = vld [vmem:[#allocation13 + $0x24] ss:$8 sps:$4 sm:$0xff]  }
0x12ac   :  { %3891 = vmatpush3.bf16.msra.mxu1 %v4427_v47  ;;  %v4548_v47 = vld [vmem:[#allocation13 + $0x20] ss:$8 sps:$4 sm:$0xff]  }
0x12ad   :  { %3892 = vmatprep.subr.bf16.mxu1 %v4428_v48  ;;  %v4549_v48 = vld [vmem:[#allocation13 + $0x34] ss:$8 sps:$4 sm:$0xff]  }
0x12b0   :  { %3893 = vmatpush3.bf16.msra.mxu1 %v4429_v12  ;;  %v4551_v12 = vld [vmem:[#allocation13 + $0x44] ss:$8 sps:$4 sm:$0xff]  }
0x12b1   :  { %3894 = vmatprep.subr.bf16.mxu1 %v4430_v50  ;;  %v4552_v50 = vld [vmem:[#allocation13 + $0x40] ss:$8 sps:$4 sm:$0xff]  }
0x12b4   :  { %3895 = vmatpush3.bf16.msra.mxu1 %v4431_v53  ;;  %v4553_v53 = vld [vmem:[#allocation13 + $0x54] ss:$8 sps:$4 sm:$0xff]  }
0x12b7   :  { %3467 = vmatmul.mubr.bf16.vlgmr.msra.gmra.mrb[84].mxu1 %v3304_v32  ;;  %v4554_v32 = vld [vmem:[#allocation13 + $0x50] ss:$8 sps:$4 sm:$0xff]  }
0x136a   :  { %v3221_v30 = vpop.f32.mrb[80].mxu1 }
0x136b   :  { %v3222_v59 = vadd.f32 %v3718_v58, %v3221_v30  ;;  %v4220_v60 = vpop.f32.mrb[81].mxu1  ;;  %v4557_v30 = vld [vmem:[#allocation13 + $0x74] ss:$8 sps:$4 sm:$0xff]  }
0x136c   :  { %v3224_v57 = vpop.f32.mrb[82].mxu1 }
0x136d   :  { %v3228_v5 = vadd.f32 %v3222_v59, %v5382_v61  ;;  %v3225_v6 = vadd.f32 %v3718_v58, %v3224_v57  ;;  %v4221_v3 = vpop.f32.mrb[83].mxu1  ;;  %v4556_v58 = vld [vmem:[#allocation13 + $0x60] ss:$8 sps:$4 sm:$0xff]   ;;  %v4558_v59 = vld [vmem:[#allocation13 + $0x70] ss:$8 sps:$4 sm:$0xff]  }
0x136e   :  { %v4559_v57 = vld [vmem:[%s5522_s13 + $0x4] ss:$0 sm:$0xff] }
0x136f   :  { %v3229_v7 = vadd.f32 %v3225_v6, %v5385_v62  ;;  %3230 = vadd.xlane.f32.xlu0 %v3228_v5  ;;  %v3236_v63 = vmul.f32 %v3228_v5, %v3228_v5 }
0x1371   :  { %3232 = vadd.xlane.f32.xlu1 %v3229_v7  ;;  %v3237_v52 = vmul.f32 %v3229_v7, %v3229_v7 }
0x1373   :  { %3238 = vadd.xlane.f32.xlu0 %v3236_v63 }
0x1375   :  { %3240 = vadd.xlane.f32.xlu1 %v3237_v52 }
0x138a   :  { %v3896_v55 = vpop.f32.mrb[84].mxu1 }
0x138b   :  { %v3897_v8 = vpop.f32.mrb[85].mxu1 }
0x138c   :  { %v5473_v9 = vadd.f32 %v3897_v8, %v3896_v55  ;;  %v3899_v10 = vpop.f32.mrb[86].mxu1 }
0x138d   :  { %v3900_v11 = vpop.f32.mrb[87].mxu1 }
0x138e   :  { %v5475_v13 = vadd.f32 %v3900_v11, %v3899_v10 }
0x13fc   :  { %v3231_v14 = vpop.xlane.xlu0 %3230 }
0x13fd   :  { %v3234_v61 = vmul.f32 0.0078125, %v3231_v14 }
0x13fe   :  { %v3233_v15 = vpop.xlane.xlu1 %3232 }
0x13ff   :  { %v3235_v16 = vmul.f32 0.0078125, %v3233_v15  ;;  %v3244_v62 = vmul.f32 %v3234_v61, %v3234_v61  ;;  %v3250_v26 = vsub.f32 %v3228_v5, %v3234_v61 }
0x1400   :  { %v3239_v17 = vpop.xlane.xlu0 %3238 }
0x1401   :  { %v3242_v18 = vmul.f32 0.0078125, %v3239_v17  ;;  %v3245_v19 = vmul.f32 %v3235_v16, %v3235_v16  ;;  %v3251_v29 = vsub.f32 %v3229_v7, %v3235_v16 }
0x1402   :  { %v3241_v0 = vpop.xlane.xlu1 %3240 }
0x1403   :  { %v3246_v20 = vsub.f32 %v3242_v18, %v3244_v62  ;;  %v3243_v21 = vmul.f32 0.0078125, %v3241_v0 }
0x1405   :  { %v3248_v22 = vmax.f32 %v3246_v20, 0.0  ;;  %v3247_v23 = vsub.f32 %v3243_v21, %v3245_v19 }
0x1407   :  { %v3252_v24 = vadd.f32 1e-05, %v3248_v22  ;;  %v3249_v25 = vmax.f32 %v3247_v23, 0.0 }
0x1409   :  { %4524 = vrsqrt.f32 %v3252_v24  ;;  %v3253_v41 = vadd.f32 1e-05, %v3249_v25 }
0x140b   :  { %4526 = vrsqrt.f32 %v3253_v41 }
0x1413   :  { %v4525_v27 = vpop.eup %4524 }
0x1414   :  { %v3256_v33 = vmul.f32 %v4525_v27, %v3250_v26 }
0x1415   :  { %v4527_v34 = vpop.eup %4526 }
0x1416   :  { %v3257_v36 = vmul.f32 %v4527_v34, %v3251_v29  ;;  %v3258_v37 = vmul.f32 %v4542_v38, %v3256_v33 }
0x1418   :  { %v3259_v39 = vmul.f32 %v4542_v38, %v3257_v36  ;;  %v3260_v42 = vadd.f32 %v4543_v40, %v3258_v37 }
0x141a   :  { %v3261_v4 = vadd.f32 %v4543_v40, %v3259_v39 }
0x141c   :  { %v3262_v43 = vpack.c.bf16 %v3261_v4, %v3260_v42 }
0x141e   :  { %4239 = vmatmul.mubr.bf16.vlgmr.msra.gmra.mrb[56].mxu0 %v3262_v43 }
0x141f   :  { %3497 = vmatpush1.bf16.msra.mxu0 %v4544_v44  ;;  %3528 = vmatprep.mubr.bf16.mxu0 %v4785_v1  ;;  %v4555_v1 = vld [vmem:[#allocation13 + $0x64] ss:$8 sps:$4 sm:$0xff]  }
0x1420   :  { %3498 = vmatprep.subr.bf16.mxu0 %v4545_v2 }
0x1423   :  { %3499 = vmatpush1.bf16.msra.mxu0 %v4546_v45 }
0x1424   :  { %3500 = vmatprep.subr.bf16.mxu0 %v4547_v46 }
0x1427   :  { %3501 = vmatpush1.bf16.msra.mxu0 %v4548_v47 }
0x1428   :  { %3502 = vmatprep.subr.bf16.mxu0 %v4549_v48 }
0x142b   :  { %3503 = vmatpush1.bf16.msra.mxu0 %v4550_v49 }
0x142c   :  { %3504 = vmatprep.subr.bf16.mxu0 %v4551_v12 }
0x142f   :  { %3505 = vmatpush1.bf16.msra.mxu0 %v4552_v50 }
0x1430   :  { %3506 = vmatprep.subr.bf16.mxu0 %v4553_v53 }
0x1433   :  { %3507 = vmatpush1.bf16.msra.mxu0 %v4554_v32 }
0x1434   :  { %3508 = vmatprep.subr.bf16.mxu0 %v4555_v1 }
0x1437   :  { %3509 = vmatpush1.bf16.msra.mxu0 %v4556_v58 }
0x1438   :  { %3510 = vmatprep.subr.bf16.mxu0 %v4557_v30 }
0x143b   :  { %3511 = vmatpush1.bf16.msra.mxu0 %v4558_v59 }
0x14f1   :  { %v3297_v60 = vpop.f32.mrb[56].mxu0 }
0x14f2   :  { %v3298_v5 = vadd.f32 %v4559_v57, %v3297_v60  ;;  %v4240_v6 = vpop.f32.mrb[57].mxu0 }
0x14f3   :  { %v3300_v3 = vpop.f32.mrb[58].mxu0 }
0x14f4   :  { %v3475_v7 = vadd.f32 %v5473_v9, %v3298_v5  ;;  %v3301_v63 = vadd.f32 %v4559_v57, %v3300_v3  ;;  %v4241_v52 = vpop.f32.mrb[59].mxu0 }
0x14f6   :  { %v3477_v55 = vmul.f32 %v3475_v7, %v3475_v7  ;;  %v3476_v8 = vadd.f32 %v5475_v13, %v3301_v63 }
0x14f8   :  { %v3479_v10 = vmul.f32 %v3477_v55, %v3475_v7  ;;  %v3478_v11 = vmul.f32 %v3476_v8, %v3476_v8 }
0x14fa   :  { %v3481_v14 = vmul.f32 0.044715, %v3479_v10  ;;  %v3480_v61 = vmul.f32 %v3478_v11, %v3476_v8 }
0x14fc   :  { %v3483_v15 = vadd.f32 %v3481_v14, %v3475_v7  ;;  %v3482_v16 = vmul.f32 0.044715, %v3480_v61 }
0x14fe   :  { %v3485_v17 = vmul.f32 0.7978846, %v3483_v15  ;;  %v3484_v62 = vadd.f32 %v3482_v16, %v3476_v8 }
0x1500   :  { %4528 = vtanh.f32 %v3485_v17  ;;  %v3486_v18 = vmul.f32 0.7978846, %v3484_v62 }
0x1502   :  { %4530 = vtanh.f32 %v3486_v18 }
0x150a   :  { %v4529_v0 = vpop.eup %4528 }
0x150b   :  { %v3489_v19 = vadd.f32 1.0, %v4529_v0 }
0x150c   :  { %v4531_v20 = vpop.eup %4530 }
0x150d   :  { %v3490_v9 = vadd.f32 1.0, %v4531_v20  ;;  %v3491_v21 = vmul.f32 0.5, %v3489_v19 }
0x150f   :  { %v3492_v22 = vmul.f32 0.5, %v3490_v9  ;;  %v3493_v23 = vmul.f32 %v3491_v21, %v3475_v7 }
0x1511   :  { %v3494_v24 = vmul.f32 %v3492_v22, %v3476_v8 }
0x1513   :  { %v3495_v13 = vpack.c.bf16 %v3494_v24, %v3493_v23 }
0x1515   :  { %3529 = vmatmul.mubr.bf16.vlgmr.msra.gmra.mrb[60].mxu0 %v3495_v13 }
0x15e8   :  { %v3530_v25 = vpop.f32.mrb[60].mxu0 }
0x15e9   :  { %v3539_v41 = vadd.f32 %v3530_v25, %v5467_v56  ;;  %v3532_v26 = vpop.f32.mrb[61].mxu0 }
0x15ea   :  { %v3540_v27 = vadd.f32 %v3532_v26, %v5455_v35  ;;  %v3534_v29 = vpop.f32.mrb[62].mxu0 }
0x15eb   :  { %v3543_v33 = vadd.f32 %v3539_v41, %v5459_v51  ;;  %v3541_v34 = vadd.f32 %v3534_v29, %v5463_v54  ;;  %v3536_v36 = vpop.f32.mrb[63].mxu0 }
0x15ec   :  { %v3544_v38 = vadd.f32 %v3540_v27, %v5447_v28  ;;  %v3542_v37 = vadd.f32 %v3536_v36, %v5451_v31 }
0x15ed   :  { %3547 = vst [vmem:[%s5523_s14] sm:$0xff] %v3543_v33  ;;  %v3545_v39 = vadd.f32 %v3541_v34, %v5459_v51 }
0x15ee   :  { %3548 = vst [vmem:[%s5523_s14 + $0x8] sm:$0xff] %v3544_v38  ;;  %v3546_v35 = vadd.f32 %v3542_v37, %v5447_v28 }
0x15ef   :  { %3549 = vst [vmem:[%s5523_s14 + $0x10] sm:$0xff] %v3545_v39 }
0x15f0   :  { %3550 = vst [vmem:[%s5523_s14 + $0x18] sm:$0xff] %v3546_v35 }
0x15f1   :  { %3555 = vsyncpa [#allocation3], 1 }
0x15f2   :  { %3556 = vsyncpa [#allocation5], 1 }
0x15f3   :  { %3557 = vsyncpa [#allocation8], 1 }
0x15f4   :  { %3558 = vsyncpa [#allocation11], 1 }
0x15f5   :  { %3559 = vsyncpa [#allocation14], 1 }

</bundles_post_ra>
